<compile_context>
chip_gen: v6e
topology: v6e:2x2x1
jax: 0.10.0
libtpu: 0.0.40
codegen_flags: <defaults>
</compile_context>

<pallas_src>
import jax
import jax.numpy as jnp
from jax.experimental import pallas as pl
from jax.experimental.pallas import tpu as pltpu

# ---------------------------------------------------------------------------
# Static packed dimensions (all lane dims are multiples of 128)
# ---------------------------------------------------------------------------
XK = 256      # packed activation row: 4 conv sub-samples x 64 pixels, no pad
C1P = 640     # block-diag conv1 out: 2 x (8*6*6=288) = 576 -> pad 640
              #   (column 576 is the constant-1 lane that folds conv2's bias)
C2P = 512     # block-diag conv2 out: 2 x (16*4*4=256)
F1 = 512      # fc1 width
F2 = 256      # fc2 width
F3 = 128      # fc3 width: 64, padded -> 128 (lane-dense output slab)
TM_MAX = 256  # max fc rows per grid step
TM_ALIGN = 16 # sublane multiple (16 keeps bf16 tiling legal too)


def _round_up(x, m):
    return (x + m - 1) // m * m


def _choose_tm(m):
    """Row tile: fill the MXU, but keep >=2 grid steps when the batch allows."""
    return max(TM_ALIGN, min(TM_MAX, _round_up((m + 1) // 2, TM_ALIGN)))


# ---------------------------------------------------------------------------
# The single fused kernel: 5 x (matmul + bias + ReLU), everything VMEM-resident
# ---------------------------------------------------------------------------
def fused_net_kernel(x_ref, w1_ref, b1_ref, w2_ref,
                     wf1_ref, bf1_ref, wf2_ref, bf2_ref, wf3_ref, bf3_ref,
                     o_ref, h_ref):
    f32 = jnp.float32
    tm = x_ref.shape[0]
    w1 = w1_ref[...]                     # (128, 640) 2-sample block-diag conv1
    w2 = w2_ref[...]                     # (640, 512) 2-sample block-diag conv2
                                         #   (row 576 carries the conv2 bias)
    # Hoisted conv1-bias broadcast; b1[0, 576] == 1.0 is the constant lane
    # whose ReLU output multiplies w2's bias row (conv2 bias fully folded).
    b1 = jnp.broadcast_to(b1_ref[...], (tm, C1P))

    # conv1 + conv2 for the two 2-sample chunks.  Each (tm, 512) result lands
    # lane-aligned in the VMEM scratch slab, reproducing PyTorch's
    # view(-1, 1024) row order, so fc1 runs as a single K=1024 matmul.
    for s in range(2):
        a0 = x_ref[:, 128 * s:128 * (s + 1)]                           # (tm,128)
        a1 = jnp.maximum(
            jnp.dot(a0, w1, preferred_element_type=f32) + b1, 0.0)     # (tm,640)
        a2 = jnp.maximum(
            jnp.dot(a1.astype(w2.dtype), w2,
                    preferred_element_type=f32), 0.0)                  # (tm,512)
        h_ref[:, 512 * s:512 * (s + 1)] = a2.astype(h_ref.dtype)

    a3 = jnp.maximum(
        jnp.dot(h_ref[...], wf1_ref[...], preferred_element_type=f32)
        + bf1_ref[...], 0.0)                                           # (tm,512)
    a4 = jnp.maximum(
        jnp.dot(a3.astype(wf2_ref.dtype), wf2_ref[...],
                preferred_element_type=f32) + bf2_ref[...], 0.0)       # (tm,256)
    a5 = jnp.maximum(
        jnp.dot(a4.astype(wf3_ref.dtype), wf3_ref[...],
                preferred_element_type=f32) + bf3_ref[...], 0.0)       # (tm,128)
    o_ref[...] = a5.astype(o_ref.dtype)


# ---------------------------------------------------------------------------
# One-time weight preprocessing (plain JAX, outside the per-forward graph)
# ---------------------------------------------------------------------------
def _conv_as_matrix(w, H, W):
    """Exact dense M s.t. NCHW-flat(conv2d_valid(x)) = NCHW-flat(x) @ M."""
    Cout, Cin, kh, kw = w.shape
    eye = jnp.eye(Cin * H * W, dtype=w.dtype).reshape(Cin * H * W, Cin, H, W)
    out = jax.lax.conv_general_dilated(
        eye, w, window_strides=(1, 1), padding="VALID",
        dimension_numbers=("NCHW", "OIHW", "NCHW"),
        precision=jax.lax.Precision.HIGHEST)
    return out.reshape(Cin * H * W, -1)       # (Cin*H*W, Cout*Ho*Wo)


def pack_params(p, compute_dtype=jnp.float32):
    """Conv->block-diag dense, fold conv2 bias, transpose, pad to lane multiples.

    compute_dtype=jnp.bfloat16 enables the bf16 MXU path on v6e/v7x (biases and
    all bias/ReLU math stay f32; accumulation is f32 via preferred_element_type).
    """
    f32 = jnp.float32
    m1 = _conv_as_matrix(p["conv1_w"].astype(f32), 8, 8)    # (64, 288)
    m2 = _conv_as_matrix(p["conv2_w"].astype(f32), 6, 6)    # (288, 256)

    # conv1: 2-sample block-diagonal, padded 576 -> 640 lanes.
    w1 = jnp.zeros((128, C1P), f32)
    w1 = w1.at[:64, :288].set(m1).at[64:128, 288:576].set(m1)

    b1rep = jnp.repeat(p["conv1_b"].astype(f32), 36)        # (288,)
    b1 = jnp.zeros((1, C1P), f32)
    b1 = b1.at[0, :288].set(b1rep).at[0, 288:576].set(b1rep)
    b1 = b1.at[0, 576].set(1.0)          # constant-1 lane -> carries conv2 bias

    # conv2: 2-sample block-diagonal; row 576 holds the folded conv2 bias.
    b2rep = jnp.repeat(p["conv2_b"].astype(f32), 16)        # (256,)
    w2 = jnp.zeros((C1P, C2P), f32)
    w2 = w2.at[:288, :256].set(m2).at[288:576, 256:512].set(m2)
    w2 = w2.at[576, :256].set(b2rep).at[576, 256:512].set(b2rep)

    wf1 = p["fc1_w"].T.astype(f32)                           # (1024, 512)
    bf1 = p["fc1_b"].reshape(1, F1).astype(f32)
    wf2 = p["fc2_w"].T.astype(f32)                           # (512, 256)
    bf2 = p["fc2_b"].reshape(1, F2).astype(f32)
    wf3 = jnp.zeros((256, F3), f32).at[:, :64].set(p["fc3_w"].T.astype(f32))
    bf3 = jnp.zeros((1, F3), f32).at[0, :64].set(p["fc3_b"].astype(f32))

    cd = compute_dtype
    return (w1.astype(cd), b1, w2.astype(cd),
            wf1.astype(cd), bf1, wf2.astype(cd), bf2, wf3.astype(cd), bf3)


# ---------------------------------------------------------------------------
# Forward wrapper: pack the input rows, one pallas_call, slice once
# ---------------------------------------------------------------------------
def net_forward(x, packed):
    w1, b1, w2, wf1, bf1, wf2, bf2, wf3, bf3 = packed
    cd = w1.dtype                                 # compute dtype (f32 or bf16)

    xf = x.reshape(-1, 64)                        # one 8x8 image per row
    bc = xf.shape[0]
    if bc % 4 != 0:
        raise ValueError("conv batch must be a multiple of 4 (view(-1, 1024))")
    m = bc // 4                                   # fc batch (4 samples per row)
    tm = _choose_tm(m)
    mp = _round_up(m, tm)
    # Row r holds conv sub-samples 4r..4r+3 densely packed (64 lanes each).
    xg = jnp.pad(xf.reshape(m, XK).astype(cd), ((0, mp - m), (0, 0)))

    full = lambda i: (0, 0)
    tile = lambda i: (i, 0)

    per_row_macs = (2 * (128 * C1P + C1P * C2P)
                    + 1024 * F1 + F1 * F2 + F2 * F3)
    tensors = (xg, w1, b1, w2, wf1, bf1, wf2, bf2, wf3, bf3)
    bytes_accessed = (sum(int(t.size) * t.dtype.itemsize for t in tensors)
                      + mp * F3 * 4)

    out = pl.pallas_call(
        fused_net_kernel,
        out_shape=jax.ShapeDtypeStruct((mp, F3), jnp.float32),
        grid=(mp // tm,),
        in_specs=[
            pl.BlockSpec((tm, XK), tile),        # packed activations
            pl.BlockSpec((128, C1P), full),      # conv1 block-diag matrix
            pl.BlockSpec((1, C1P), full),        # conv1 bias (+ constant lane)
            pl.BlockSpec((C1P, C2P), full),      # conv2 block-diag (bias folded)
            pl.BlockSpec((1024, F1), full),      # fc1
            pl.BlockSpec((1, F1), full),
            pl.BlockSpec((F1, F2), full),        # fc2
            pl.BlockSpec((1, F2), full),
            pl.BlockSpec((256, F3), full),       # fc3 (padded to 128 lanes)
            pl.BlockSpec((1, F3), full),
        ],
        out_specs=pl.BlockSpec((tm, F3), tile),
        scratch_shapes=[pltpu.VMEM((tm, 1024), cd)],   # fc1 input slab
        compiler_params=pltpu.CompilerParams(
            dimension_semantics=("parallel",),
            vmem_limit_bytes=48 * 1024 * 1024),
        cost_estimate=pl.CostEstimate(
            flops=2 * mp * per_row_macs,
            transcendentals=0,
            bytes_accessed=bytes_accessed),
    )(xg, w1, b1, w2, wf1, bf1, wf2, bf2, wf3, bf3)

    return out[:m, :64]


# ---------------------------------------------------------------------------
# Pure-JAX reference (mirrors the PyTorch module, f32) for correctness check
# ---------------------------------------------------------------------------
def net_forward_ref(x, params):
    hp = jax.lax.Precision.HIGHEST
    y = x.reshape(-1, 1, 8, 8).astype(jnp.float32)
    y = jax.lax.conv_general_dilated(
        y, params["conv1_w"], (1, 1), "VALID",
        dimension_numbers=("NCHW", "OIHW", "NCHW"), precision=hp)
    y = jnp.maximum(y + params["conv1_b"][None, :, None, None], 0.0)
    y = jax.lax.conv_general_dilated(
        y, params["conv2_w"], (1, 1), "VALID",
        dimension_numbers=("NCHW", "OIHW", "NCHW"), precision=hp)
    y = jnp.maximum(y + params["conv2_b"][None, :, None, None], 0.0)
    y = y.reshape(-1, 16 * 8 * 8)        # PyTorch .view(): folds 4 samples/row
    y = jnp.maximum(jnp.dot(y, params["fc1_w"].T, precision=hp) + params["fc1_b"], 0.0)
    y = jnp.maximum(jnp.dot(y, params["fc2_w"].T, precision=hp) + params["fc2_b"], 0.0)
    y = jnp.maximum(jnp.dot(y, params["fc3_w"].T, precision=hp) + params["fc3_b"], 0.0)
    return y


def init_params(key):
    """Deterministic init mimicking PyTorch default U(-1/sqrt(fan_in), +)."""
    def uniform(k, shape, fan_in):
        bound = 1.0 / float(fan_in) ** 0.5
        return jax.random.uniform(k, shape, jnp.float32, -bound, bound)

    keys = jax.random.split(key, 10)
    return {
        "conv1_w": uniform(keys[0], (8, 1, 3, 3), 1 * 3 * 3),
        "conv1_b": uniform(keys[1], (8,), 1 * 3 * 3),
        "conv2_w": uniform(keys[2], (16, 8, 3, 3), 8 * 3 * 3),
        "conv2_b": uniform(keys[3], (16,), 8 * 3 * 3),
        "fc1_w": uniform(keys[4], (512, 1024), 1024),
        "fc1_b": uniform(keys[5], (512,), 1024),
        "fc2_w": uniform(keys[6], (256, 512), 512),
        "fc2_b": uniform(keys[7], (256,), 512),
        "fc3_w": uniform(keys[8], (64, 256), 256),
        "fc3_b": uniform(keys[9], (64,), 256),
    }


if __name__ == "__main__":
    key = jax.random.PRNGKey(0)
    pkey, k1, k2 = jax.random.split(key, 3)
    params = init_params(pkey)
    packed = pack_params(params)          # one-time weight preprocessing (f32)

    fwd = jax.jit(net_forward)

    # Small batch: 8 flattened 8x8 images -> conv batch 8 -> fc batch 2.
    x1 = jax.random.normal(k1, (8, 64), jnp.float32)
    out1 = jax.block_until_ready(fwd(x1, packed))
    ref1 = net_forward_ref(x1, params)
    assert out1.shape == (2, 64), out1.shape
    assert bool(jnp.all(out1 >= 0.0))     # final ReLU
    assert bool(jnp.allclose(out1, ref1, rtol=1e-2, atol=1e-2)), \
        float(jnp.max(jnp.abs(out1 - ref1)))

    # Larger batch: exercises row padding (40 -> 64 rows) and a 2-step grid.
    x2 = jax.random.normal(k2, (160, 64), jnp.float32)
    out2 = jax.block_until_ready(fwd(x2, packed))
    ref2 = net_forward_ref(x2, params)
    assert out2.shape == (40, 64), out2.shape
    assert bool(jnp.all(out2 >= 0.0))
    assert bool(jnp.allclose(out2, ref2, rtol=1e-2, atol=1e-2)), \
        float(jnp.max(jnp.abs(out2 - ref2)))

    print("KERNEL_OK")
</pallas_src>

<mosaic_0001>
module attributes {stable_mosaic.version = 11 : i64} {
  func.func @fused_net_kernel(%arg0: i32, %arg1: memref<16x256xf32, #tpu.memory_space<vmem>>, %arg2: memref<128x640xf32, #tpu.memory_space<vmem>>, %arg3: memref<1x640xf32, #tpu.memory_space<vmem>>, %arg4: memref<640x512xf32, #tpu.memory_space<vmem>>, %arg5: memref<1024x512xf32, #tpu.memory_space<vmem>>, %arg6: memref<1x512xf32, #tpu.memory_space<vmem>>, %arg7: memref<512x256xf32, #tpu.memory_space<vmem>>, %arg8: memref<1x256xf32, #tpu.memory_space<vmem>>, %arg9: memref<256x128xf32, #tpu.memory_space<vmem>>, %arg10: memref<1x128xf32, #tpu.memory_space<vmem>>, %arg11: memref<16x128xf32, #tpu.memory_space<vmem>>, %arg12: memref<16x1024xf32, #tpu.memory_space<vmem>>) attributes {dimension_semantics = [#tpu.dimension_semantics<parallel>], iteration_bounds = array<i64: 1>, scalar_prefetch = 0 : i64, scratch_operands = 1 : i64, tpu.core_type = #tpu.core_type<tc>, window_params = [{transform_indices = @transform_0, window_bounds = array<i64: 16, 256>}, {pipeline_mode = #tpu.pipeline_mode<synchronous>, transform_indices = @transform_1, window_bounds = array<i64: 128, 640>}, {pipeline_mode = #tpu.pipeline_mode<synchronous>, transform_indices = @transform_2, window_bounds = array<i64: 1, 640>}, {pipeline_mode = #tpu.pipeline_mode<synchronous>, transform_indices = @transform_3, window_bounds = array<i64: 640, 512>}, {pipeline_mode = #tpu.pipeline_mode<synchronous>, transform_indices = @transform_4, window_bounds = array<i64: 1024, 512>}, {pipeline_mode = #tpu.pipeline_mode<synchronous>, transform_indices = @transform_5, window_bounds = array<i64: 1, 512>}, {pipeline_mode = #tpu.pipeline_mode<synchronous>, transform_indices = @transform_6, window_bounds = array<i64: 512, 256>}, {pipeline_mode = #tpu.pipeline_mode<synchronous>, transform_indices = @transform_7, window_bounds = array<i64: 1, 256>}, {pipeline_mode = #tpu.pipeline_mode<synchronous>, transform_indices = @transform_8, window_bounds = array<i64: 256, 128>}, {pipeline_mode = #tpu.pipeline_mode<synchronous>, transform_indices = @transform_9, window_bounds = array<i64: 1, 128>}, {transform_indices = @transform_10, window_bounds = array<i64: 16, 128>}]} {
    %c0 = arith.constant 0 : index
    %c0_0 = arith.constant 0 : index
    %0 = vector.load %arg2[%c0, %c0_0] : memref<128x640xf32, #tpu.memory_space<vmem>>, vector<128x640xf32>
    %c0_1 = arith.constant 0 : index
    %c0_2 = arith.constant 0 : index
    %1 = vector.load %arg4[%c0_1, %c0_2] : memref<640x512xf32, #tpu.memory_space<vmem>>, vector<640x512xf32>
    %c0_3 = arith.constant 0 : index
    %c0_4 = arith.constant 0 : index
    %2 = vector.load %arg3[%c0_3, %c0_4] : memref<1x640xf32, #tpu.memory_space<vmem>>, vector<1x640xf32>
    %3 = vector.shape_cast %2 : vector<1x640xf32> to vector<1x640xf32>
    %4 = vector.broadcast %3 : vector<1x640xf32> to vector<16x640xf32>
    %c0_5 = arith.constant 0 : index
    %c0_6 = arith.constant 0 : index
    %5 = vector.load %arg1[%c0_5, %c0_6] : memref<16x256xf32, #tpu.memory_space<vmem>>, vector<16x128xf32>
    %cst = arith.constant dense<0.000000e+00> : vector<16x640xf32>
    %6 = tpu.matmul %5, %0, %cst {dimension_numbers = #tpu.dot_dimension_numbers<[1], [0], [0], [1], [0, 0, 1, 1], [], []>} : vector<16x128xf32>, vector<128x640xf32>, vector<16x640xf32> -> vector<16x640xf32>
    %7 = arith.addf %6, %4 : vector<16x640xf32>
    %cst_7 = arith.constant 0.000000e+00 : f32
    %8 = vector.broadcast %cst_7 : f32 to vector<16x640xf32>
    %9 = arith.maximumf %7, %8 : vector<16x640xf32>
    %cst_8 = arith.constant dense<0.000000e+00> : vector<16x512xf32>
    %10 = tpu.matmul %9, %1, %cst_8 {dimension_numbers = #tpu.dot_dimension_numbers<[1], [0], [0], [1], [0, 0, 1, 1], [], []>} : vector<16x640xf32>, vector<640x512xf32>, vector<16x512xf32> -> vector<16x512xf32>
    %cst_9 = arith.constant 0.000000e+00 : f32
    %11 = vector.broadcast %cst_9 : f32 to vector<16x512xf32>
    %12 = arith.maximumf %10, %11 : vector<16x512xf32>
    %c0_10 = arith.constant 0 : index
    %c0_11 = arith.constant 0 : index
    %13 = vector.load %arg12[%c0_10, %c0_11] : memref<16x1024xf32, #tpu.memory_space<vmem>>, vector<16x512xf32>
    tpu.vector_store %arg12[%c0_10, %c0_11], %12 {strides = array<i32>} : memref<16x1024xf32, #tpu.memory_space<vmem>>, vector<16x512xf32>,
    %c0_12 = arith.constant 0 : index
    %c128 = arith.constant 128 : index
    %14 = vector.load %arg1[%c0_12, %c128] : memref<16x256xf32, #tpu.memory_space<vmem>>, vector<16x128xf32>
    %cst_13 = arith.constant dense<0.000000e+00> : vector<16x640xf32>
    %15 = tpu.matmul %14, %0, %cst_13 {dimension_numbers = #tpu.dot_dimension_numbers<[1], [0], [0], [1], [0, 0, 1, 1], [], []>} : vector<16x128xf32>, vector<128x640xf32>, vector<16x640xf32> -> vector<16x640xf32>
    %16 = arith.addf %15, %4 : vector<16x640xf32>
    %cst_14 = arith.constant 0.000000e+00 : f32
    %17 = vector.broadcast %cst_14 : f32 to vector<16x640xf32>
    %18 = arith.maximumf %16, %17 : vector<16x640xf32>
    %cst_15 = arith.constant dense<0.000000e+00> : vector<16x512xf32>
    %19 = tpu.matmul %18, %1, %cst_15 {dimension_numbers = #tpu.dot_dimension_numbers<[1], [0], [0], [1], [0, 0, 1, 1], [], []>} : vector<16x640xf32>, vector<640x512xf32>, vector<16x512xf32> -> vector<16x512xf32>
    %cst_16 = arith.constant 0.000000e+00 : f32
    %20 = vector.broadcast %cst_16 : f32 to vector<16x512xf32>
    %21 = arith.maximumf %19, %20 : vector<16x512xf32>
    %c0_17 = arith.constant 0 : index
    %c512 = arith.constant 512 : index
    %22 = vector.load %arg12[%c0_17, %c512] : memref<16x1024xf32, #tpu.memory_space<vmem>>, vector<16x512xf32>
    tpu.vector_store %arg12[%c0_17, %c512], %21 {strides = array<i32>} : memref<16x1024xf32, #tpu.memory_space<vmem>>, vector<16x512xf32>,
    %c0_18 = arith.constant 0 : index
    %c0_19 = arith.constant 0 : index
    %23 = vector.load %arg12[%c0_18, %c0_19] : memref<16x1024xf32, #tpu.memory_space<vmem>>, vector<16x1024xf32>
    %c0_20 = arith.constant 0 : index
    %c0_21 = arith.constant 0 : index
    %24 = vector.load %arg5[%c0_20, %c0_21] : memref<1024x512xf32, #tpu.memory_space<vmem>>, vector<1024x512xf32>
    %cst_22 = arith.constant dense<0.000000e+00> : vector<16x512xf32>
    %25 = tpu.matmul %23, %24, %cst_22 {dimension_numbers = #tpu.dot_dimension_numbers<[1], [0], [0], [1], [0, 0, 1, 1], [], []>} : vector<16x1024xf32>, vector<1024x512xf32>, vector<16x512xf32> -> vector<16x512xf32>
    %c0_23 = arith.constant 0 : index
    %c0_24 = arith.constant 0 : index
    %26 = vector.load %arg6[%c0_23, %c0_24] : memref<1x512xf32, #tpu.memory_space<vmem>>, vector<1x512xf32>
    %27 = vector.broadcast %26 : vector<1x512xf32> to vector<16x512xf32>
    %28 = arith.addf %25, %27 : vector<16x512xf32>
    %cst_25 = arith.constant 0.000000e+00 : f32
    %29 = vector.broadcast %cst_25 : f32 to vector<16x512xf32>
    %30 = arith.maximumf %28, %29 : vector<16x512xf32>
    %c0_26 = arith.constant 0 : index
    %c0_27 = arith.constant 0 : index
    %31 = vector.load %arg7[%c0_26, %c0_27] : memref<512x256xf32, #tpu.memory_space<vmem>>, vector<512x256xf32>
    %cst_28 = arith.constant dense<0.000000e+00> : vector<16x256xf32>
    %32 = tpu.matmul %30, %31, %cst_28 {dimension_numbers = #tpu.dot_dimension_numbers<[1], [0], [0], [1], [0, 0, 1, 1], [], []>} : vector<16x512xf32>, vector<512x256xf32>, vector<16x256xf32> -> vector<16x256xf32>
    %c0_29 = arith.constant 0 : index
    %c0_30 = arith.constant 0 : index
    %33 = vector.load %arg8[%c0_29, %c0_30] : memref<1x256xf32, #tpu.memory_space<vmem>>, vector<1x256xf32>
    %34 = vector.broadcast %33 : vector<1x256xf32> to vector<16x256xf32>
    %35 = arith.addf %32, %34 : vector<16x256xf32>
    %cst_31 = arith.constant 0.000000e+00 : f32
    %36 = vector.broadcast %cst_31 : f32 to vector<16x256xf32>
    %37 = arith.maximumf %35, %36 : vector<16x256xf32>
    %c0_32 = arith.constant 0 : index
    %c0_33 = arith.constant 0 : index
    %38 = vector.load %arg9[%c0_32, %c0_33] : memref<256x128xf32, #tpu.memory_space<vmem>>, vector<256x128xf32>
    %cst_34 = arith.constant dense<0.000000e+00> : vector<16x128xf32>
    %39 = tpu.matmul %37, %38, %cst_34 {dimension_numbers = #tpu.dot_dimension_numbers<[1], [0], [0], [1], [0, 0, 1, 1], [], []>} : vector<16x256xf32>, vector<256x128xf32>, vector<16x128xf32> -> vector<16x128xf32>
    %c0_35 = arith.constant 0 : index
    %c0_36 = arith.constant 0 : index
    %40 = vector.load %arg10[%c0_35, %c0_36] : memref<1x128xf32, #tpu.memory_space<vmem>>, vector<1x128xf32>
    %41 = vector.broadcast %40 : vector<1x128xf32> to vector<16x128xf32>
    %42 = arith.addf %39, %41 : vector<16x128xf32>
    %cst_37 = arith.constant 0.000000e+00 : f32
    %43 = vector.broadcast %cst_37 : f32 to vector<16x128xf32>
    %44 = arith.maximumf %42, %43 : vector<16x128xf32>
    %c0_38 = arith.constant 0 : index
    %c0_39 = arith.constant 0 : index
    %45 = vector.load %arg11[%c0_38, %c0_39] : memref<16x128xf32, #tpu.memory_space<vmem>>, vector<16x128xf32>
    tpu.vector_store %arg11[%c0_38, %c0_39], %44 {strides = array<i32>} : memref<16x128xf32, #tpu.memory_space<vmem>>, vector<16x128xf32>,
    return
  }
  func.func @transform_0(%arg0: i32) -> (i32, i32) {
    %c0_i32 = arith.constant 0 : i32
    %c0_i32_0 = arith.constant 0 : i32
    return %arg0, %c0_i32 : i32, i32
  }
  func.func @transform_1(%arg0: i32) -> (i32, i32) {
    %c0_i32 = arith.constant 0 : i32
    %c0_i32_0 = arith.constant 0 : i32
    %c0_i32_1 = arith.constant 0 : i32
    return %c0_i32, %c0_i32_0 : i32, i32
  }
  func.func @transform_2(%arg0: i32) -> (i32, i32) {
    %c0_i32 = arith.constant 0 : i32
    %c0_i32_0 = arith.constant 0 : i32
    %c0_i32_1 = arith.constant 0 : i32
    return %c0_i32, %c0_i32_0 : i32, i32
  }
  func.func @transform_3(%arg0: i32) -> (i32, i32) {
    %c0_i32 = arith.constant 0 : i32
    %c0_i32_0 = arith.constant 0 : i32
    %c0_i32_1 = arith.constant 0 : i32
    return %c0_i32, %c0_i32_0 : i32, i32
  }
  func.func @transform_4(%arg0: i32) -> (i32, i32) {
    %c0_i32 = arith.constant 0 : i32
    %c0_i32_0 = arith.constant 0 : i32
    %c0_i32_1 = arith.constant 0 : i32
    return %c0_i32, %c0_i32_0 : i32, i32
  }
  func.func @transform_5(%arg0: i32) -> (i32, i32) {
    %c0_i32 = arith.constant 0 : i32
    %c0_i32_0 = arith.constant 0 : i32
    %c0_i32_1 = arith.constant 0 : i32
    return %c0_i32, %c0_i32_0 : i32, i32
  }
  func.func @transform_6(%arg0: i32) -> (i32, i32) {
    %c0_i32 = arith.constant 0 : i32
    %c0_i32_0 = arith.constant 0 : i32
    %c0_i32_1 = arith.constant 0 : i32
    return %c0_i32, %c0_i32_0 : i32, i32
  }
  func.func @transform_7(%arg0: i32) -> (i32, i32) {
    %c0_i32 = arith.constant 0 : i32
    %c0_i32_0 = arith.constant 0 : i32
    %c0_i32_1 = arith.constant 0 : i32
    return %c0_i32, %c0_i32_0 : i32, i32
  }
  func.func @transform_8(%arg0: i32) -> (i32, i32) {
    %c0_i32 = arith.constant 0 : i32
    %c0_i32_0 = arith.constant 0 : i32
    %c0_i32_1 = arith.constant 0 : i32
    return %c0_i32, %c0_i32_0 : i32, i32
  }
  func.func @transform_9(%arg0: i32) -> (i32, i32) {
    %c0_i32 = arith.constant 0 : i32
    %c0_i32_0 = arith.constant 0 : i32
    %c0_i32_1 = arith.constant 0 : i32
    return %c0_i32, %c0_i32_0 : i32, i32
  }
  func.func @transform_10(%arg0: i32) -> (i32, i32) {
    %c0_i32 = arith.constant 0 : i32
    %c0_i32_0 = arith.constant 0 : i32
    return %arg0, %c0_i32 : i32, i32
  }
}

</mosaic_0001>

<bundles_post_ra>
// kernel: net_forward.1
= control target key start
LH: loop header
LB: loop body
LE: loop exit
PB: predicated region body
PF: predicated region fallthrough
CT: control target
= control target key end

     0   :  { %15 = vsyncpa [#allocation4], 0  ;;  %s4958_s0 = inlined_call_operand.vmem [shape: f32[16,256], index: 0, kind: input, shape index: {}]   ;;  %s4959_s1 = inlined_call_operand.hbm [shape: f32[128,640], index: 1, kind: input, shape index: {}]   ;;  %s4960_s2 = inlined_call_operand.hbm [shape: f32[1,640], index: 2, kind: input, shape index: {}]   ;;  %s4961_s3 = inlined_call_operand.hbm [shape: f32[640,512], index: 3, kind: input, shape index: {}]   ;;  %s4962_s4 = inlined_call_operand.hbm [shape: f32[1024,512], index: 4, kind: input, shape index: {}]   ;;  %s4963_s5 = inlined_call_operand.hbm [shape: f32[1,512], index: 5, kind: input, shape index: {}]   ;;  %s4964_s6 = inlined_call_operand.hbm [shape: f32[512,256], index: 6, kind: input, shape index: {}]   ;;  %s4965_s7 = inlined_call_operand.hbm [shape: f32[1,256], index: 7, kind: input, shape index: {}]   ;;  %s4966_s8 = inlined_call_operand.hbm [shape: f32[256,128], index: 8, kind: input, shape index: {}]   ;;  %s4967_s9 = inlined_call_operand.hbm [shape: f32[1,128], index: 9, kind: input, shape index: {}]   ;;  %s4968_s10 = inlined_call_operand.vmem [shape: f32[16,128], index: 10, kind: output, shape index: {}]  }
   0x1   :  { %16 = vsyncpa [#allocation6], 0 }
   0x2   :  { %17 = vsyncpa [#allocation9], 0 }
   0x3   :  { %18 = vsyncpa [#allocation12], 0 }
   0x4   :  { %19 = vsyncpa [#allocation15], 0  ;;  %s4398_s13 = smov [#allocation5]  }
   0x5   :  { %s40_s14 = sshll.u32 %s4398_s13, 4  ;;  %s41_s14 = int_to_ptr.vmem [resolvable:$true] %s40_s14 }
   0x6   :  { %s4216_s15 = scalar_lea.vmem %s41_s14, 80  ;;  %s4220_s16 = scalar_lea.vmem %s41_s14, 96 }
   0x7   :  { %p4217_p0 = scmp.ne.s32.totalorder %s41_s14, %s4216_s15  ;;  %p4221_p1 = scmp.lt.s32.totalorder %s41_s14, %s41_s14 }
   0x8   :  { %p4222_p2 = scmp.lt.s32.totalorder %s4220_s16, %s4216_s15 }
   0xa   :  { %p4223_p3 = por %p4222_p2, %p4221_p1 }
   0xc   :  { %p4224_p4 = pnand %p4223_p3, %p4217_p0 }
   0xe   :  { %4227 = shalt.err (!%p4224_p4)
}
   0xf   :  { %43 = dma.hbm_to_vmem [thread:$0]  %s4960_s2, 80, %s41_s14, [#allocation6]  }
  0x10   :  { %s4399_s19 = smov [#allocation8]   ;;  %s4400_s21 = smov [#allocation11]  }
  0x11   :  { %s61_s20 = sshll.u32 %s4399_s19, 4  ;;  %s83_s22 = sshll.u32 %s4400_s21, 4  ;;  %s62_s20 = int_to_ptr.vmem [resolvable:$true] %s61_s20  ;;  %s84_s22 = int_to_ptr.vmem [resolvable:$true] %s83_s22 }
  0x12   :  { %s4236_s23 = scalar_lea.vmem %s62_s20, 65536  ;;  %p4241_p6 = scmp.lt.s32.totalorder %s62_s20, %s62_s20 }
  0x13   :  { %p4237_p5 = scmp.ne.s32.totalorder %s62_s20, %s4236_s23  ;;  %p4242_p7 = scmp.lt.s32.totalorder %s4236_s23, %s4236_s23 }
  0x15   :  { %p4243_p8 = por %p4242_p7, %p4241_p6 }
  0x17   :  { %p4244_p9 = pnand %p4243_p8, %p4237_p5 }
  0x19   :  { %4247 = shalt.err (!%p4244_p9)
}
  0x1a   :  { %s4401_s24 = smov 512   ;;  %s4402_s25 = smov 32  }
  0x1b   :  { %67 = dma.hbm_to_vmem [thread:$0]  %s4962_s4, 65536, %s62_s20, [#allocation9], %s4401_s24, %s4401_s24, %s4402_s25  }
  0x1c   :  { %s4256_s2 = scalar_lea.vmem %s84_s22, 16384  ;;  %p4261_p11 = scmp.lt.s32.totalorder %s84_s22, %s84_s22 }
  0x1d   :  { %p4257_p10 = scmp.ne.s32.totalorder %s84_s22, %s4256_s2  ;;  %p4262_p12 = scmp.lt.s32.totalorder %s4256_s2, %s4256_s2 }
  0x1f   :  { %p4263_p13 = por %p4262_p12, %p4261_p11 }
  0x21   :  { %p4264_p0 = pnand %p4263_p13, %p4257_p10 }
  0x23   :  { %4267 = shalt.err (!%p4264_p0)
}
  0x24   :  { %s4403_s28 = smov 256   ;;  %s4404_s29 = smov 16  }
  0x25   :  { %89 = dma.hbm_to_vmem [thread:$0]  %s4964_s6, 16384, %s84_s22, [#allocation12], %s4403_s28, %s4403_s28, %s4404_s29  }
  0x26   :  { %s4405_s12 = smov [#allocation14]  }
  0x27   :  { %s105_s13 = sshll.u32 %s4405_s12, 4  ;;  %s106_s13 = int_to_ptr.vmem [resolvable:$true] %s105_s13 }
  0x28   :  { %s4276_s14 = scalar_lea.vmem %s106_s13, 4096  ;;  %p4281_p2 = scmp.lt.s32.totalorder %s106_s13, %s106_s13 }
  0x29   :  { %p4277_p1 = scmp.ne.s32.totalorder %s106_s13, %s4276_s14  ;;  %p4282_p3 = scmp.lt.s32.totalorder %s4276_s14, %s4276_s14 }
  0x2b   :  { %p4283_p4 = por %p4282_p3, %p4281_p2 }
  0x2d   :  { %p4284_p5 = pnand %p4283_p4, %p4277_p1 }
  0x2f   :  { %4287 = shalt.err (!%p4284_p5)
}
  0x30   :  { %s4406_s4 = smov 128   ;;  %s4407_s15 = smov 8  }
  0x31   :  { %111 = dma.hbm_to_vmem [thread:$0]  %s4966_s8, 4096, %s106_s13, [#allocation15], %s4406_s4, %s4406_s4, %s4407_s15  }
  0x32   :  { %s4408_s18 = smov [#allocation3]  }
  0x33   :  { %s27_s19 = sshll.u32 %s4408_s18, 4  ;;  %s28_s19 = int_to_ptr.vmem [resolvable:$true] %s27_s19 }
  0x34   :  { %s4296_s6 = scalar_lea.vmem %s28_s19, 10240  ;;  %p4301_p7 = scmp.lt.s32.totalorder %s28_s19, %s28_s19 }
  0x35   :  { %p4297_p6 = scmp.ne.s32.totalorder %s28_s19, %s4296_s6  ;;  %p4302_p8 = scmp.lt.s32.totalorder %s4296_s6, %s4296_s6 }
  0x37   :  { %p4303_p9 = por %p4302_p8, %p4301_p7 }
  0x39   :  { %p4304_p10 = pnand %p4303_p9, %p4297_p6 }
  0x3b   :  { %4307 = shalt.err (!%p4304_p10)
}
  0x3c   :  { %s4409_s20 = smov 640   ;;  %s4410_s21 = smov 40  }
  0x3d   :  { %33 = dma.hbm_to_vmem [thread:$0]  %s4959_s1, 10240, %s28_s19, [#allocation4], %s4409_s20, %s4409_s20, %s4410_s21  }
  0x3e   :  { %s4411_s26 = smov [#allocation7]   ;;  %s4412_s8 = smov [#allocation10]  }
  0x3f   :  { %s49_s27 = sshll.u32 %s4411_s26, 4  ;;  %s74_s2 = sshll.u32 %s4412_s8, 4  ;;  %s50_s27 = int_to_ptr.vmem [resolvable:$true] %s49_s27  ;;  %s75_s2 = int_to_ptr.vmem [resolvable:$true] %s74_s2 }
  0x40   :  { %s4316_s28 = scalar_lea.vmem %s50_s27, 40960  ;;  %p4321_p12 = scmp.lt.s32.totalorder %s50_s27, %s50_s27 }
  0x41   :  { %p4317_p11 = scmp.ne.s32.totalorder %s50_s27, %s4316_s28  ;;  %p4322_p13 = scmp.lt.s32.totalorder %s4316_s28, %s4316_s28 }
  0x43   :  { %p4323_p0 = por %p4322_p13, %p4321_p12 }
  0x45   :  { %p4324_p1 = pnand %p4323_p0, %p4317_p11 }
  0x47   :  { %4327 = shalt.err (!%p4324_p1)
}
  0x48   :  { %55 = dma.hbm_to_vmem [thread:$0]  %s4961_s3, 40960, %s50_s27, [#allocation6], %s4401_s24, %s4401_s24, %s4402_s25  }
  0x49   :  { %s4336_s1 = scalar_lea.vmem %s75_s2, 64  ;;  %p4341_p3 = scmp.lt.s32.totalorder %s75_s2, %s75_s2 }
  0x4a   :  { %p4337_p2 = scmp.ne.s32.totalorder %s75_s2, %s4336_s1  ;;  %p4342_p4 = scmp.lt.s32.totalorder %s4336_s1, %s4336_s1 }
  0x4c   :  { %p4343_p5 = por %p4342_p4, %p4341_p3 }
  0x4e   :  { %p4344_p6 = pnand %p4343_p5, %p4337_p2 }
  0x50   :  { %4347 = shalt.err (!%p4344_p6)
}
  0x51   :  { %77 = dma.hbm_to_vmem [thread:$0]  %s4963_s5, 64, %s75_s2, [#allocation9]  }
  0x52   :  { %s4413_s13 = smov [#allocation13]   ;;  %s4414_s4 = smov [#allocation16]  }
  0x53   :  { %s96_s14 = sshll.u32 %s4413_s13, 4  ;;  %s118_s15 = sshll.u32 %s4414_s4, 4  ;;  %s97_s14 = int_to_ptr.vmem [resolvable:$true] %s96_s14  ;;  %s119_s15 = int_to_ptr.vmem [resolvable:$true] %s118_s15 }
  0x54   :  { %s4356_s16 = scalar_lea.vmem %s97_s14, 32  ;;  %p4361_p8 = scmp.lt.s32.totalorder %s97_s14, %s97_s14 }
  0x55   :  { %p4357_p7 = scmp.ne.s32.totalorder %s97_s14, %s4356_s16  ;;  %p4362_p9 = scmp.lt.s32.totalorder %s4356_s16, %s4356_s16 }
  0x57   :  { %p4363_p10 = por %p4362_p9, %p4361_p8 }
  0x59   :  { %p4364_p11 = pnand %p4363_p10, %p4357_p7 }
  0x5b   :  { %4367 = shalt.err (!%p4364_p11)
}
  0x5c   :  { %99 = dma.hbm_to_vmem [thread:$0]  %s4965_s7, 32, %s97_s14, [#allocation12]  }
  0x5d   :  { %s4376_s25 = scalar_lea.vmem %s119_s15, 16  ;;  %s4380_s5 = scalar_lea.vmem %s119_s15, 32 }
  0x5e   :  { %p4377_p12 = scmp.ne.s32.totalorder %s119_s15, %s4376_s25  ;;  %p4381_p13 = scmp.lt.s32.totalorder %s119_s15, %s119_s15 }
  0x5f   :  { %p4382_p0 = scmp.lt.s32.totalorder %s4380_s5, %s4376_s25 }
  0x61   :  { %p4383_p1 = por %p4382_p0, %p4381_p13 }
  0x63   :  { %p4384_p2 = pnand %p4383_p1, %p4377_p12 }
  0x65   :  { %4387 = shalt.err (!%p4384_p2)
}
  0x66   :  { %121 = dma.hbm_to_vmem [thread:$0]  %s4967_s9, 16, %s119_s15, [#allocation15]  }
  0x67   :  { %4388 = dma.done.wait [#allocation4], 10240  }
  0x68   :  { %4389 = vsyncadd [#allocation4], 4294957056 }
  0x69   :  { %4390 = dma.done.wait [#allocation6], 41040  }
  0x6a   :  { %4391 = vsyncadd [#allocation6], 4294926256 }
  0x6b   :  { %4392 = dma.done.wait [#allocation9], 65600  }
  0x6c   :  { %4393 = vsyncadd [#allocation9], 4294901696 }
  0x6d   :  { %4394 = dma.done.wait [#allocation12], 16416  }
  0x6e   :  { %4395 = vsyncadd [#allocation12], 4294950880 }
  0x6f   :  { %4396 = dma.done.wait [#allocation15], 4112  }
  0x70   :  { %4397 = vsyncadd [#allocation15], 4294963184  ;;  %v4415_v0 = vmov 0.0   ;;  %v225_v1 = vld [vmem:[#allocation3 + $0x260] sm:$0xff]  ;;  %v227_v2 = vld [vmem:[#allocation3 + $0x270] sm:$0xff] }
  0x71   :  { %642 = vmatprep.mubr.f32.mxu0 %v4415_v0  ;;  %719 = vmatprep.mubr.f32.mxu1 %v4415_v0  ;;  %v224_v3 = vld [vmem:[#allocation3 + $0x258] sm:$0xff]  ;;  %v226_v4 = vld [vmem:[#allocation3 + $0x268] sm:$0xff]  ;;  %v219_v7 = vld [vmem:[#allocation3 + $0x230] sm:$0xff] }
  0x72   :  { %578 = vmatprep.subr.mxu0 %v225_v1  ;;  %655 = vmatprep.subr.mxu1 %v227_v2  ;;  %v220_v5 = vld [vmem:[#allocation3 + $0x238] sm:$0xff]  ;;  %v222_v6 = vld [vmem:[#allocation3 + $0x248] sm:$0xff]  ;;  %v221_v8 = vld [vmem:[#allocation3 + $0x240] sm:$0xff] }
  0x73   :  { %579 = vmatpush1.msra.mxu0 %v224_v3  ;;  %656 = vmatpush1.msra.mxu1 %v226_v4  ;;  %v215_v9 = vld [vmem:[#allocation3 + $0x210] sm:$0xff]  ;;  %v217_v10 = vld [vmem:[#allocation3 + $0x220] sm:$0xff]  ;;  %v214_v11 = vld [vmem:[#allocation3 + $0x208] sm:$0xff] }
  0x74   :  { %580 = vmatprep.subr.mxu0 %v220_v5  ;;  %657 = vmatprep.subr.mxu1 %v222_v6  ;;  %v216_v12 = vld [vmem:[#allocation3 + $0x218] sm:$0xff]  ;;  %v210_v13 = vld [vmem:[#allocation3 + $0x1e8] sm:$0xff]  ;;  %v209_v15 = vld [vmem:[#allocation3 + $0x1e0] sm:$0xff] }
  0x75   :  { %581 = vmatpush1.msra.mxu0 %v219_v7  ;;  %658 = vmatpush1.msra.mxu1 %v221_v8  ;;  %v212_v14 = vld [vmem:[#allocation3 + $0x1f8] sm:$0xff]  ;;  %v211_v16 = vld [vmem:[#allocation3 + $0x1f0] sm:$0xff]  ;;  %v205_v17 = vld [vmem:[#allocation3 + $0x1c0] sm:$0xff] }
  0x76   :  { %582 = vmatprep.subr.mxu0 %v215_v9  ;;  %659 = vmatprep.subr.mxu1 %v217_v10  ;;  %v207_v18 = vld [vmem:[#allocation3 + $0x1d0] sm:$0xff]  ;;  %v204_v19 = vld [vmem:[#allocation3 + $0x1b8] sm:$0xff]  ;;  %v206_v20 = vld [vmem:[#allocation3 + $0x1c8] sm:$0xff] }
  0x77   :  { %583 = vmatpush1.msra.mxu0 %v214_v11  ;;  %660 = vmatpush1.msra.mxu1 %v216_v12  ;;  %v200_v21 = vld [vmem:[#allocation3 + $0x198] sm:$0xff]  ;;  %v202_v22 = vld [vmem:[#allocation3 + $0x1a8] sm:$0xff]  ;;  %v199_v23 = vld [vmem:[#allocation3 + $0x190] sm:$0xff] }
  0x78   :  { %584 = vmatprep.subr.mxu0 %v210_v13  ;;  %661 = vmatprep.subr.mxu1 %v212_v14  ;;  %v201_v24 = vld [vmem:[#allocation3 + $0x1a0] sm:$0xff]  ;;  %v195_v25 = vld [vmem:[#allocation3 + $0x170] sm:$0xff]  ;;  %v194_v27 = vld [vmem:[#allocation3 + $0x168] sm:$0xff] }
  0x79   :  { %585 = vmatpush1.msra.mxu0 %v209_v15  ;;  %662 = vmatpush1.msra.mxu1 %v211_v16  ;;  %v197_v26 = vld [vmem:[#allocation3 + $0x180] sm:$0xff]  ;;  %v196_v28 = vld [vmem:[#allocation3 + $0x178] sm:$0xff]  ;;  %v190_v29 = vld [vmem:[#allocation3 + $0x148] sm:$0xff] }
  0x7a   :  { %586 = vmatprep.subr.mxu0 %v205_v17  ;;  %663 = vmatprep.subr.mxu1 %v207_v18  ;;  %v192_v30 = vld [vmem:[#allocation3 + $0x158] sm:$0xff]  ;;  %v189_v31 = vld [vmem:[#allocation3 + $0x140] sm:$0xff]  ;;  %v191_v32 = vld [vmem:[#allocation3 + $0x150] sm:$0xff] }
  0x7b   :  { %587 = vmatpush1.msra.mxu0 %v204_v19  ;;  %664 = vmatpush1.msra.mxu1 %v206_v20  ;;  %v185_v33 = vld [vmem:[#allocation3 + $0x120] sm:$0xff]  ;;  %v187_v34 = vld [vmem:[#allocation3 + $0x130] sm:$0xff]  ;;  %v184_v35 = vld [vmem:[#allocation3 + $0x118] sm:$0xff] }
  0x7c   :  { %588 = vmatprep.subr.mxu0 %v200_v21  ;;  %665 = vmatprep.subr.mxu1 %v202_v22  ;;  %v186_v36 = vld [vmem:[#allocation3 + $0x128] sm:$0xff]  ;;  %v180_v37 = vld [vmem:[#allocation3 + $0xf8] sm:$0xff]  ;;  %v179_v39 = vld [vmem:[#allocation3 + $0xf0] sm:$0xff] }
  0x7d   :  { %589 = vmatpush1.msra.mxu0 %v199_v23  ;;  %666 = vmatpush1.msra.mxu1 %v201_v24  ;;  %v182_v38 = vld [vmem:[#allocation3 + $0x108] sm:$0xff]  ;;  %v181_v40 = vld [vmem:[#allocation3 + $0x100] sm:$0xff]  ;;  %v175_v41 = vld [vmem:[#allocation3 + $0xd0] sm:$0xff] }
  0x7e   :  { %590 = vmatprep.subr.mxu0 %v195_v25  ;;  %667 = vmatprep.subr.mxu1 %v197_v26  ;;  %v177_v42 = vld [vmem:[#allocation3 + $0xe0] sm:$0xff]  ;;  %v174_v43 = vld [vmem:[#allocation3 + $0xc8] sm:$0xff]  ;;  %v176_v44 = vld [vmem:[#allocation3 + $0xd8] sm:$0xff] }
  0x7f   :  { %591 = vmatpush1.msra.mxu0 %v194_v27  ;;  %668 = vmatpush1.msra.mxu1 %v196_v28  ;;  %v170_v45 = vld [vmem:[#allocation3 + $0xa8] sm:$0xff]  ;;  %v172_v46 = vld [vmem:[#allocation3 + $0xb8] sm:$0xff]  ;;  %v169_v47 = vld [vmem:[#allocation3 + $0xa0] sm:$0xff] }
  0x80   :  { %592 = vmatprep.subr.mxu0 %v190_v29  ;;  %669 = vmatprep.subr.mxu1 %v192_v30  ;;  %v171_v48 = vld [vmem:[#allocation3 + $0xb0] sm:$0xff]  ;;  %v165_v49 = vld [vmem:[#allocation3 + $0x80] sm:$0xff]  ;;  %v164_v51 = vld [vmem:[#allocation3 + $0x78] sm:$0xff] }
  0x81   :  { %593 = vmatpush1.msra.mxu0 %v189_v31  ;;  %670 = vmatpush1.msra.mxu1 %v191_v32  ;;  %v167_v50 = vld [vmem:[#allocation3 + $0x90] sm:$0xff]  ;;  %v166_v52 = vld [vmem:[#allocation3 + $0x88] sm:$0xff]  ;;  %v160_v53 = vld [vmem:[#allocation3 + $0x58] sm:$0xff] }
  0x82   :  { %594 = vmatprep.subr.mxu0 %v185_v33  ;;  %671 = vmatprep.subr.mxu1 %v187_v34  ;;  %v162_v54 = vld [vmem:[#allocation3 + $0x68] sm:$0xff]  ;;  %v159_v55 = vld [vmem:[#allocation3 + $0x50] sm:$0xff]  ;;  %v161_v56 = vld [vmem:[#allocation3 + $0x60] sm:$0xff] }
  0x83   :  { %595 = vmatpush1.msra.mxu0 %v184_v35  ;;  %672 = vmatpush1.msra.mxu1 %v186_v36  ;;  %v155_v57 = vld [vmem:[#allocation3 + $0x30] sm:$0xff]  ;;  %v157_v58 = vld [vmem:[#allocation3 + $0x40] sm:$0xff]  ;;  %v154_v59 = vld [vmem:[#allocation3 + $0x28] sm:$0xff] }
  0x84   :  { %596 = vmatprep.subr.mxu0 %v180_v37  ;;  %673 = vmatprep.subr.mxu1 %v182_v38  ;;  %v156_v60 = vld [vmem:[#allocation3 + $0x38] sm:$0xff]  ;;  %v150_v61 = vld [vmem:[#allocation3 + $0x8] sm:$0xff]  ;;  %v149_v63 = vld [vmem:[#allocation3] sm:$0xff] }
  0x85   :  { %597 = vmatpush1.msra.mxu0 %v179_v39  ;;  %674 = vmatpush1.msra.mxu1 %v181_v40  ;;  %v152_v62 = vld [vmem:[#allocation3 + $0x18] sm:$0xff]  ;;  %v151_v1 = vld [vmem:[#allocation3 + $0x10] sm:$0xff]  ;;  %v576_v2 = vld [vmem:[%s4958_s0] sm:$0xff] }
  0x86   :  { %598 = vmatprep.subr.mxu0 %v175_v41  ;;  %675 = vmatprep.subr.mxu1 %v177_v42  ;;  %v228_v3 = vld [vmem:[#allocation3 + $0x278] sm:$0xff]  ;;  %v223_v4 = vld [vmem:[#allocation3 + $0x250] sm:$0xff]  ;;  %v218_v7 = vld [vmem:[#allocation3 + $0x228] sm:$0xff] }
  0x87   :  { %599 = vmatpush1.msra.mxu0 %v174_v43  ;;  %676 = vmatpush1.msra.mxu1 %v176_v44  ;;  %v290_v5 = vld [vmem:[#allocation7 + $0x1e8] sm:$0xff]  ;;  %v213_v8 = vld [vmem:[#allocation3 + $0x200] sm:$0xff]  ;;  %v208_v11 = vld [vmem:[#allocation3 + $0x1d8] sm:$0xff] }
  0x88   :  { %600 = vmatprep.subr.mxu0 %v170_v45  ;;  %677 = vmatprep.subr.mxu1 %v172_v46  ;;  %v4513_v6 = vld [vmem:[%s4958_s0 + $0x10] sm:$0xff]  ;;  %v289_v9 = vld [vmem:[#allocation7 + $0x1e0] sm:$0xff]  ;;  %v188_v23 = vld [vmem:[#allocation3 + $0x138] sm:$0xff] }
  0x89   :  { %601 = vmatpush1.msra.mxu0 %v169_v47  ;;  %678 = vmatpush1.msra.mxu1 %v171_v48  ;;  %v286_v10 = vld [vmem:[#allocation7 + $0x1c8] sm:$0xff]  ;;  %v285_v12 = vld [vmem:[#allocation7 + $0x1c0] sm:$0xff]  ;;  %v168_v35 = vld [vmem:[#allocation3 + $0x98] sm:$0xff] }
  0x8a   :  { %602 = vmatprep.subr.mxu0 %v165_v49  ;;  %679 = vmatprep.subr.mxu1 %v167_v50  ;;  %v282_v13 = vld [vmem:[#allocation7 + $0x1a8] sm:$0xff]  ;;  %v281_v15 = vld [vmem:[#allocation7 + $0x1a0] sm:$0xff] }
  0x8b   :  { %603 = vmatpush1.msra.mxu0 %v164_v51  ;;  %680 = vmatpush1.msra.mxu1 %v166_v52  ;;  %v203_v14 = vld [vmem:[#allocation3 + $0x1b0] sm:$0xff]  ;;  %v198_v17 = vld [vmem:[#allocation3 + $0x188] sm:$0xff]  ;;  %v193_v20 = vld [vmem:[#allocation3 + $0x160] sm:$0xff] }
  0x8c   :  { %604 = vmatprep.subr.mxu0 %v160_v53  ;;  %681 = vmatprep.subr.mxu1 %v162_v54  ;;  %v278_v16 = vld [vmem:[#allocation7 + $0x188] sm:$0xff]  ;;  %v277_v18 = vld [vmem:[#allocation7 + $0x180] sm:$0xff] }
  0x8d   :  { %605 = vmatpush1.msra.mxu0 %v159_v55  ;;  %682 = vmatpush1.msra.mxu1 %v161_v56  ;;  %v274_v19 = vld [vmem:[#allocation7 + $0x168] sm:$0xff]  ;;  %v273_v21 = vld [vmem:[#allocation7 + $0x160] sm:$0xff] }
  0x8e   :  { %606 = vmatprep.subr.mxu0 %v155_v57  ;;  %683 = vmatprep.subr.mxu1 %v157_v58  ;;  %v270_v22 = vld [vmem:[#allocation7 + $0x148] sm:$0xff]  ;;  %v269_v24 = vld [vmem:[#allocation7 + $0x140] sm:$0xff] }
  0x8f   :  { %607 = vmatpush1.msra.mxu0 %v154_v59  ;;  %684 = vmatpush1.msra.mxu1 %v156_v60  ;;  %v266_v25 = vld [vmem:[#allocation7 + $0x128] sm:$0xff]  ;;  %v265_v27 = vld [vmem:[#allocation7 + $0x120] sm:$0xff] }
  0x90   :  { %608 = vmatprep.subr.mxu0 %v150_v61  ;;  %685 = vmatprep.subr.mxu1 %v152_v62  ;;  %v183_v26 = vld [vmem:[#allocation3 + $0x110] sm:$0xff]  ;;  %v178_v29 = vld [vmem:[#allocation3 + $0xe8] sm:$0xff]  ;;  %v173_v32 = vld [vmem:[#allocation3 + $0xc0] sm:$0xff] }
  0x91   :  { %609 = vmatpush1.msra.mxu0 %v149_v63  ;;  %686 = vmatpush1.msra.mxu1 %v151_v1  ;;  %v262_v28 = vld [vmem:[#allocation7 + $0x108] sm:$0xff]  ;;  %v261_v30 = vld [vmem:[#allocation7 + $0x100] sm:$0xff] }
  0x92   :  { %643 = vmatmul.mubr.f32.vlgmr.msra.gmra.mxu0 %v576_v2  ;;  %720 = vmatmul.mubr.f32.vlgmr.msra.gmra.mxu1 %v576_v2  ;;  %v258_v31 = vld [vmem:[#allocation7 + $0xe8] sm:$0xff]  ;;  %v257_v33 = vld [vmem:[#allocation7 + $0xe0] sm:$0xff] }
  0x93   :  { %3688 = vmatprep.subr.mxu0 %v228_v3  ;;  %725 = vmatprep.mubr.f32.mxu1 %v4415_v0  ;;  %v254_v34 = vld [vmem:[#allocation7 + $0xc8] sm:$0xff]  ;;  %v253_v36 = vld [vmem:[#allocation7 + $0xc0] sm:$0xff] }
  0x94   :  { %3689 = vmatpush3.msra.mxu0 %v228_v3  ;;  %648 = vmatprep.mubr.f32.mxu0 %v4415_v0  ;;  %v250_v37 = vld [vmem:[#allocation7 + $0xa8] sm:$0xff]  ;;  %v249_v39 = vld [vmem:[#allocation7 + $0xa0] sm:$0xff] }
  0x95   :  { %3690 = vmatprep.subr.mxu0 %v223_v4  ;;  %817 = vmatprep.subr.mxu1 %v290_v5  ;;  %v163_v38 = vld [vmem:[#allocation3 + $0x70] sm:$0xff]  ;;  %v158_v41 = vld [vmem:[#allocation3 + $0x48] sm:$0xff]  ;;  %v153_v44 = vld [vmem:[#allocation3 + $0x20] sm:$0xff] }
  0x96   :  { %3691 = vmatpush3.msra.mxu0 %v223_v4  ;;  %726 = vmatmul.mubr.f32.gmra.mxu1 %v4513_v6  ;;  %v246_v40 = vld [vmem:[#allocation7 + $0x88] sm:$0xff]  ;;  %v245_v42 = vld [vmem:[#allocation7 + $0x80] sm:$0xff] }
  0x97   :  { %3692 = vmatprep.subr.mxu0 %v218_v7  ;;  %649 = vmatmul.mubr.f32.gmra.mxu0 %v4513_v6  ;;  %v242_v43 = vld [vmem:[#allocation7 + $0x68] sm:$0xff]  ;;  %v241_v45 = vld [vmem:[#allocation7 + $0x60] sm:$0xff] }
  0x98   :  { %3693 = vmatpush3.msra.mxu0 %v218_v7  ;;  %3720 = vmatprep.mubr.f32.mxu0 %v576_v2  ;;  %v238_v46 = vld [vmem:[#allocation7 + $0x48] sm:$0xff]  ;;  %v417_v48 = vld [vmem:[#allocation7 + $0x5e0] sm:$0xff] }
  0x99   :  { %3694 = vmatprep.subr.mxu0 %v213_v8  ;;  %818 = vmatpush1.msra.mxu1 %v289_v9  ;;  %v418_v47 = vld [vmem:[#allocation7 + $0x5e8] sm:$0xff]  ;;  %v237_v49 = vld [vmem:[#allocation7 + $0x40] sm:$0xff] }
  0x9a   :  { %3695 = vmatpush3.msra.mxu0 %v213_v8  ;;  %819 = vmatprep.subr.mxu1 %v286_v10  ;;  %v414_v50 = vld [vmem:[#allocation7 + $0x5c8] sm:$0xff]  ;;  %v413_v52 = vld [vmem:[#allocation7 + $0x5c0] sm:$0xff] }
  0x9b   :  { %3696 = vmatprep.subr.mxu0 %v208_v11  ;;  %820 = vmatpush1.msra.mxu1 %v285_v12  ;;  %v234_v51 = vld [vmem:[#allocation7 + $0x28] sm:$0xff]  ;;  %v233_v53 = vld [vmem:[#allocation7 + $0x20] sm:$0xff] }
  0x9c   :  { %3697 = vmatpush3.msra.mxu0 %v208_v11  ;;  %821 = vmatprep.subr.mxu1 %v282_v13  ;;  %v410_v54 = vld [vmem:[#allocation7 + $0x5a8] sm:$0xff]  ;;  %v409_v56 = vld [vmem:[#allocation7 + $0x5a0] sm:$0xff] }
  0x9d   :  { %3698 = vmatprep.subr.mxu0 %v203_v14  ;;  %822 = vmatpush1.msra.mxu1 %v281_v15  ;;  %v230_v55 = vld [vmem:[#allocation7 + $0x8] sm:$0xff]  ;;  %v229_v57 = vld [vmem:[#allocation7] sm:$0xff] }
  0x9e   :  { %3699 = vmatpush3.msra.mxu0 %v203_v14  ;;  %823 = vmatprep.subr.mxu1 %v278_v16  ;;  %v406_v58 = vld [vmem:[#allocation7 + $0x588] sm:$0xff]  ;;  %v405_v60 = vld [vmem:[#allocation7 + $0x580] sm:$0xff] }
  0x9f   :  { %3700 = vmatprep.subr.mxu0 %v198_v17  ;;  %824 = vmatpush1.msra.mxu1 %v277_v18  ;;  %v354_v59 = vld [vmem:[#allocation7 + $0x3e8] sm:$0xff]  ;;  %v353_v61 = vld [vmem:[#allocation7 + $0x3e0] sm:$0xff] }
  0xa0   :  { %3701 = vmatpush3.msra.mxu0 %v198_v17  ;;  %825 = vmatprep.subr.mxu1 %v274_v19  ;;  %v402_v62 = vld [vmem:[#allocation7 + $0x568] sm:$0xff]  ;;  %v401_v1 = vld [vmem:[#allocation7 + $0x560] sm:$0xff] }
  0xa1   :  { %3702 = vmatprep.subr.mxu0 %v193_v20  ;;  %826 = vmatpush1.msra.mxu1 %v273_v21  ;;  %v350_v63 = vld [vmem:[#allocation7 + $0x3c8] sm:$0xff]  ;;  %v349_v2 = vld [vmem:[#allocation7 + $0x3c0] sm:$0xff] }
  0xa2   :  { %3703 = vmatpush3.msra.mxu0 %v193_v20  ;;  %827 = vmatprep.subr.mxu1 %v270_v22  ;;  %v398_v3 = vld [vmem:[#allocation7 + $0x548] sm:$0xff]  ;;  %v397_v5 = vld [vmem:[#allocation7 + $0x540] sm:$0xff] }
  0xa3   :  { %3704 = vmatprep.subr.mxu0 %v188_v23  ;;  %828 = vmatpush1.msra.mxu1 %v269_v24  ;;  %v346_v4 = vld [vmem:[#allocation7 + $0x3a8] sm:$0xff]  ;;  %v393_v9 = vld [vmem:[#allocation7 + $0x520] sm:$0xff] }
  0xa4   :  { %3705 = vmatpush3.msra.mxu0 %v188_v23  ;;  %829 = vmatprep.subr.mxu1 %v266_v25  ;;  %v394_v7 = vld [vmem:[#allocation7 + $0x528] sm:$0xff]  ;;  %v341_v10 = vld [vmem:[#allocation7 + $0x380] sm:$0xff] }
  0xa5   :  { %3706 = vmatprep.subr.mxu0 %v183_v26  ;;  %830 = vmatpush1.msra.mxu1 %v265_v27  ;;  %v342_v8 = vld [vmem:[#allocation7 + $0x388] sm:$0xff]  ;;  %v389_v13 = vld [vmem:[#allocation7 + $0x500] sm:$0xff] }
  0xa6   :  { %3707 = vmatpush3.msra.mxu0 %v183_v26  ;;  %831 = vmatprep.subr.mxu1 %v262_v28  ;;  %v390_v11 = vld [vmem:[#allocation7 + $0x508] sm:$0xff]  ;;  %v337_v14 = vld [vmem:[#allocation7 + $0x360] sm:$0xff] }
  0xa7   :  { %3708 = vmatprep.subr.mxu0 %v178_v29  ;;  %832 = vmatpush1.msra.mxu1 %v261_v30  ;;  %v338_v12 = vld [vmem:[#allocation7 + $0x368] sm:$0xff]  ;;  %v385_v17 = vld [vmem:[#allocation7 + $0x4e0] sm:$0xff] }
  0xa8   :  { %3709 = vmatpush3.msra.mxu0 %v178_v29  ;;  %833 = vmatprep.subr.mxu1 %v258_v31  ;;  %v386_v15 = vld [vmem:[#allocation7 + $0x4e8] sm:$0xff]  ;;  %v333_v18 = vld [vmem:[#allocation7 + $0x340] sm:$0xff] }
  0xa9   :  { %3710 = vmatprep.subr.mxu0 %v173_v32  ;;  %834 = vmatpush1.msra.mxu1 %v257_v33  ;;  %v334_v16 = vld [vmem:[#allocation7 + $0x348] sm:$0xff]  ;;  %v381_v21 = vld [vmem:[#allocation7 + $0x4c0] sm:$0xff] }
  0xaa   :  { %3711 = vmatpush3.msra.mxu0 %v173_v32  ;;  %835 = vmatprep.subr.mxu1 %v254_v34  ;;  %v382_v19 = vld [vmem:[#allocation7 + $0x4c8] sm:$0xff]  ;;  %v329_v22 = vld [vmem:[#allocation7 + $0x320] sm:$0xff] }
  0xab   :  { %3712 = vmatprep.subr.mxu0 %v168_v35  ;;  %836 = vmatpush1.msra.mxu1 %v253_v36  ;;  %v330_v20 = vld [vmem:[#allocation7 + $0x328] sm:$0xff]  ;;  %v377_v25 = vld [vmem:[#allocation7 + $0x4a0] sm:$0xff] }
  0xac   :  { %3713 = vmatpush3.msra.mxu0 %v168_v35  ;;  %837 = vmatprep.subr.mxu1 %v250_v37  ;;  %v378_v23 = vld [vmem:[#allocation7 + $0x4a8] sm:$0xff]  ;;  %v325_v26 = vld [vmem:[#allocation7 + $0x300] sm:$0xff] }
  0xad   :  { %3714 = vmatprep.subr.mxu0 %v163_v38  ;;  %838 = vmatpush1.msra.mxu1 %v249_v39  ;;  %v326_v24 = vld [vmem:[#allocation7 + $0x308] sm:$0xff]  ;;  %v373_v29 = vld [vmem:[#allocation7 + $0x480] sm:$0xff] }
  0xae   :  { %3715 = vmatpush3.msra.mxu0 %v163_v38  ;;  %839 = vmatprep.subr.mxu1 %v246_v40  ;;  %v374_v27 = vld [vmem:[#allocation7 + $0x488] sm:$0xff]  ;;  %v321_v30 = vld [vmem:[#allocation7 + $0x2e0] sm:$0xff] }
  0xaf   :  { %3716 = vmatprep.subr.mxu0 %v158_v41  ;;  %840 = vmatpush1.msra.mxu1 %v245_v42  ;;  %v322_v28 = vld [vmem:[#allocation7 + $0x2e8] sm:$0xff]  ;;  %v369_v33 = vld [vmem:[#allocation7 + $0x460] sm:$0xff] }
  0xb0   :  { %3717 = vmatpush3.msra.mxu0 %v158_v41  ;;  %841 = vmatprep.subr.mxu1 %v242_v43  ;;  %v370_v31 = vld [vmem:[#allocation7 + $0x468] sm:$0xff]  ;;  %v317_v34 = vld [vmem:[#allocation7 + $0x2c0] sm:$0xff] }
  0xb1   :  { %3718 = vmatprep.subr.mxu0 %v153_v44  ;;  %842 = vmatpush1.msra.mxu1 %v241_v45  ;;  %v318_v32 = vld [vmem:[#allocation7 + $0x2c8] sm:$0xff]  ;;  %v365_v37 = vld [vmem:[#allocation7 + $0x440] sm:$0xff] }
  0xb2   :  { %3719 = vmatpush3.msra.mxu0 %v153_v44  ;;  %843 = vmatprep.subr.mxu1 %v238_v46  ;;  %v366_v35 = vld [vmem:[#allocation7 + $0x448] sm:$0xff]  ;;  %v313_v38 = vld [vmem:[#allocation7 + $0x2a0] sm:$0xff] }
  0xb3   :  { %3721 = vmatmul.mubr.f32.vlgmr.msra.gmra.mxu0 %v4513_v6  ;;  %894 = vmatprep.subr.mxu0 %v418_v47  ;;  %v345_v6 = vld [vmem:[#allocation7 + $0x3a0] sm:$0xff]  ;;  %v314_v36 = vld [vmem:[#allocation7 + $0x2a8] sm:$0xff] }
  0xb4   :  { %895 = vmatpush1.msra.mxu0 %v417_v48  ;;  %844 = vmatpush1.msra.mxu1 %v237_v49  ;;  %v362_v39 = vld [vmem:[#allocation7 + $0x428] sm:$0xff]  ;;  %v361_v41 = vld [vmem:[#allocation7 + $0x420] sm:$0xff] }
  0xb5   :  { %896 = vmatprep.subr.mxu0 %v414_v50  ;;  %845 = vmatprep.subr.mxu1 %v234_v51  ;;  %v310_v40 = vld [vmem:[#allocation7 + $0x288] sm:$0xff]  ;;  %v309_v42 = vld [vmem:[#allocation7 + $0x280] sm:$0xff] }
  0xb6   :  { %897 = vmatpush1.msra.mxu0 %v413_v52  ;;  %846 = vmatpush1.msra.mxu1 %v233_v53  ;;  %v358_v43 = vld [vmem:[#allocation7 + $0x408] sm:$0xff]  ;;  %v357_v45 = vld [vmem:[#allocation7 + $0x400] sm:$0xff] }
  0xb7   :  { %898 = vmatprep.subr.mxu0 %v410_v54  ;;  %847 = vmatprep.subr.mxu1 %v230_v55  ;;  %v306_v44 = vld [vmem:[#allocation7 + $0x268] sm:$0xff]  ;;  %v481_v47 = vld [vmem:[#allocation7 + $0x7e0] sm:$0xff] }
  0xb8   :  { %899 = vmatpush1.msra.mxu0 %v409_v56  ;;  %848 = vmatpush1.msra.mxu1 %v229_v57  ;;  %v482_v46 = vld [vmem:[#allocation7 + $0x7e8] sm:$0xff]  ;;  %v305_v49 = vld [vmem:[#allocation7 + $0x260] sm:$0xff] }
  0xb9   :  { %900 = vmatprep.subr.mxu0 %v406_v58  ;;  %849 = vmatprep.subr.mxu1 %v354_v59  ;;  %v478_v48 = vld [vmem:[#allocation7 + $0x7c8] sm:$0xff]  ;;  %v477_v50 = vld [vmem:[#allocation7 + $0x7c0] sm:$0xff] }
  0xba   :  { %901 = vmatpush1.msra.mxu0 %v405_v60  ;;  %850 = vmatpush2.msra.mxu1 %v353_v61  ;;  %v302_v51 = vld [vmem:[#allocation7 + $0x248] sm:$0xff]  ;;  %v301_v53 = vld [vmem:[#allocation7 + $0x240] sm:$0xff] }
  0xbb   :  { %902 = vmatprep.subr.mxu0 %v402_v62  ;;  %851 = vmatprep.subr.mxu1 %v350_v63  ;;  %v474_v52 = vld [vmem:[#allocation7 + $0x7a8] sm:$0xff]  ;;  %v473_v54 = vld [vmem:[#allocation7 + $0x7a0] sm:$0xff] }
  0xbc   :  { %903 = vmatpush1.msra.mxu0 %v401_v1  ;;  %852 = vmatpush2.msra.mxu1 %v349_v2  ;;  %v298_v55 = vld [vmem:[#allocation7 + $0x228] sm:$0xff]  ;;  %v297_v57 = vld [vmem:[#allocation7 + $0x220] sm:$0xff] }
  0xbd   :  { %904 = vmatprep.subr.mxu0 %v398_v3  ;;  %853 = vmatprep.subr.mxu1 %v346_v4  ;;  %v470_v56 = vld [vmem:[#allocation7 + $0x788] sm:$0xff]  ;;  %v469_v58 = vld [vmem:[#allocation7 + $0x780] sm:$0xff] }
  0xbe   :  { %905 = vmatpush1.msra.mxu0 %v397_v5  ;;  %854 = vmatpush2.msra.mxu1 %v345_v6  ;;  %v294_v59 = vld [vmem:[#allocation7 + $0x208] sm:$0xff]  ;;  %v293_v61 = vld [vmem:[#allocation7 + $0x200] sm:$0xff] }
  0xbf   :  { %906 = vmatprep.subr.mxu0 %v394_v7  ;;  %855 = vmatprep.subr.mxu1 %v342_v8  ;;  %v466_v60 = vld [vmem:[#allocation7 + $0x768] sm:$0xff]  ;;  %v465_v62 = vld [vmem:[#allocation7 + $0x760] sm:$0xff] }
  0xc0   :  { %907 = vmatpush1.msra.mxu0 %v393_v9  ;;  %856 = vmatpush2.msra.mxu1 %v341_v10  ;;  %v546_v63 = vld [vmem:[#allocation7 + $0x9e8] sm:$0xff]  ;;  %v461_v2 = vld [vmem:[#allocation7 + $0x740] sm:$0xff] }
  0xc1   :  { %908 = vmatprep.subr.mxu0 %v390_v11  ;;  %857 = vmatprep.subr.mxu1 %v338_v12  ;;  %v462_v1 = vld [vmem:[#allocation7 + $0x748] sm:$0xff]  ;;  %v457_v4 = vld [vmem:[#allocation7 + $0x720] sm:$0xff] }
  0xc2   :  { %909 = vmatpush1.msra.mxu0 %v389_v13  ;;  %858 = vmatpush2.msra.mxu1 %v337_v14  ;;  %v458_v3 = vld [vmem:[#allocation7 + $0x728] sm:$0xff]  ;;  %v453_v6 = vld [vmem:[#allocation7 + $0x700] sm:$0xff] }
  0xc3   :  { %910 = vmatprep.subr.mxu0 %v386_v15  ;;  %859 = vmatprep.subr.mxu1 %v334_v16  ;;  %v454_v5 = vld [vmem:[#allocation7 + $0x708] sm:$0xff]  ;;  %v449_v8 = vld [vmem:[#allocation7 + $0x6e0] sm:$0xff] }
  0xc4   :  { %911 = vmatpush1.msra.mxu0 %v385_v17  ;;  %860 = vmatpush2.msra.mxu1 %v333_v18  ;;  %v450_v7 = vld [vmem:[#allocation7 + $0x6e8] sm:$0xff]  ;;  %v445_v10 = vld [vmem:[#allocation7 + $0x6c0] sm:$0xff] }
  0xc5   :  { %912 = vmatprep.subr.mxu0 %v382_v19  ;;  %861 = vmatprep.subr.mxu1 %v330_v20  ;;  %v446_v9 = vld [vmem:[#allocation7 + $0x6c8] sm:$0xff]  ;;  %v441_v12 = vld [vmem:[#allocation7 + $0x6a0] sm:$0xff] }
  0xc6   :  { %913 = vmatpush1.msra.mxu0 %v381_v21  ;;  %862 = vmatpush2.msra.mxu1 %v329_v22  ;;  %v442_v11 = vld [vmem:[#allocation7 + $0x6a8] sm:$0xff]  ;;  %v437_v14 = vld [vmem:[#allocation7 + $0x680] sm:$0xff] }
  0xc7   :  { %914 = vmatprep.subr.mxu0 %v378_v23  ;;  %863 = vmatprep.subr.mxu1 %v326_v24  ;;  %v438_v13 = vld [vmem:[#allocation7 + $0x688] sm:$0xff]  ;;  %v433_v16 = vld [vmem:[#allocation7 + $0x660] sm:$0xff]  ;;  %v292_v23 = vld [vmem:[#allocation7 + $0x1f8] sm:$0xff]  ;;  %v551_v24 = vlaneseq }
  0xc8   :  { %915 = vmatpush1.msra.mxu0 %v377_v25  ;;  %864 = vmatpush2.msra.mxu1 %v325_v26  ;;  %v434_v15 = vld [vmem:[#allocation7 + $0x668] sm:$0xff]  ;;  %v429_v18 = vld [vmem:[#allocation7 + $0x640] sm:$0xff] }
  0xc9   :  { %916 = vmatprep.subr.mxu0 %v374_v27  ;;  %865 = vmatprep.subr.mxu1 %v322_v28  ;;  %v430_v17 = vld [vmem:[#allocation7 + $0x648] sm:$0xff]  ;;  %v425_v20 = vld [vmem:[#allocation7 + $0x620] sm:$0xff]  ;;  %v4519_v25 = vshrl.u32 %v551_v24, 7  ;;  %v4525_v28 = vld [vmem:[#allocation5] sm:$0x1f] }
  0xca   :  { %917 = vmatpush1.msra.mxu0 %v373_v29  ;;  %866 = vmatpush2.msra.mxu1 %v321_v30  ;;  %v426_v19 = vld [vmem:[#allocation7 + $0x628] sm:$0xff]  ;;  %v421_v22 = vld [vmem:[#allocation7 + $0x600] sm:$0xff] }
  0xcb   :  { %918 = vmatprep.subr.mxu0 %v370_v31  ;;  %867 = vmatprep.subr.mxu1 %v318_v32  ;;  %v422_v21 = vld [vmem:[#allocation7 + $0x608] sm:$0xff]  ;;  %v561_v26 = vsub.s32 2, %v4519_v25  ;;  %v4523_v27 = vsub.s32 0, %v4519_v25  ;;  %v4528_v29 = vsub.s32 1, %v4519_v25  ;;  %v565_v30 = vsub.s32 3, %v4519_v25  ;;  %v513_v24 = vld [vmem:[#allocation7 + $0x8e0] sm:$0xff] }
  0xcc   :  { %919 = vmatpush1.msra.mxu0 %v369_v33  ;;  %868 = vmatpush2.msra.mxu1 %v317_v34 }
  0xcd   :  { %920 = vmatprep.subr.mxu0 %v366_v35  ;;  %869 = vmatprep.subr.mxu1 %v314_v36  ;;  %v4534_v31 = vrot.slane %v4525_v28, %v561_v26  ;;  %v4538_v32 = vrot.slane %v4525_v28, %v4523_v27  ;;  %v4542_v33 = vrot.slane %v4525_v28, %v4528_v29 }
  0xce   :  { %921 = vmatpush1.msra.mxu0 %v365_v37  ;;  %870 = vmatpush2.msra.mxu1 %v313_v38  ;;  %v4547_v34 = vrot.slane %v4525_v28, %v565_v30 }
  0xcf   :  { %922 = vmatprep.subr.mxu0 %v362_v39  ;;  %871 = vmatprep.subr.mxu1 %v310_v40 }
  0xd0   :  { %923 = vmatpush1.msra.mxu0 %v361_v41  ;;  %872 = vmatpush2.msra.mxu1 %v309_v42 }
  0xd1   :  { %924 = vmatprep.subr.mxu0 %v358_v43  ;;  %873 = vmatprep.subr.mxu1 %v306_v44 }
  0xd2   :  { %925 = vmatpush1.msra.mxu0 %v357_v45  ;;  %874 = vmatpush2.msra.mxu1 %v305_v49 }
  0xd3   :  { %926 = vmatprep.subr.mxu0 %v482_v46  ;;  %875 = vmatprep.subr.mxu1 %v302_v51  ;;  %v291_v51 = vld [vmem:[#allocation7 + $0x1f0] sm:$0xff] }
  0xd4   :  { %927 = vmatpush2.msra.mxu0 %v481_v47  ;;  %876 = vmatpush2.msra.mxu1 %v301_v53  ;;  %v542_v53 = vld [vmem:[#allocation7 + $0x9c8] sm:$0xff] }
  0xd5   :  { %928 = vmatprep.subr.mxu0 %v478_v48  ;;  %877 = vmatprep.subr.mxu1 %v298_v55  ;;  %v541_v55 = vld [vmem:[#allocation7 + $0x9c0] sm:$0xff] }
  0xd6   :  { %929 = vmatpush2.msra.mxu0 %v477_v50  ;;  %878 = vmatpush2.msra.mxu1 %v297_v57  ;;  %v545_v50 = vld [vmem:[#allocation7 + $0x9e0] sm:$0xff] }
  0xd7   :  { %930 = vmatprep.subr.mxu0 %v474_v52  ;;  %879 = vmatprep.subr.mxu1 %v294_v59  ;;  %v538_v59 = vld [vmem:[#allocation7 + $0x9a8] sm:$0xff] }
  0xd8   :  { %931 = vmatpush2.msra.mxu0 %v473_v54  ;;  %880 = vmatpush2.msra.mxu1 %v293_v61  ;;  %v288_v54 = vld [vmem:[#allocation7 + $0x1d8] sm:$0xff]  ;;  %v537_v61 = vld [vmem:[#allocation7 + $0x9a0] sm:$0xff] }
  0xd9   :  { %932 = vmatprep.subr.mxu0 %v470_v56  ;;  %971 = vmatprep.subr.mxu1 %v546_v63  ;;  %v287_v56 = vld [vmem:[#allocation7 + $0x1d0] sm:$0xff]  ;;  %v534_v63 = vld [vmem:[#allocation7 + $0x988] sm:$0xff] }
  0xda   :  { %933 = vmatpush2.msra.mxu0 %v469_v58 }
  0xdb   :  { %934 = vmatprep.subr.mxu0 %v466_v60  ;;  %v284_v60 = vld [vmem:[#allocation7 + $0x1b8] sm:$0xff] }
  0xdc   :  { %935 = vmatpush2.msra.mxu0 %v465_v62  ;;  %v283_v62 = vld [vmem:[#allocation7 + $0x1b0] sm:$0xff] }
  0xdd   :  { %936 = vmatprep.subr.mxu0 %v462_v1  ;;  %v280_v1 = vld [vmem:[#allocation7 + $0x198] sm:$0xff] }
  0xde   :  { %937 = vmatpush2.msra.mxu0 %v461_v2  ;;  %v533_v2 = vld [vmem:[#allocation7 + $0x980] sm:$0xff] }
  0xdf   :  { %938 = vmatprep.subr.mxu0 %v458_v3  ;;  %v279_v3 = vld [vmem:[#allocation7 + $0x190] sm:$0xff] }
  0xe0   :  { %939 = vmatpush2.msra.mxu0 %v457_v4  ;;  %v530_v4 = vld [vmem:[#allocation7 + $0x968] sm:$0xff] }
  0xe1   :  { %940 = vmatprep.subr.mxu0 %v454_v5  ;;  %v276_v5 = vld [vmem:[#allocation7 + $0x178] sm:$0xff] }
  0xe2   :  { %941 = vmatpush2.msra.mxu0 %v453_v6  ;;  %v529_v6 = vld [vmem:[#allocation7 + $0x960] sm:$0xff] }
  0xe3   :  { %942 = vmatprep.subr.mxu0 %v450_v7  ;;  %v275_v7 = vld [vmem:[#allocation7 + $0x170] sm:$0xff] }
  0xe4   :  { %943 = vmatpush2.msra.mxu0 %v449_v8  ;;  %v526_v8 = vld [vmem:[#allocation7 + $0x948] sm:$0xff] }
  0xe5   :  { %944 = vmatprep.subr.mxu0 %v446_v9  ;;  %v272_v9 = vld [vmem:[#allocation7 + $0x158] sm:$0xff] }
  0xe6   :  { %945 = vmatpush2.msra.mxu0 %v445_v10  ;;  %v525_v10 = vld [vmem:[#allocation7 + $0x940] sm:$0xff] }
  0xe7   :  { %946 = vmatprep.subr.mxu0 %v442_v11 }
  0xe8   :  { %947 = vmatpush2.msra.mxu0 %v441_v12  ;;  %v271_v12 = vld [vmem:[#allocation7 + $0x150] sm:$0xff] }
  0xe9   :  { %948 = vmatprep.subr.mxu0 %v438_v13  ;;  %v522_v13 = vld [vmem:[#allocation7 + $0x928] sm:$0xff] }
  0xea   :  { %949 = vmatpush2.msra.mxu0 %v437_v14  ;;  %v268_v14 = vld [vmem:[#allocation7 + $0x138] sm:$0xff] }
  0xeb   :  { %950 = vmatprep.subr.mxu0 %v434_v15  ;;  %v521_v15 = vld [vmem:[#allocation7 + $0x920] sm:$0xff] }
  0xec   :  { %951 = vmatpush2.msra.mxu0 %v433_v16  ;;  %v267_v16 = vld [vmem:[#allocation7 + $0x130] sm:$0xff] }
  0xed   :  { %952 = vmatprep.subr.mxu0 %v430_v17  ;;  %v518_v17 = vld [vmem:[#allocation7 + $0x908] sm:$0xff] }
  0xee   :  { %953 = vmatpush2.msra.mxu0 %v429_v18  ;;  %v264_v18 = vld [vmem:[#allocation7 + $0x118] sm:$0xff] }
  0xef   :  { %954 = vmatprep.subr.mxu0 %v426_v19  ;;  %v517_v19 = vld [vmem:[#allocation7 + $0x900] sm:$0xff] }
  0xf0   :  { %955 = vmatpush2.msra.mxu0 %v425_v20 }
  0xf1   :  { %956 = vmatprep.subr.mxu0 %v422_v21  ;;  %v263_v21 = vld [vmem:[#allocation7 + $0x110] sm:$0xff] }
  0xf2   :  { %957 = vmatpush2.msra.mxu0 %v421_v22  ;;  %v514_v22 = vld [vmem:[#allocation7 + $0x8e8] sm:$0xff] }
  0xf3   :  { %1048 = vmatprep.subr.mxu0 %v292_v23  ;;  %v260_v23 = vld [vmem:[#allocation7 + $0xf8] sm:$0xff] }
 0x152   :  { %v644_v35 = vpop.f32.mrf.mxu0  ;;  %v721_v36 = vpop.f32.mrf.mxu1 }
 0x153   :  { %v4550_v37 = vadd.f32 %v721_v36, %v4534_v31  ;;  %v4553_v38 = vadd.f32 %v644_v35, %v4538_v32  ;;  %v259_v35 = vld [vmem:[#allocation7 + $0xf0] sm:$0xff] }
 0x154   :  { %v646_v39 = vpop.f32.mrf.mxu0  ;;  %v723_v40 = vpop.f32.mrf.mxu1 }
 0x155   :  { %v647_v41 = vadd.f32 %v646_v39, %v4542_v33  ;;  %v4557_v42 = vadd.f32 %v723_v40, %v4547_v34  ;;  %v809_v43 = vmax.f32 %v4550_v37, 0.0  ;;  %v807_v48 = vmax.f32 %v4553_v38, 0.0  ;;  %v510_v39 = vld [vmem:[#allocation7 + $0x8c8] sm:$0xff]  ;;  %v256_v40 = vld [vmem:[#allocation7 + $0xd8] sm:$0xff]  ;;  %v539_v38 = vld [vmem:[#allocation7 + $0x9b0] sm:$0xff] }
 0x156   :  { %v727_v44 = vpop.f32.mrf.mxu1  ;;  %v3814_v37 = vld [vmem:[#allocation3 + $0x230] sm:$0xff] }
 0x157   :  { %v808_v45 = vmax.f32 %v647_v41, 0.0  ;;  %v810_v46 = vmax.f32 %v4557_v42, 0.0  ;;  %v4562_v47 = vadd.f32 %v727_v44, %v4534_v31  ;;  %v650_v11 = vpop.f32.mrf.mxu0  ;;  %v509_v41 = vld [vmem:[#allocation7 + $0x8c0] sm:$0xff]  ;;  %v331_v42 = vld [vmem:[#allocation7 + $0x330] sm:$0xff] }
 0x158   :  { %v729_v49 = vpop.f32.mrf.mxu1  ;;  %v4584_v44 = vadd.f32 %v650_v11, %v4538_v32  ;;  %v490_v11 = vld [vmem:[#allocation7 + $0x828] sm:$0xff] }
 0x159   :  { %v4566_v52 = vadd.f32 %v729_v49, %v4547_v34  ;;  %881 = vmatprep.mubr.f32.mxu1 %v808_v45  ;;  %958 = vmatprep.mubr.f32.mxu0 %v810_v46  ;;  %v814_v57 = vmax.f32 %v4562_v47, 0.0  ;;  %v652_v20 = vpop.f32.mrf.mxu0  ;;  %v506_v49 = vld [vmem:[#allocation7 + $0x8a8] sm:$0xff]  ;;  %v3824_v47 = vld [vmem:[#allocation3 + $0x1c0] sm:$0xff] }
 0x15a   :  { %882 = vmatmul.mubr.f32.vlgmr.msra.gmra.mxu1 %v807_v48  ;;  %959 = vmatmul.mubr.f32.vlgmr.msra.gmra.mxu0 %v809_v43  ;;  %v4581_v36 = vadd.f32 %v652_v20, %v4542_v33  ;;  %v356_v20 = vld [vmem:[#allocation7 + $0x3f8] sm:$0xff] }
 0x15b   :  { %v815_v58 = vmax.f32 %v4566_v52, 0.0  ;;  %972 = vmatpush1.msra.mxu1 %v545_v50  ;;  %1049 = vmatpush1.msra.mxu0 %v291_v51  ;;  %v252_v50 = vld [vmem:[#allocation7 + $0xb8] sm:$0xff]  ;;  %v505_v51 = vld [vmem:[#allocation7 + $0x8a0] sm:$0xff]  ;;  %v3816_v52 = vld [vmem:[#allocation3 + $0x210] sm:$0xff] }
 0x15c   :  { %973 = vmatprep.subr.mxu1 %v542_v53  ;;  %1050 = vmatprep.subr.mxu0 %v288_v54  ;;  %v813_v53 = vmax.f32 %v4581_v36, 0.0  ;;  %v251_v54 = vld [vmem:[#allocation7 + $0xb0] sm:$0xff] }
 0x15d   :  { %974 = vmatpush1.msra.mxu1 %v541_v55  ;;  %1051 = vmatpush1.msra.mxu0 %v287_v56  ;;  %v502_v55 = vld [vmem:[#allocation7 + $0x888] sm:$0xff]  ;;  %v569_v56 = vsub.s32 4, %v4519_v25  ;;  %v471_v36 = vld [vmem:[#allocation7 + $0x790] sm:$0xff] }
 0x15e   :  { %964 = vmatprep.mubr.f32.mxu0 %v815_v58  ;;  %975 = vmatprep.subr.mxu1 %v538_v59  ;;  %v248_v59 = vld [vmem:[#allocation7 + $0x98] sm:$0xff] }
 0x15f   :  { %1052 = vmatprep.subr.mxu0 %v284_v60  ;;  %965 = vmatmul.mubr.f32.gmra.mxu0 %v814_v57  ;;  %v812_v60 = vmax.f32 %v4584_v44, 0.0  ;;  %v463_v44 = vld [vmem:[#allocation7 + $0x750] sm:$0xff] }
 0x160   :  { %976 = vmatpush1.msra.mxu1 %v537_v61  ;;  %1053 = vmatpush1.msra.mxu0 %v283_v62  ;;  %v501_v61 = vld [vmem:[#allocation7 + $0x880] sm:$0xff]  ;;  %v247_v62 = vld [vmem:[#allocation7 + $0x90] sm:$0xff] }
 0x161   :  { %977 = vmatprep.subr.mxu1 %v534_v63  ;;  %1054 = vmatprep.subr.mxu0 %v280_v1  ;;  %v498_v63 = vld [vmem:[#allocation7 + $0x868] sm:$0xff]  ;;  %v244_v1 = vld [vmem:[#allocation7 + $0x78] sm:$0xff] }
 0x162   :  { %1112 = vmatprep.mubr.f32.mxu0 %v808_v45  ;;  %978 = vmatpush1.msra.mxu1 %v533_v2  ;;  %v255_v45 = vld [vmem:[#allocation7 + $0xd0] sm:$0xff]  ;;  %v4592_v2 = vrot.slane %v4525_v28, %v569_v56  ;;  %v408_v56 = vld [vmem:[#allocation7 + $0x598] sm:$0xff] }
 0x163   :  { %1055 = vmatpush1.msra.mxu0 %v279_v3  ;;  %979 = vmatprep.subr.mxu1 %v530_v4  ;;  %v497_v3 = vld [vmem:[#allocation7 + $0x860] sm:$0xff] }
 0x164   :  { %1056 = vmatprep.subr.mxu0 %v276_v5  ;;  %980 = vmatpush1.msra.mxu1 %v529_v6  ;;  %v243_v5 = vld [vmem:[#allocation7 + $0x70] sm:$0xff]  ;;  %v494_v6 = vld [vmem:[#allocation7 + $0x848] sm:$0xff] }
 0x165   :  { %1057 = vmatpush1.msra.mxu0 %v275_v7  ;;  %981 = vmatprep.subr.mxu1 %v526_v8  ;;  %v240_v7 = vld [vmem:[#allocation7 + $0x58] sm:$0xff]  ;;  %v493_v8 = vld [vmem:[#allocation7 + $0x840] sm:$0xff] }
 0x166   :  { %1058 = vmatprep.subr.mxu0 %v272_v9  ;;  %982 = vmatpush1.msra.mxu1 %v525_v10  ;;  %v239_v10 = vld [vmem:[#allocation7 + $0x50] sm:$0xff] }
 0x167   :  { %1059 = vmatpush1.msra.mxu0 %v271_v12  ;;  %983 = vmatprep.subr.mxu1 %v522_v13  ;;  %v236_v12 = vld [vmem:[#allocation7 + $0x38] sm:$0xff]  ;;  %v489_v13 = vld [vmem:[#allocation7 + $0x820] sm:$0xff] }
 0x168   :  { %1060 = vmatprep.subr.mxu0 %v268_v14  ;;  %984 = vmatpush1.msra.mxu1 %v521_v15  ;;  %v235_v14 = vld [vmem:[#allocation7 + $0x30] sm:$0xff]  ;;  %v486_v15 = vld [vmem:[#allocation7 + $0x808] sm:$0xff] }
 0x169   :  { %1061 = vmatpush1.msra.mxu0 %v267_v16  ;;  %985 = vmatprep.subr.mxu1 %v518_v17  ;;  %v232_v16 = vld [vmem:[#allocation7 + $0x18] sm:$0xff]  ;;  %v485_v17 = vld [vmem:[#allocation7 + $0x800] sm:$0xff] }
 0x16a   :  { %1062 = vmatprep.subr.mxu0 %v264_v18  ;;  %986 = vmatpush1.msra.mxu1 %v517_v19  ;;  %v231_v19 = vld [vmem:[#allocation7 + $0x10] sm:$0xff] }
 0x16b   :  { %1063 = vmatpush1.msra.mxu0 %v263_v21  ;;  %987 = vmatprep.subr.mxu1 %v514_v22  ;;  %v420_v21 = vld [vmem:[#allocation7 + $0x5f8] sm:$0xff]  ;;  %v355_v22 = vld [vmem:[#allocation7 + $0x3f0] sm:$0xff] }
 0x16c   :  { %1064 = vmatprep.subr.mxu0 %v260_v23  ;;  %988 = vmatpush1.msra.mxu1 %v513_v24  ;;  %v419_v24 = vld [vmem:[#allocation7 + $0x5f0] sm:$0xff] }
 0x16d   :  { %1065 = vmatpush1.msra.mxu0 %v259_v35  ;;  %989 = vmatprep.subr.mxu1 %v510_v39  ;;  %v352_v35 = vld [vmem:[#allocation7 + $0x3d8] sm:$0xff] }
 0x16e   :  { %1066 = vmatprep.subr.mxu0 %v256_v40  ;;  %990 = vmatpush1.msra.mxu1 %v509_v41  ;;  %v416_v39 = vld [vmem:[#allocation7 + $0x5d8] sm:$0xff]  ;;  %v351_v40 = vld [vmem:[#allocation7 + $0x3d0] sm:$0xff] }
 0x16f   :  { %1067 = vmatpush1.msra.mxu0 %v255_v45  ;;  %991 = vmatprep.subr.mxu1 %v506_v49  ;;  %v415_v41 = vld [vmem:[#allocation7 + $0x5d0] sm:$0xff]  ;;  %v348_v45 = vld [vmem:[#allocation7 + $0x3b8] sm:$0xff] }
 0x170   :  { %1068 = vmatprep.subr.mxu0 %v252_v50  ;;  %992 = vmatpush1.msra.mxu1 %v505_v51  ;;  %v412_v50 = vld [vmem:[#allocation7 + $0x5b8] sm:$0xff]  ;;  %v347_v51 = vld [vmem:[#allocation7 + $0x3b0] sm:$0xff] }
 0x171   :  { %1069 = vmatpush1.msra.mxu0 %v251_v54  ;;  %993 = vmatprep.subr.mxu1 %v502_v55  ;;  %v411_v54 = vld [vmem:[#allocation7 + $0x5b0] sm:$0xff]  ;;  %v344_v55 = vld [vmem:[#allocation7 + $0x398] sm:$0xff] }
 0x172   :  { %1070 = vmatprep.subr.mxu0 %v248_v59  ;;  %887 = vmatprep.mubr.f32.mxu1 %v813_v53  ;;  %v343_v59 = vld [vmem:[#allocation7 + $0x390] sm:$0xff] }
 0x173   :  { %994 = vmatpush1.msra.mxu1 %v501_v61  ;;  %1071 = vmatpush1.msra.mxu0 %v247_v62  ;;  %v3722_v4 = vpop.f32.mrf.mxu0  ;;  %v407_v61 = vld [vmem:[#allocation7 + $0x590] sm:$0xff]  ;;  %v340_v62 = vld [vmem:[#allocation7 + $0x378] sm:$0xff] }
 0x174   :  { %888 = vmatmul.mubr.f32.gmra.mxu1 %v812_v60  ;;  %995 = vmatprep.subr.mxu1 %v498_v63  ;;  %v4601_v23 = vadd.f32 %v3722_v4, %v4592_v2  ;;  %v404_v63 = vld [vmem:[#allocation7 + $0x578] sm:$0xff] }
 0x175   :  { %1072 = vmatprep.subr.mxu0 %v244_v1  ;;  %996 = vmatpush1.msra.mxu1 %v497_v3  ;;  %v798_v9 = vpop.f32.mrf.mxu0  ;;  %v339_v1 = vld [vmem:[#allocation7 + $0x370] sm:$0xff]  ;;  %v336_v4 = vld [vmem:[#allocation7 + $0x358] sm:$0xff] }
 0x176   :  { %1073 = vmatpush1.msra.mxu0 %v243_v5  ;;  %997 = vmatprep.subr.mxu1 %v494_v6  ;;  %v4597_v28 = vadd.f32 %v798_v9, %v4592_v2  ;;  %v816_v49 = vmax.f32 %v4601_v23, 0.0  ;;  %v403_v3 = vld [vmem:[#allocation7 + $0x570] sm:$0xff]  ;;  %v400_v5 = vld [vmem:[#allocation7 + $0x558] sm:$0xff] }
 0x177   :  { %1074 = vmatprep.subr.mxu0 %v240_v7  ;;  %998 = vmatpush1.msra.mxu1 %v493_v8  ;;  %v335_v6 = vld [vmem:[#allocation7 + $0x350] sm:$0xff]  ;;  %v332_v8 = vld [vmem:[#allocation7 + $0x338] sm:$0xff] }
 0x178   :  { %1075 = vmatpush1.msra.mxu0 %v239_v10  ;;  %999 = vmatprep.subr.mxu1 %v490_v11  ;;  %v811_v18 = vmax.f32 %v4597_v28, 0.0  ;;  %v399_v7 = vld [vmem:[#allocation7 + $0x550] sm:$0xff]  ;;  %v396_v9 = vld [vmem:[#allocation7 + $0x538] sm:$0xff]  ;;  %v3818_v28 = vld [vmem:[#allocation3 + $0x208] sm:$0xff] }
 0x179   :  { %1076 = vmatprep.subr.mxu0 %v236_v12  ;;  %1000 = vmatpush1.msra.mxu1 %v489_v13  ;;  %v328_v10 = vld [vmem:[#allocation7 + $0x318] sm:$0xff]  ;;  %v327_v12 = vld [vmem:[#allocation7 + $0x310] sm:$0xff] }
 0x17a   :  { %1077 = vmatpush1.msra.mxu0 %v235_v14  ;;  %1001 = vmatprep.subr.mxu1 %v486_v15  ;;  %v392_v11 = vld [vmem:[#allocation7 + $0x518] sm:$0xff]  ;;  %v391_v13 = vld [vmem:[#allocation7 + $0x510] sm:$0xff] }
 0x17b   :  { %1078 = vmatprep.subr.mxu0 %v232_v16  ;;  %1002 = vmatpush1.msra.mxu1 %v485_v17  ;;  %v324_v14 = vld [vmem:[#allocation7 + $0x2f8] sm:$0xff]  ;;  %v323_v16 = vld [vmem:[#allocation7 + $0x2f0] sm:$0xff] }
 0x17c   :  { %1035 = vmatprep.mubr.f32.mxu1 %v4415_v0  ;;  %1079 = vmatpush1.msra.mxu0 %v231_v19  ;;  %v388_v15 = vld [vmem:[#allocation7 + $0x4f8] sm:$0xff]  ;;  %v387_v17 = vld [vmem:[#allocation7 + $0x4f0] sm:$0xff] }
 0x17d   :  { %1036 = vmatmul.mubr.f32.vlgmr.msra.gmra.mxu1 %v811_v18  ;;  %1080 = vmatprep.subr.mxu0 %v356_v20  ;;  %v320_v19 = vld [vmem:[#allocation7 + $0x2d8] sm:$0xff] }
 0x17e   :  { %1125 = vmatprep.subr.mxu1 %v420_v21  ;;  %1081 = vmatpush2.msra.mxu0 %v355_v22  ;;  %v384_v20 = vld [vmem:[#allocation7 + $0x4d8] sm:$0xff]  ;;  %v319_v21 = vld [vmem:[#allocation7 + $0x2d0] sm:$0xff] }
 0x17f   :  { %1126 = vmatpush1.msra.mxu1 %v419_v24  ;;  %1082 = vmatprep.subr.mxu0 %v352_v35  ;;  %v383_v22 = vld [vmem:[#allocation7 + $0x4d0] sm:$0xff]  ;;  %v316_v24 = vld [vmem:[#allocation7 + $0x2b8] sm:$0xff] }
 0x180   :  { %1127 = vmatprep.subr.mxu1 %v416_v39  ;;  %1041 = vmatprep.mubr.f32.mxu1 %v4415_v0  ;;  %v380_v35 = vld [vmem:[#allocation7 + $0x4b8] sm:$0xff]  ;;  %v315_v39 = vld [vmem:[#allocation7 + $0x2b0] sm:$0xff] }
 0x181   :  { %1083 = vmatpush2.msra.mxu0 %v351_v40  ;;  %1128 = vmatpush1.msra.mxu1 %v415_v41  ;;  %v379_v40 = vld [vmem:[#allocation7 + $0x4b0] sm:$0xff]  ;;  %v312_v41 = vld [vmem:[#allocation7 + $0x298] sm:$0xff] }
 0x182   :  { %1042 = vmatmul.mubr.f32.gmra.mxu1 %v816_v49  ;;  %1084 = vmatprep.subr.mxu0 %v348_v45  ;;  %v376_v45 = vld [vmem:[#allocation7 + $0x498] sm:$0xff] }
 0x183   :  { %1129 = vmatprep.subr.mxu1 %v412_v50  ;;  %1085 = vmatpush2.msra.mxu0 %v347_v51  ;;  %v311_v50 = vld [vmem:[#allocation7 + $0x290] sm:$0xff] }
 0x184   :  { %1130 = vmatpush1.msra.mxu1 %v411_v54  ;;  %1189 = vmatprep.mubr.f32.mxu1 %v810_v46  ;;  %v395_v46 = vld [vmem:[#allocation7 + $0x530] sm:$0xff]  ;;  %v308_v54 = vld [vmem:[#allocation7 + $0x278] sm:$0xff] }
 0x185   :  { %1086 = vmatprep.subr.mxu0 %v344_v55  ;;  %1131 = vmatprep.subr.mxu1 %v408_v56  ;;  %v375_v51 = vld [vmem:[#allocation7 + $0x490] sm:$0xff]  ;;  %v372_v55 = vld [vmem:[#allocation7 + $0x478] sm:$0xff] }
 0x186   :  { %1087 = vmatpush2.msra.mxu0 %v343_v59  ;;  %1132 = vmatpush1.msra.mxu1 %v407_v61  ;;  %v307_v56 = vld [vmem:[#allocation7 + $0x270] sm:$0xff]  ;;  %v304_v61 = vld [vmem:[#allocation7 + $0x258] sm:$0xff] }
 0x187   :  { %1088 = vmatprep.subr.mxu0 %v340_v62  ;;  %1133 = vmatprep.subr.mxu1 %v404_v63  ;;  %v371_v59 = vld [vmem:[#allocation7 + $0x470] sm:$0xff]  ;;  %v368_v62 = vld [vmem:[#allocation7 + $0x458] sm:$0xff] }
 0x188   :  { %1089 = vmatpush2.msra.mxu0 %v339_v1  ;;  %1134 = vmatpush1.msra.mxu1 %v403_v3  ;;  %v303_v63 = vld [vmem:[#allocation7 + $0x250] sm:$0xff]  ;;  %v300_v3 = vld [vmem:[#allocation7 + $0x238] sm:$0xff] }
 0x189   :  { %1090 = vmatprep.subr.mxu0 %v336_v4  ;;  %1135 = vmatprep.subr.mxu1 %v400_v5  ;;  %v367_v1 = vld [vmem:[#allocation7 + $0x450] sm:$0xff]  ;;  %v364_v4 = vld [vmem:[#allocation7 + $0x438] sm:$0xff] }
 0x18a   :  { %1091 = vmatpush2.msra.mxu0 %v335_v6  ;;  %1136 = vmatpush1.msra.mxu1 %v399_v7  ;;  %v299_v5 = vld [vmem:[#allocation7 + $0x230] sm:$0xff]  ;;  %v296_v7 = vld [vmem:[#allocation7 + $0x218] sm:$0xff] }
 0x18b   :  { %1092 = vmatprep.subr.mxu0 %v332_v8  ;;  %1137 = vmatprep.subr.mxu1 %v396_v9  ;;  %v363_v6 = vld [vmem:[#allocation7 + $0x430] sm:$0xff]  ;;  %v360_v8 = vld [vmem:[#allocation7 + $0x418] sm:$0xff] }
 0x18c   :  { %1093 = vmatpush2.msra.mxu0 %v331_v42  ;;  %1138 = vmatpush1.msra.mxu1 %v395_v46  ;;  %v295_v9 = vld [vmem:[#allocation7 + $0x210] sm:$0xff]  ;;  %v484_v46 = vld [vmem:[#allocation7 + $0x7f8] sm:$0xff] }
 0x18d   :  { %1094 = vmatprep.subr.mxu0 %v328_v10  ;;  %1139 = vmatprep.subr.mxu1 %v392_v11  ;;  %v359_v42 = vld [vmem:[#allocation7 + $0x410] sm:$0xff]  ;;  %v548_v10 = vld [vmem:[#allocation7 + $0x9f8] sm:$0xff] }
 0x18e   :  { %1095 = vmatpush2.msra.mxu0 %v327_v12  ;;  %1140 = vmatpush1.msra.mxu1 %v391_v13  ;;  %v483_v11 = vld [vmem:[#allocation7 + $0x7f0] sm:$0xff]  ;;  %v480_v13 = vld [vmem:[#allocation7 + $0x7d8] sm:$0xff] }
 0x18f   :  { %1096 = vmatprep.subr.mxu0 %v324_v14  ;;  %1141 = vmatprep.subr.mxu1 %v388_v15  ;;  %v547_v12 = vld [vmem:[#allocation7 + $0x9f0] sm:$0xff]  ;;  %v544_v14 = vld [vmem:[#allocation7 + $0x9d8] sm:$0xff] }
 0x190   :  { %1097 = vmatpush2.msra.mxu0 %v323_v16  ;;  %1142 = vmatpush1.msra.mxu1 %v387_v17  ;;  %v479_v15 = vld [vmem:[#allocation7 + $0x7d0] sm:$0xff]  ;;  %v476_v17 = vld [vmem:[#allocation7 + $0x7b8] sm:$0xff] }
 0x191   :  { %1098 = vmatprep.subr.mxu0 %v320_v19  ;;  %1143 = vmatprep.subr.mxu1 %v384_v20  ;;  %v543_v16 = vld [vmem:[#allocation7 + $0x9d0] sm:$0xff]  ;;  %v540_v19 = vld [vmem:[#allocation7 + $0x9b8] sm:$0xff] }
 0x192   :  { %1099 = vmatpush2.msra.mxu0 %v319_v21  ;;  %1144 = vmatpush1.msra.mxu1 %v383_v22  ;;  %v475_v20 = vld [vmem:[#allocation7 + $0x7b0] sm:$0xff]  ;;  %v536_v21 = vld [vmem:[#allocation7 + $0x998] sm:$0xff] }
 0x193   :  { %1100 = vmatprep.subr.mxu0 %v316_v24  ;;  %1145 = vmatprep.subr.mxu1 %v380_v35  ;;  %v468_v22 = vld [vmem:[#allocation7 + $0x778] sm:$0xff]  ;;  %v467_v35 = vld [vmem:[#allocation7 + $0x770] sm:$0xff] }
 0x194   :  { %1101 = vmatpush2.msra.mxu0 %v315_v39  ;;  %1146 = vmatpush1.msra.mxu1 %v379_v40  ;;  %v532_v24 = vld [vmem:[#allocation7 + $0x978] sm:$0xff]  ;;  %v531_v39 = vld [vmem:[#allocation7 + $0x970] sm:$0xff] }
 0x195   :  { %1102 = vmatprep.subr.mxu0 %v312_v41  ;;  %1147 = vmatprep.subr.mxu1 %v376_v45  ;;  %v464_v40 = vld [vmem:[#allocation7 + $0x758] sm:$0xff] }
 0x196   :  { %1103 = vmatpush2.msra.mxu0 %v311_v50  ;;  %1148 = vmatpush1.msra.mxu1 %v375_v51  ;;  %v528_v41 = vld [vmem:[#allocation7 + $0x958] sm:$0xff]  ;;  %v459_v51 = vld [vmem:[#allocation7 + $0x730] sm:$0xff] }
 0x197   :  { %1104 = vmatprep.subr.mxu0 %v308_v54  ;;  %1149 = vmatprep.subr.mxu1 %v372_v55  ;;  %v460_v45 = vld [vmem:[#allocation7 + $0x738] sm:$0xff]  ;;  %v523_v54 = vld [vmem:[#allocation7 + $0x930] sm:$0xff] }
 0x198   :  { %1105 = vmatpush2.msra.mxu0 %v307_v56  ;;  %1150 = vmatpush1.msra.mxu1 %v371_v59  ;;  %v524_v50 = vld [vmem:[#allocation7 + $0x938] sm:$0xff]  ;;  %v455_v59 = vld [vmem:[#allocation7 + $0x710] sm:$0xff] }
 0x199   :  { %1106 = vmatprep.subr.mxu0 %v304_v61  ;;  %1151 = vmatprep.subr.mxu1 %v368_v62  ;;  %v456_v55 = vld [vmem:[#allocation7 + $0x718] sm:$0xff]  ;;  %v519_v61 = vld [vmem:[#allocation7 + $0x910] sm:$0xff] }
 0x19a   :  { %1107 = vmatpush2.msra.mxu0 %v303_v63  ;;  %1152 = vmatpush1.msra.mxu1 %v367_v1  ;;  %v520_v56 = vld [vmem:[#allocation7 + $0x918] sm:$0xff]  ;;  %v451_v1 = vld [vmem:[#allocation7 + $0x6f0] sm:$0xff] }
 0x19b   :  { %1108 = vmatprep.subr.mxu0 %v300_v3  ;;  %1153 = vmatprep.subr.mxu1 %v364_v4  ;;  %v452_v62 = vld [vmem:[#allocation7 + $0x6f8] sm:$0xff]  ;;  %v515_v3 = vld [vmem:[#allocation7 + $0x8f0] sm:$0xff] }
 0x19c   :  { %1109 = vmatpush2.msra.mxu0 %v299_v5  ;;  %1154 = vmatpush1.msra.mxu1 %v363_v6  ;;  %v516_v63 = vld [vmem:[#allocation7 + $0x8f8] sm:$0xff]  ;;  %v447_v6 = vld [vmem:[#allocation7 + $0x6d0] sm:$0xff] }
 0x19d   :  { %1110 = vmatprep.subr.mxu0 %v296_v7  ;;  %1155 = vmatprep.subr.mxu1 %v360_v8  ;;  %v448_v4 = vld [vmem:[#allocation7 + $0x6d8] sm:$0xff]  ;;  %v511_v7 = vld [vmem:[#allocation7 + $0x8d0] sm:$0xff] }
 0x19e   :  { %1111 = vmatpush2.msra.mxu0 %v295_v9  ;;  %1156 = vmatpush1.msra.mxu1 %v359_v42  ;;  %v512_v5 = vld [vmem:[#allocation7 + $0x8d8] sm:$0xff]  ;;  %v443_v42 = vld [vmem:[#allocation7 + $0x6b0] sm:$0xff] }
 0x19f   :  { %1113 = vmatmul.mubr.f32.vlgmr.msra.gmra.mxu0 %v807_v48  ;;  %1157 = vmatprep.subr.mxu1 %v484_v46  ;;  %v472_v48 = vld [vmem:[#allocation7 + $0x798] sm:$0xff]  ;;  %v507_v46 = vld [vmem:[#allocation7 + $0x8b0] sm:$0xff] }
 0x1a0   :  { %1202 = vmatprep.subr.mxu0 %v548_v10  ;;  %1118 = vmatprep.mubr.f32.mxu0 %v813_v53  ;;  %v535_v53 = vld [vmem:[#allocation7 + $0x990] sm:$0xff]  ;;  %v444_v8 = vld [vmem:[#allocation7 + $0x6b8] sm:$0xff] }
 0x1a1   :  { %1158 = vmatpush2.msra.mxu1 %v483_v11  ;;  %1203 = vmatpush1.msra.mxu0 %v547_v12  ;;  %v508_v9 = vld [vmem:[#allocation7 + $0x8b8] sm:$0xff]  ;;  %v439_v12 = vld [vmem:[#allocation7 + $0x690] sm:$0xff] }
 0x1a2   :  { %1159 = vmatprep.subr.mxu1 %v480_v13  ;;  %1204 = vmatprep.subr.mxu0 %v544_v14  ;;  %v440_v10 = vld [vmem:[#allocation7 + $0x698] sm:$0xff]  ;;  %v503_v13 = vld [vmem:[#allocation7 + $0x890] sm:$0xff] }
 0x1a3   :  { %1160 = vmatpush2.msra.mxu1 %v479_v15  ;;  %1205 = vmatpush1.msra.mxu0 %v543_v16  ;;  %v504_v11 = vld [vmem:[#allocation7 + $0x898] sm:$0xff]  ;;  %v435_v16 = vld [vmem:[#allocation7 + $0x670] sm:$0xff] }
 0x1a4   :  { %1119 = vmatmul.mubr.f32.gmra.mxu0 %v812_v60  ;;  %1161 = vmatprep.subr.mxu1 %v476_v17  ;;  %v527_v60 = vld [vmem:[#allocation7 + $0x950] sm:$0xff]  ;;  %v436_v14 = vld [vmem:[#allocation7 + $0x678] sm:$0xff] }
 0x1a5   :  { %1206 = vmatprep.subr.mxu0 %v540_v19  ;;  %1162 = vmatpush2.msra.mxu1 %v475_v20  ;;  %v500_v15 = vld [vmem:[#allocation7 + $0x878] sm:$0xff]  ;;  %v499_v17 = vld [vmem:[#allocation7 + $0x870] sm:$0xff] }
 0x1a6   :  { %1207 = vmatpush1.msra.mxu0 %v539_v38  ;;  %1163 = vmatprep.subr.mxu1 %v472_v48  ;;  %v432_v19 = vld [vmem:[#allocation7 + $0x658] sm:$0xff]  ;;  %v431_v38 = vld [vmem:[#allocation7 + $0x650] sm:$0xff] }
 0x1a7   :  { %1208 = vmatprep.subr.mxu0 %v536_v21  ;;  %1164 = vmatpush2.msra.mxu1 %v471_v36  ;;  %v496_v20 = vld [vmem:[#allocation7 + $0x858] sm:$0xff]  ;;  %v495_v48 = vld [vmem:[#allocation7 + $0x850] sm:$0xff] }
 0x1a8   :  { %1209 = vmatpush1.msra.mxu0 %v535_v53  ;;  %1165 = vmatprep.subr.mxu1 %v468_v22  ;;  %v428_v21 = vld [vmem:[#allocation7 + $0x638] sm:$0xff]  ;;  %v427_v53 = vld [vmem:[#allocation7 + $0x630] sm:$0xff] }
 0x1a9   :  { %1210 = vmatprep.subr.mxu0 %v532_v24  ;;  %1166 = vmatpush2.msra.mxu1 %v467_v35  ;;  %v492_v36 = vld [vmem:[#allocation7 + $0x838] sm:$0xff]  ;;  %v491_v22 = vld [vmem:[#allocation7 + $0x830] sm:$0xff] }
 0x1aa   :  { %1211 = vmatpush1.msra.mxu0 %v531_v39  ;;  %1167 = vmatprep.subr.mxu1 %v464_v40  ;;  %v424_v24 = vld [vmem:[#allocation7 + $0x618] sm:$0xff]  ;;  %v423_v39 = vld [vmem:[#allocation7 + $0x610] sm:$0xff] }
 0x1ab   :  { %1212 = vmatprep.subr.mxu0 %v528_v41  ;;  %1168 = vmatpush2.msra.mxu1 %v463_v44  ;;  %v488_v35 = vld [vmem:[#allocation7 + $0x818] sm:$0xff]  ;;  %v487_v40 = vld [vmem:[#allocation7 + $0x810] sm:$0xff] }
 0x1ac   :  { %1213 = vmatpush1.msra.mxu0 %v527_v60  ;;  %1169 = vmatprep.subr.mxu1 %v460_v45  ;;  %v3808_v41 = vld [vmem:[#allocation3 + $0x260] sm:$0xff]  ;;  %v3809_v44 = vld [vmem:[#allocation3 + $0x270] sm:$0xff]  ;;  %v3810_v60 = vld [vmem:[#allocation3 + $0x258] sm:$0xff] }
 0x1ad   :  { %1214 = vmatprep.subr.mxu0 %v524_v50  ;;  %1170 = vmatpush2.msra.mxu1 %v459_v51  ;;  %v3811_v45 = vld [vmem:[#allocation3 + $0x268] sm:$0xff]  ;;  %v3812_v50 = vld [vmem:[#allocation3 + $0x238] sm:$0xff] }
 0x1ae   :  { %1215 = vmatpush1.msra.mxu0 %v523_v54  ;;  %1171 = vmatprep.subr.mxu1 %v456_v55  ;;  %v3813_v51 = vld [vmem:[#allocation3 + $0x248] sm:$0xff]  ;;  %v3821_v55 = vld [vmem:[#allocation3 + $0x1f8] sm:$0xff] }
 0x1af   :  { %1216 = vmatprep.subr.mxu0 %v520_v56  ;;  %1172 = vmatpush2.msra.mxu1 %v455_v59  ;;  %v3820_v54 = vld [vmem:[#allocation3 + $0x1e8] sm:$0xff]  ;;  %v3822_v56 = vld [vmem:[#allocation3 + $0x1e0] sm:$0xff]  ;;  %v3823_v59 = vld [vmem:[#allocation3 + $0x1f0] sm:$0xff] }
 0x1b0   :  { %1217 = vmatpush1.msra.mxu0 %v519_v61  ;;  %1173 = vmatprep.subr.mxu1 %v452_v62  ;;  %v3826_v23 = vld [vmem:[#allocation3 + $0x1b8] sm:$0xff]  ;;  %v3829_v62 = vld [vmem:[#allocation3 + $0x1a8] sm:$0xff] }
 0x1b1   :  { %1218 = vmatprep.subr.mxu0 %v516_v63  ;;  %1174 = vmatpush2.msra.mxu1 %v451_v1  ;;  %v3828_v61 = vld [vmem:[#allocation3 + $0x198] sm:$0xff]  ;;  %v3830_v63 = vld [vmem:[#allocation3 + $0x190] sm:$0xff]  ;;  %v3831_v1 = vld [vmem:[#allocation3 + $0x1a0] sm:$0xff] }
 0x1b2   :  { %1219 = vmatpush1.msra.mxu0 %v515_v3  ;;  %1175 = vmatprep.subr.mxu1 %v448_v4  ;;  %v3832_v3 = vld [vmem:[#allocation3 + $0x170] sm:$0xff]  ;;  %v3833_v4 = vld [vmem:[#allocation3 + $0x180] sm:$0xff] }
 0x1b3   :  { %1220 = vmatprep.subr.mxu0 %v512_v5  ;;  %1176 = vmatpush2.msra.mxu1 %v447_v6  ;;  %v3834_v5 = vld [vmem:[#allocation3 + $0x168] sm:$0xff]  ;;  %v3835_v6 = vld [vmem:[#allocation3 + $0x178] sm:$0xff] }
 0x1b4   :  { %1221 = vmatpush1.msra.mxu0 %v511_v7  ;;  %1177 = vmatprep.subr.mxu1 %v444_v8  ;;  %v3836_v7 = vld [vmem:[#allocation3 + $0x148] sm:$0xff]  ;;  %v3837_v8 = vld [vmem:[#allocation3 + $0x158] sm:$0xff] }
 0x1b5   :  { %1222 = vmatprep.subr.mxu0 %v508_v9  ;;  %1178 = vmatpush2.msra.mxu1 %v443_v42  ;;  %v3838_v9 = vld [vmem:[#allocation3 + $0x140] sm:$0xff]  ;;  %v3839_v42 = vld [vmem:[#allocation3 + $0x150] sm:$0xff] }
 0x1b6   :  { %1223 = vmatpush1.msra.mxu0 %v507_v46  ;;  %1179 = vmatprep.subr.mxu1 %v440_v10  ;;  %v3840_v46 = vld [vmem:[#allocation3 + $0x120] sm:$0xff]  ;;  %v3841_v10 = vld [vmem:[#allocation3 + $0x130] sm:$0xff] }
 0x1b7   :  { %1224 = vmatprep.subr.mxu0 %v504_v11  ;;  %1180 = vmatpush2.msra.mxu1 %v439_v12  ;;  %v3842_v11 = vld [vmem:[#allocation3 + $0x118] sm:$0xff]  ;;  %v3843_v12 = vld [vmem:[#allocation3 + $0x128] sm:$0xff] }
 0x1b8   :  { %1225 = vmatpush1.msra.mxu0 %v503_v13  ;;  %1181 = vmatprep.subr.mxu1 %v436_v14  ;;  %v3844_v13 = vld [vmem:[#allocation3 + $0xf8] sm:$0xff]  ;;  %v3845_v14 = vld [vmem:[#allocation3 + $0x108] sm:$0xff] }
 0x1b9   :  { %1226 = vmatprep.subr.mxu0 %v500_v15  ;;  %1182 = vmatpush2.msra.mxu1 %v435_v16  ;;  %v3846_v15 = vld [vmem:[#allocation3 + $0xf0] sm:$0xff]  ;;  %v3847_v16 = vld [vmem:[#allocation3 + $0x100] sm:$0xff] }
 0x1ba   :  { %1227 = vmatpush1.msra.mxu0 %v499_v17  ;;  %1183 = vmatprep.subr.mxu1 %v432_v19  ;;  %v3848_v17 = vld [vmem:[#allocation3 + $0xd0] sm:$0xff]  ;;  %v3849_v19 = vld [vmem:[#allocation3 + $0xe0] sm:$0xff] }
 0x1bb   :  { %1228 = vmatprep.subr.mxu0 %v496_v20  ;;  %1184 = vmatpush2.msra.mxu1 %v431_v38  ;;  %v3850_v20 = vld [vmem:[#allocation3 + $0xc8] sm:$0xff]  ;;  %v3851_v38 = vld [vmem:[#allocation3 + $0xd8] sm:$0xff] }
 0x1bc   :  { %1229 = vmatpush1.msra.mxu0 %v495_v48  ;;  %1185 = vmatprep.subr.mxu1 %v428_v21  ;;  %v3852_v48 = vld [vmem:[#allocation3 + $0xa8] sm:$0xff]  ;;  %v3853_v21 = vld [vmem:[#allocation3 + $0xb8] sm:$0xff] }
 0x1bd   :  { %1230 = vmatprep.subr.mxu0 %v492_v36  ;;  %1186 = vmatpush2.msra.mxu1 %v427_v53  ;;  %v3854_v36 = vld [vmem:[#allocation3 + $0xa0] sm:$0xff]  ;;  %v3855_v53 = vld [vmem:[#allocation3 + $0xb0] sm:$0xff] }
 0x1be   :  { %1231 = vmatpush1.msra.mxu0 %v491_v22  ;;  %1187 = vmatprep.subr.mxu1 %v424_v24  ;;  %v3856_v22 = vld [vmem:[#allocation3 + $0x80] sm:$0xff]  ;;  %v3857_v24 = vld [vmem:[#allocation3 + $0x90] sm:$0xff] }
 0x1bf   :  { %1232 = vmatprep.subr.mxu0 %v488_v35  ;;  %1188 = vmatpush2.msra.mxu1 %v423_v39  ;;  %v3858_v35 = vld [vmem:[#allocation3 + $0x78] sm:$0xff]  ;;  %v3859_v39 = vld [vmem:[#allocation3 + $0x88] sm:$0xff] }
 0x1c0   :  { %1233 = vmatpush1.msra.mxu0 %v487_v40  ;;  %1266 = vmatprep.mubr.f32.mxu0 %v4415_v0  ;;  %v3860_v40 = vld [vmem:[#allocation3 + $0x58] sm:$0xff] }
 0x1c1   :  { %1190 = vmatmul.mubr.f32.vlgmr.msra.gmra.mxu1 %v809_v43  ;;  %1267 = vmatmul.mubr.f32.vlgmr.msra.gmra.mxu0 %v811_v18  ;;  %v3815_v43 = vld [vmem:[#allocation3 + $0x240] sm:$0xff]  ;;  %v3819_v18 = vld [vmem:[#allocation3 + $0x218] sm:$0xff] }
 0x1c2   :  { %1297 = vmatprep.subr.mxu1 %v3808_v41  ;;  %1374 = vmatprep.subr.mxu0 %v3809_v44  ;;  %v3861_v41 = vld [vmem:[#allocation3 + $0x68] sm:$0xff]  ;;  %v3862_v44 = vld [vmem:[#allocation3 + $0x50] sm:$0xff] }
 0x1c3   :  { %1195 = vmatprep.mubr.f32.mxu1 %v815_v58  ;;  %1298 = vmatpush1.msra.mxu1 %v3810_v60  ;;  %v3817_v58 = vld [vmem:[#allocation3 + $0x220] sm:$0xff] }
 0x1c4   :  { %1375 = vmatpush1.msra.mxu0 %v3811_v45  ;;  %1299 = vmatprep.subr.mxu1 %v3812_v50  ;;  %v3863_v60 = vld [vmem:[#allocation3 + $0x60] sm:$0xff]  ;;  %v3864_v45 = vld [vmem:[#allocation3 + $0x30] sm:$0xff] }
 0x1c5   :  { %1376 = vmatprep.subr.mxu0 %v3813_v51  ;;  %1272 = vmatprep.mubr.f32.mxu0 %v4415_v0  ;;  %v3865_v50 = vld [vmem:[#allocation3 + $0x40] sm:$0xff]  ;;  %v3866_v51 = vld [vmem:[#allocation3 + $0x28] sm:$0xff] }
 0x1c6   :  { %1300 = vmatpush1.msra.mxu1 %v3814_v37  ;;  %1377 = vmatpush1.msra.mxu0 %v3815_v43  ;;  %v3867_v37 = vld [vmem:[#allocation3 + $0x38] sm:$0xff]  ;;  %v3868_v43 = vld [vmem:[#allocation3 + $0x8] sm:$0xff] }
 0x1c7   :  { %1196 = vmatmul.mubr.f32.gmra.mxu1 %v814_v57  ;;  %1273 = vmatmul.mubr.f32.gmra.mxu0 %v816_v49  ;;  %v3825_v57 = vld [vmem:[#allocation3 + $0x1d0] sm:$0xff]  ;;  %v3827_v49 = vld [vmem:[#allocation3 + $0x1c8] sm:$0xff] }
 0x1c8   :  { %1301 = vmatprep.subr.mxu1 %v3816_v52  ;;  %1378 = vmatprep.subr.mxu0 %v3817_v58  ;;  %v3869_v52 = vld [vmem:[#allocation3 + $0x18] sm:$0xff]  ;;  %v1295_v58 = vld [vmem:[%s4958_s0 + $0x8] sm:$0xff] }
 0x1c9   :  { %1302 = vmatpush1.msra.mxu1 %v3818_v28  ;;  %1379 = vmatpush1.msra.mxu0 %v3819_v18  ;;  %v3870_v28 = vld [vmem:[#allocation3] sm:$0xff]  ;;  %v3871_v18 = vld [vmem:[#allocation3 + $0x10] sm:$0xff] }
 0x1ca   :  { %1303 = vmatprep.subr.mxu1 %v3820_v54  ;;  %1380 = vmatprep.subr.mxu0 %v3821_v55  ;;  %v3872_v54 = vld [vmem:[#allocation3 + $0x278] sm:$0xff] }
 0x1cb   :  { %1304 = vmatpush1.msra.mxu1 %v3822_v56  ;;  %1381 = vmatpush1.msra.mxu0 %v3823_v59  ;;  %v4639_v55 = vld [vmem:[%s4958_s0 + $0x18] sm:$0xff]  ;;  %v3873_v56 = vld [vmem:[#allocation3 + $0x250] sm:$0xff] }
 0x1cc   :  { %1305 = vmatprep.subr.mxu1 %v3824_v47  ;;  %1382 = vmatprep.subr.mxu0 %v3825_v57  ;;  %v3874_v59 = vld [vmem:[#allocation7 + $0x1e8] sm:$0xff]  ;;  %v3876_v57 = vld [vmem:[#allocation3 + $0x200] sm:$0xff] }
 0x1cd   :  { %1306 = vmatpush1.msra.mxu1 %v3826_v23  ;;  %1383 = vmatpush1.msra.mxu0 %v3827_v49  ;;  %v3875_v47 = vld [vmem:[#allocation3 + $0x228] sm:$0xff] }
 0x1ce   :  { %1307 = vmatprep.subr.mxu1 %v3828_v61  ;;  %1384 = vmatprep.subr.mxu0 %v3829_v62  ;;  %v3877_v23 = vld [vmem:[#allocation7 + $0x1e0] sm:$0xff]  ;;  %v3878_v49 = vld [vmem:[#allocation7 + $0x1c8] sm:$0xff]  ;;  %v3879_v61 = vld [vmem:[#allocation3 + $0x1d8] sm:$0xff] }
 0x1cf   :  { %1308 = vmatpush1.msra.mxu1 %v3830_v63  ;;  %1385 = vmatpush1.msra.mxu0 %v3831_v1  ;;  %v3880_v62 = vld [vmem:[#allocation7 + $0x1c0] sm:$0xff]  ;;  %v3881_v63 = vld [vmem:[#allocation7 + $0x1a8] sm:$0xff] }
 0x1d0   :  { %1309 = vmatprep.subr.mxu1 %v3832_v3  ;;  %1386 = vmatprep.subr.mxu0 %v3833_v4  ;;  %v3882_v1 = vld [vmem:[#allocation3 + $0x1b0] sm:$0xff]  ;;  %v3883_v3 = vld [vmem:[#allocation7 + $0x1a0] sm:$0xff] }
 0x1d1   :  { %1310 = vmatpush1.msra.mxu1 %v3834_v5  ;;  %1387 = vmatpush1.msra.mxu0 %v3835_v6  ;;  %v3884_v4 = vld [vmem:[#allocation7 + $0x188] sm:$0xff]  ;;  %v3886_v6 = vld [vmem:[#allocation7 + $0x180] sm:$0xff] }
 0x1d2   :  { %1311 = vmatprep.subr.mxu1 %v3836_v7  ;;  %1388 = vmatprep.subr.mxu0 %v3837_v8  ;;  %v3885_v5 = vld [vmem:[#allocation3 + $0x188] sm:$0xff]  ;;  %v3888_v8 = vld [vmem:[#allocation3 + $0x160] sm:$0xff] }
 0x1d3   :  { %1312 = vmatpush1.msra.mxu1 %v3838_v9  ;;  %1389 = vmatpush1.msra.mxu0 %v3839_v42  ;;  %v3887_v7 = vld [vmem:[#allocation7 + $0x168] sm:$0xff]  ;;  %v3889_v9 = vld [vmem:[#allocation7 + $0x160] sm:$0xff] }
 0x1d4   :  { %1313 = vmatprep.subr.mxu1 %v3840_v46  ;;  %1390 = vmatprep.subr.mxu0 %v3841_v10  ;;  %v3890_v42 = vld [vmem:[#allocation7 + $0x148] sm:$0xff]  ;;  %v3891_v46 = vld [vmem:[#allocation3 + $0x138] sm:$0xff]  ;;  %v3892_v10 = vld [vmem:[#allocation7 + $0x140] sm:$0xff] }
 0x1d5   :  { %1314 = vmatpush1.msra.mxu1 %v3842_v11  ;;  %1391 = vmatpush1.msra.mxu0 %v3843_v12  ;;  %v3893_v11 = vld [vmem:[#allocation7 + $0x128] sm:$0xff] }
 0x1d6   :  { %1315 = vmatprep.subr.mxu1 %v3844_v13  ;;  %1392 = vmatprep.subr.mxu0 %v3845_v14  ;;  %v3894_v12 = vld [vmem:[#allocation3 + $0x110] sm:$0xff]  ;;  %v3895_v13 = vld [vmem:[#allocation7 + $0x120] sm:$0xff] }
 0x1d7   :  { %1316 = vmatpush1.msra.mxu1 %v3846_v15  ;;  %1393 = vmatpush1.msra.mxu0 %v3847_v16  ;;  %v3896_v14 = vld [vmem:[#allocation7 + $0x108] sm:$0xff]  ;;  %v3898_v16 = vld [vmem:[#allocation7 + $0x100] sm:$0xff] }
 0x1d8   :  { %1317 = vmatprep.subr.mxu1 %v3848_v17  ;;  %1394 = vmatprep.subr.mxu0 %v3849_v19  ;;  %v3897_v15 = vld [vmem:[#allocation3 + $0xe8] sm:$0xff]  ;;  %v3900_v19 = vld [vmem:[#allocation3 + $0xc0] sm:$0xff] }
 0x1d9   :  { %1318 = vmatpush1.msra.mxu1 %v3850_v20  ;;  %1395 = vmatpush1.msra.mxu0 %v3851_v38  ;;  %v3899_v17 = vld [vmem:[#allocation7 + $0xe8] sm:$0xff]  ;;  %v3901_v20 = vld [vmem:[#allocation7 + $0xe0] sm:$0xff] }
 0x1da   :  { %1319 = vmatprep.subr.mxu1 %v3852_v48  ;;  %1396 = vmatprep.subr.mxu0 %v3853_v21  ;;  %v3902_v38 = vld [vmem:[#allocation7 + $0xc8] sm:$0xff]  ;;  %v3903_v48 = vld [vmem:[#allocation3 + $0x98] sm:$0xff]  ;;  %v3904_v21 = vld [vmem:[#allocation7 + $0xc0] sm:$0xff] }
 0x1db   :  { %1320 = vmatpush1.msra.mxu1 %v3854_v36  ;;  %1397 = vmatpush1.msra.mxu0 %v3855_v53  ;;  %v3905_v36 = vld [vmem:[#allocation7 + $0xa8] sm:$0xff] }
 0x1dc   :  { %1321 = vmatprep.subr.mxu1 %v3856_v22  ;;  %1398 = vmatprep.subr.mxu0 %v3857_v24  ;;  %v3906_v53 = vld [vmem:[#allocation3 + $0x70] sm:$0xff]  ;;  %v3907_v22 = vld [vmem:[#allocation7 + $0xa0] sm:$0xff] }
 0x1dd   :  { %1322 = vmatpush1.msra.mxu1 %v3858_v35  ;;  %1399 = vmatpush1.msra.mxu0 %v3859_v39  ;;  %v3908_v24 = vld [vmem:[#allocation7 + $0x88] sm:$0xff]  ;;  %v3910_v39 = vld [vmem:[#allocation7 + $0x80] sm:$0xff] }
 0x1de   :  { %1323 = vmatprep.subr.mxu1 %v3860_v40  ;;  %1400 = vmatprep.subr.mxu0 %v3861_v41  ;;  %v3909_v35 = vld [vmem:[#allocation3 + $0x48] sm:$0xff]  ;;  %v3912_v41 = vld [vmem:[#allocation3 + $0x20] sm:$0xff] }
 0x1df   :  { %1324 = vmatpush1.msra.mxu1 %v3862_v44  ;;  %1401 = vmatpush1.msra.mxu0 %v3863_v60  ;;  %v3911_v40 = vld [vmem:[#allocation7 + $0x68] sm:$0xff]  ;;  %v3913_v44 = vld [vmem:[#allocation7 + $0x60] sm:$0xff] }
 0x1e0   :  { %1325 = vmatprep.subr.mxu1 %v3864_v45  ;;  %1402 = vmatprep.subr.mxu0 %v3865_v50  ;;  %v3914_v60 = vld [vmem:[#allocation7 + $0x48] sm:$0xff]  ;;  %v3916_v50 = vld [vmem:[#allocation7 + $0x5e0] sm:$0xff] }
 0x1e1   :  { %1326 = vmatpush1.msra.mxu1 %v3866_v51  ;;  %1403 = vmatpush1.msra.mxu0 %v3867_v37  ;;  %v3915_v45 = vld [vmem:[#allocation7 + $0x5e8] sm:$0xff]  ;;  %v3917_v51 = vld [vmem:[#allocation7 + $0x40] sm:$0xff] }
 0x1e2   :  { %1327 = vmatprep.subr.mxu1 %v3868_v43  ;;  %1404 = vmatprep.subr.mxu0 %v3869_v52  ;;  %v3918_v37 = vld [vmem:[#allocation7 + $0x5c8] sm:$0xff]  ;;  %v3920_v52 = vld [vmem:[#allocation7 + $0x5c0] sm:$0xff] }
 0x1e3   :  { %1328 = vmatpush1.msra.mxu1 %v3870_v28  ;;  %1361 = vmatprep.mubr.f32.mxu1 %v4415_v0  ;;  %v3919_v43 = vld [vmem:[#allocation7 + $0x28] sm:$0xff] }
 0x1e4   :  { %1405 = vmatpush1.msra.mxu0 %v3871_v18  ;;  %1438 = vmatprep.mubr.f32.mxu0 %v4415_v0  ;;  %v3922_v28 = vld [vmem:[#allocation7 + $0x5a8] sm:$0xff] }
 0x1e5   :  { %1362 = vmatmul.mubr.f32.vlgmr.msra.gmra.mxu1 %v1295_v58  ;;  %1439 = vmatmul.mubr.f32.vlgmr.msra.gmra.mxu0 %v1295_v58  ;;  %v3923_v18 = vld [vmem:[#allocation7 + $0x8] sm:$0xff] }
 0x1e6   :  { %3723 = vmatprep.subr.mxu1 %v3872_v54  ;;  %1444 = vmatprep.mubr.f32.mxu0 %v4415_v0 }
 0x1e7   :  { %3724 = vmatpush3.msra.mxu1 %v3872_v54  ;;  %1367 = vmatprep.mubr.f32.mxu1 %v4415_v0  ;;  %v3924_v54 = vld [vmem:[#allocation7 + $0x5a0] sm:$0xff] }
 0x1e8   :  { %3725 = vmatprep.subr.mxu1 %v3873_v56  ;;  %1536 = vmatprep.subr.mxu0 %v3874_v59  ;;  %v3927_v59 = vld [vmem:[#allocation7 + $0x3e8] sm:$0xff] }
 0x1e9   :  { %3726 = vmatpush3.msra.mxu1 %v3873_v56  ;;  %1445 = vmatmul.mubr.f32.gmra.mxu0 %v4639_v55  ;;  %v3926_v56 = vld [vmem:[#allocation7 + $0x588] sm:$0xff] }
 0x1ea   :  { %3727 = vmatprep.subr.mxu1 %v3875_v47  ;;  %1368 = vmatmul.mubr.f32.gmra.mxu1 %v4639_v55 }
 0x1eb   :  { %3728 = vmatpush3.msra.mxu1 %v3875_v47  ;;  %3755 = vmatprep.mubr.f32.mxu1 %v1295_v58  ;;  %v3921_v58 = vld [vmem:[#allocation7 + $0x20] sm:$0xff] }
 0x1ec   :  { %3729 = vmatprep.subr.mxu1 %v3876_v57  ;;  %1537 = vmatpush1.msra.mxu0 %v3877_v23  ;;  %v3928_v47 = vld [vmem:[#allocation7 + $0x580] sm:$0xff]  ;;  %v3930_v23 = vld [vmem:[#allocation7 + $0x568] sm:$0xff] }
 0x1ed   :  { %3730 = vmatpush3.msra.mxu1 %v3876_v57  ;;  %1538 = vmatprep.subr.mxu0 %v3878_v49  ;;  %v3929_v57 = vld [vmem:[#allocation7 + $0x3e0] sm:$0xff]  ;;  %v3931_v49 = vld [vmem:[#allocation7 + $0x3c8] sm:$0xff] }
 0x1ee   :  { %3731 = vmatprep.subr.mxu1 %v3879_v61  ;;  %1539 = vmatpush1.msra.mxu0 %v3880_v62  ;;  %v3933_v62 = vld [vmem:[#allocation7 + $0x3c0] sm:$0xff] }
 0x1ef   :  { %3732 = vmatpush3.msra.mxu1 %v3879_v61  ;;  %1540 = vmatprep.subr.mxu0 %v3881_v63  ;;  %v3932_v61 = vld [vmem:[#allocation7 + $0x560] sm:$0xff]  ;;  %v3934_v63 = vld [vmem:[#allocation7 + $0x548] sm:$0xff] }
 0x1f0   :  { %3733 = vmatprep.subr.mxu1 %v3882_v1  ;;  %1541 = vmatpush1.msra.mxu0 %v3883_v3  ;;  %v3936_v3 = vld [vmem:[#allocation7 + $0x540] sm:$0xff] }
 0x1f1   :  { %3734 = vmatpush3.msra.mxu1 %v3882_v1  ;;  %1542 = vmatprep.subr.mxu0 %v3884_v4  ;;  %v3935_v1 = vld [vmem:[#allocation7 + $0x3a8] sm:$0xff]  ;;  %v3937_v4 = vld [vmem:[#allocation7 + $0x3a0] sm:$0xff] }
 0x1f2   :  { %3735 = vmatprep.subr.mxu1 %v3885_v5  ;;  %1543 = vmatpush1.msra.mxu0 %v3886_v6  ;;  %v3939_v6 = vld [vmem:[#allocation7 + $0x388] sm:$0xff] }
 0x1f3   :  { %3736 = vmatpush3.msra.mxu1 %v3885_v5  ;;  %1544 = vmatprep.subr.mxu0 %v3887_v7  ;;  %v3938_v5 = vld [vmem:[#allocation7 + $0x528] sm:$0xff]  ;;  %v3940_v7 = vld [vmem:[#allocation7 + $0x520] sm:$0xff] }
 0x1f4   :  { %3737 = vmatprep.subr.mxu1 %v3888_v8  ;;  %1545 = vmatpush1.msra.mxu0 %v3889_v9  ;;  %v3942_v9 = vld [vmem:[#allocation7 + $0x508] sm:$0xff] }
 0x1f5   :  { %3738 = vmatpush3.msra.mxu1 %v3888_v8  ;;  %1546 = vmatprep.subr.mxu0 %v3890_v42  ;;  %v3941_v8 = vld [vmem:[#allocation7 + $0x380] sm:$0xff]  ;;  %v3943_v42 = vld [vmem:[#allocation7 + $0x368] sm:$0xff] }
 0x1f6   :  { %3739 = vmatprep.subr.mxu1 %v3891_v46  ;;  %1547 = vmatpush1.msra.mxu0 %v3892_v10  ;;  %v3945_v10 = vld [vmem:[#allocation7 + $0x360] sm:$0xff] }
 0x1f7   :  { %3740 = vmatpush3.msra.mxu1 %v3891_v46  ;;  %1548 = vmatprep.subr.mxu0 %v3893_v11  ;;  %v3944_v46 = vld [vmem:[#allocation7 + $0x500] sm:$0xff]  ;;  %v3946_v11 = vld [vmem:[#allocation7 + $0x4e8] sm:$0xff] }
 0x1f8   :  { %3741 = vmatprep.subr.mxu1 %v3894_v12  ;;  %1549 = vmatpush1.msra.mxu0 %v3895_v13  ;;  %v3948_v13 = vld [vmem:[#allocation7 + $0x4e0] sm:$0xff] }
 0x1f9   :  { %3742 = vmatpush3.msra.mxu1 %v3894_v12  ;;  %1550 = vmatprep.subr.mxu0 %v3896_v14  ;;  %v3947_v12 = vld [vmem:[#allocation7 + $0x348] sm:$0xff]  ;;  %v3949_v14 = vld [vmem:[#allocation7 + $0x340] sm:$0xff] }
 0x1fa   :  { %3743 = vmatprep.subr.mxu1 %v3897_v15  ;;  %1551 = vmatpush1.msra.mxu0 %v3898_v16  ;;  %v3951_v16 = vld [vmem:[#allocation7 + $0x328] sm:$0xff] }
 0x1fb   :  { %3744 = vmatpush3.msra.mxu1 %v3897_v15  ;;  %1552 = vmatprep.subr.mxu0 %v3899_v17  ;;  %v3950_v15 = vld [vmem:[#allocation7 + $0x4c8] sm:$0xff]  ;;  %v3952_v17 = vld [vmem:[#allocation7 + $0x4c0] sm:$0xff] }
 0x1fc   :  { %3745 = vmatprep.subr.mxu1 %v3900_v19  ;;  %1553 = vmatpush1.msra.mxu0 %v3901_v20 }
 0x1fd   :  { %3746 = vmatpush3.msra.mxu1 %v3900_v19  ;;  %1554 = vmatprep.subr.mxu0 %v3902_v38  ;;  %v3953_v19 = vld [vmem:[#allocation7 + $0x320] sm:$0xff] }
 0x1fe   :  { %3747 = vmatprep.subr.mxu1 %v3903_v48  ;;  %1555 = vmatpush1.msra.mxu0 %v3904_v21  ;;  %v3955_v21 = vld [vmem:[#allocation7 + $0x308] sm:$0xff] }
 0x1ff   :  { %3748 = vmatpush3.msra.mxu1 %v3903_v48  ;;  %1556 = vmatprep.subr.mxu0 %v3905_v36  ;;  %v3954_v48 = vld [vmem:[#allocation7 + $0x4a8] sm:$0xff] }
 0x200   :  { %3749 = vmatprep.subr.mxu1 %v3906_v53  ;;  %1557 = vmatpush1.msra.mxu0 %v3907_v22  ;;  %v3957_v22 = vld [vmem:[#allocation7 + $0x300] sm:$0xff] }
 0x201   :  { %3750 = vmatpush3.msra.mxu1 %v3906_v53  ;;  %1558 = vmatprep.subr.mxu0 %v3908_v24  ;;  %v3956_v53 = vld [vmem:[#allocation7 + $0x4a0] sm:$0xff] }
 0x202   :  { %3751 = vmatprep.subr.mxu1 %v3909_v35  ;;  %1559 = vmatpush1.msra.mxu0 %v3910_v39  ;;  %v3958_v39 = vld [vmem:[#allocation7 + $0x488] sm:$0xff] }
 0x203   :  { %3752 = vmatpush3.msra.mxu1 %v3909_v35  ;;  %1560 = vmatprep.subr.mxu0 %v3911_v40  ;;  %v3959_v40 = vld [vmem:[#allocation7 + $0x2e8] sm:$0xff] }
 0x204   :  { %3753 = vmatprep.subr.mxu1 %v3912_v41  ;;  %1561 = vmatpush1.msra.mxu0 %v3913_v44  ;;  %v3960_v44 = vld [vmem:[#allocation7 + $0x480] sm:$0xff] }
 0x205   :  { %3754 = vmatpush3.msra.mxu1 %v3912_v41  ;;  %1562 = vmatprep.subr.mxu0 %v3914_v60  ;;  %v3961_v60 = vld [vmem:[#allocation7 + $0x2e0] sm:$0xff] }
 0x206   :  { %3756 = vmatmul.mubr.f32.vlgmr.msra.gmra.mxu1 %v4639_v55  ;;  %1613 = vmatprep.subr.mxu1 %v3915_v45  ;;  %v3925_v55 = vld [vmem:[#allocation7] sm:$0xff]  ;;  %v3962_v45 = vld [vmem:[#allocation7 + $0x468] sm:$0xff] }
 0x207   :  { %1614 = vmatpush1.msra.mxu1 %v3916_v50  ;;  %1563 = vmatpush1.msra.mxu0 %v3917_v51  ;;  %v3963_v50 = vld [vmem:[#allocation7 + $0x2c8] sm:$0xff]  ;;  %v3964_v51 = vld [vmem:[#allocation7 + $0x460] sm:$0xff] }
 0x208   :  { %1615 = vmatprep.subr.mxu1 %v3918_v37  ;;  %1564 = vmatprep.subr.mxu0 %v3919_v43  ;;  %v3965_v37 = vld [vmem:[#allocation7 + $0x2c0] sm:$0xff]  ;;  %v3966_v43 = vld [vmem:[#allocation7 + $0x448] sm:$0xff] }
 0x209   :  { %1616 = vmatpush1.msra.mxu1 %v3920_v52  ;;  %1565 = vmatpush1.msra.mxu0 %v3921_v58  ;;  %v3967_v52 = vld [vmem:[#allocation7 + $0x2a8] sm:$0xff]  ;;  %v3968_v58 = vld [vmem:[#allocation7 + $0x440] sm:$0xff] }
 0x20a   :  { %1617 = vmatprep.subr.mxu1 %v3922_v28  ;;  %1566 = vmatprep.subr.mxu0 %v3923_v18  ;;  %v3969_v28 = vld [vmem:[#allocation7 + $0x2a0] sm:$0xff]  ;;  %v3970_v18 = vld [vmem:[#allocation7 + $0x428] sm:$0xff] }
 0x20b   :  { %1618 = vmatpush1.msra.mxu1 %v3924_v54  ;;  %1567 = vmatpush1.msra.mxu0 %v3925_v55  ;;  %v3971_v54 = vld [vmem:[#allocation7 + $0x288] sm:$0xff]  ;;  %v3972_v55 = vld [vmem:[#allocation7 + $0x420] sm:$0xff] }
 0x20c   :  { %1619 = vmatprep.subr.mxu1 %v3926_v56  ;;  %1568 = vmatprep.subr.mxu0 %v3927_v59  ;;  %v3973_v56 = vld [vmem:[#allocation7 + $0x280] sm:$0xff]  ;;  %v3974_v59 = vld [vmem:[#allocation7 + $0x408] sm:$0xff] }
 0x20d   :  { %1620 = vmatpush1.msra.mxu1 %v3928_v47  ;;  %1569 = vmatpush2.msra.mxu0 %v3929_v57  ;;  %v3975_v47 = vld [vmem:[#allocation7 + $0x268] sm:$0xff]  ;;  %v3976_v57 = vld [vmem:[#allocation7 + $0x400] sm:$0xff] }
 0x20e   :  { %1621 = vmatprep.subr.mxu1 %v3930_v23  ;;  %1570 = vmatprep.subr.mxu0 %v3931_v49  ;;  %v3977_v23 = vld [vmem:[#allocation7 + $0x260] sm:$0xff]  ;;  %v3978_v49 = vld [vmem:[#allocation7 + $0x7e8] sm:$0xff] }
 0x20f   :  { %1622 = vmatpush1.msra.mxu1 %v3932_v61  ;;  %1571 = vmatpush2.msra.mxu0 %v3933_v62  ;;  %v3979_v61 = vld [vmem:[#allocation7 + $0x248] sm:$0xff]  ;;  %v3980_v62 = vld [vmem:[#allocation7 + $0x7e0] sm:$0xff] }
 0x210   :  { %1623 = vmatprep.subr.mxu1 %v3934_v63  ;;  %1572 = vmatprep.subr.mxu0 %v3935_v1  ;;  %v3981_v63 = vld [vmem:[#allocation7 + $0x240] sm:$0xff]  ;;  %v3982_v1 = vld [vmem:[#allocation7 + $0x7c8] sm:$0xff] }
 0x211   :  { %1624 = vmatpush1.msra.mxu1 %v3936_v3  ;;  %1573 = vmatpush2.msra.mxu0 %v3937_v4  ;;  %v3983_v3 = vld [vmem:[#allocation7 + $0x228] sm:$0xff]  ;;  %v3984_v4 = vld [vmem:[#allocation7 + $0x7c0] sm:$0xff] }
 0x212   :  { %1625 = vmatprep.subr.mxu1 %v3938_v5  ;;  %1574 = vmatprep.subr.mxu0 %v3939_v6  ;;  %v3985_v5 = vld [vmem:[#allocation7 + $0x220] sm:$0xff]  ;;  %v3986_v6 = vld [vmem:[#allocation7 + $0x7a8] sm:$0xff] }
 0x213   :  { %1626 = vmatpush1.msra.mxu1 %v3940_v7  ;;  %1575 = vmatpush2.msra.mxu0 %v3941_v8  ;;  %v3987_v7 = vld [vmem:[#allocation7 + $0x208] sm:$0xff]  ;;  %v3988_v8 = vld [vmem:[#allocation7 + $0x7a0] sm:$0xff] }
 0x214   :  { %1627 = vmatprep.subr.mxu1 %v3942_v9  ;;  %1576 = vmatprep.subr.mxu0 %v3943_v42  ;;  %v3989_v9 = vld [vmem:[#allocation7 + $0x200] sm:$0xff]  ;;  %v3990_v42 = vld [vmem:[#allocation7 + $0x788] sm:$0xff] }
 0x215   :  { %1628 = vmatpush1.msra.mxu1 %v3944_v46  ;;  %1577 = vmatpush2.msra.mxu0 %v3945_v10  ;;  %v3991_v46 = vld [vmem:[#allocation7 + $0x9e8] sm:$0xff]  ;;  %v3992_v10 = vld [vmem:[#allocation7 + $0x780] sm:$0xff] }
 0x216   :  { %1629 = vmatprep.subr.mxu1 %v3946_v11  ;;  %1578 = vmatprep.subr.mxu0 %v3947_v12  ;;  %v3993_v11 = vld [vmem:[#allocation7 + $0x768] sm:$0xff]  ;;  %v3994_v12 = vld [vmem:[#allocation7 + $0x760] sm:$0xff] }
 0x217   :  { %1630 = vmatpush1.msra.mxu1 %v3948_v13  ;;  %1579 = vmatpush2.msra.mxu0 %v3949_v14  ;;  %v3995_v14 = vld [vmem:[#allocation7 + $0x748] sm:$0xff] }
 0x218   :  { %1631 = vmatprep.subr.mxu1 %v3950_v15  ;;  %1580 = vmatprep.subr.mxu0 %v3951_v16  ;;  %v3996_v15 = vld [vmem:[#allocation7 + $0x740] sm:$0xff]  ;;  %v3997_v16 = vld [vmem:[#allocation7 + $0x728] sm:$0xff] }
 0x219   :  { %1632 = vmatpush1.msra.mxu1 %v3952_v17  ;;  %1581 = vmatpush2.msra.mxu0 %v3953_v19  ;;  %v3998_v17 = vld [vmem:[#allocation7 + $0x720] sm:$0xff] }
 0x21a   :  { %v883_v20 = vpop.f32.mrf.mxu1  ;;  %v960_v38 = vpop.f32.mrf.mxu0  ;;  %1633 = vmatprep.subr.mxu1 %v3954_v48  ;;  %1582 = vmatprep.subr.mxu0 %v3955_v21  ;;  %v4000_v21 = vld [vmem:[#allocation7 + $0x700] sm:$0xff] }
 0x21b   :  { %v4645_v36 = vadd.f32 %v960_v38, %v883_v20  ;;  %1634 = vmatpush1.msra.mxu1 %v3956_v53  ;;  %1583 = vmatpush2.msra.mxu0 %v3957_v22  ;;  %v3999_v38 = vld [vmem:[#allocation7 + $0x708] sm:$0xff] }
 0x21c   :  { %v885_v24 = vpop.f32.mrf.mxu1  ;;  %v962_v35 = vpop.f32.mrf.mxu0  ;;  %1635 = vmatprep.subr.mxu1 %v3958_v39  ;;  %1584 = vmatprep.subr.mxu0 %v3959_v40  ;;  %v4001_v22 = vld [vmem:[#allocation7 + $0x6e8] sm:$0xff]  ;;  %v4004_v40 = vld [vmem:[#allocation7 + $0x6c0] sm:$0xff] }
 0x21d   :  { %v4647_v41 = vadd.f32 %v962_v35, %v885_v24  ;;  %1636 = vmatpush1.msra.mxu1 %v3960_v44  ;;  %1585 = vmatpush2.msra.mxu0 %v3961_v60  ;;  %v4002_v35 = vld [vmem:[#allocation7 + $0x6e0] sm:$0xff]  ;;  %v4003_v39 = vld [vmem:[#allocation7 + $0x6c8] sm:$0xff] }
 0x21e   :  { %1637 = vmatprep.subr.mxu1 %v3962_v45  ;;  %1586 = vmatprep.subr.mxu0 %v3963_v50  ;;  %v4005_v44 = vld [vmem:[#allocation7 + $0x6a8] sm:$0xff]  ;;  %v4006_v60 = vld [vmem:[#allocation7 + $0x6a0] sm:$0xff] }
 0x21f   :  { %1638 = vmatpush1.msra.mxu1 %v3964_v51  ;;  %1587 = vmatpush2.msra.mxu0 %v3965_v37  ;;  %v966_v13 = vpop.f32.mrf.mxu0  ;;  %v4007_v45 = vld [vmem:[#allocation7 + $0x688] sm:$0xff]  ;;  %v4008_v51 = vld [vmem:[#allocation7 + $0x680] sm:$0xff] }
 0x220   :  { %1639 = vmatprep.subr.mxu1 %v3966_v43  ;;  %1588 = vmatprep.subr.mxu0 %v3967_v52  ;;  %v4009_v43 = vld [vmem:[#allocation7 + $0x668] sm:$0xff] }
 0x221   :  { %1640 = vmatpush1.msra.mxu1 %v3968_v58  ;;  %1589 = vmatpush2.msra.mxu0 %v3969_v28  ;;  %v968_v20 = vpop.f32.mrf.mxu0  ;;  %v4010_v58 = vld [vmem:[#allocation7 + $0x660] sm:$0xff] }
 0x222   :  { %1641 = vmatprep.subr.mxu1 %v3970_v18  ;;  %1590 = vmatprep.subr.mxu0 %v3971_v54  ;;  %v4011_v18 = vld [vmem:[#allocation7 + $0x648] sm:$0xff]  ;;  %v4012_v54 = vld [vmem:[#allocation7 + $0x640] sm:$0xff] }
 0x223   :  { %1642 = vmatpush1.msra.mxu1 %v3972_v55  ;;  %1591 = vmatpush2.msra.mxu0 %v3973_v56  ;;  %v4013_v56 = vld [vmem:[#allocation7 + $0x628] sm:$0xff] }
 0x224   :  { %1643 = vmatprep.subr.mxu1 %v3974_v59  ;;  %1592 = vmatprep.subr.mxu0 %v3975_v47  ;;  %v4014_v47 = vld [vmem:[#allocation7 + $0x620] sm:$0xff] }
 0x225   :  { %1644 = vmatpush1.msra.mxu1 %v3976_v57  ;;  %1593 = vmatpush2.msra.mxu0 %v3977_v23  ;;  %v4015_v57 = vld [vmem:[#allocation7 + $0x608] sm:$0xff] }
 0x226   :  { %1645 = vmatprep.subr.mxu1 %v3978_v49  ;;  %1594 = vmatprep.subr.mxu0 %v3979_v61  ;;  %v4016_v49 = vld [vmem:[#allocation7 + $0x600] sm:$0xff] }
 0x227   :  { %1646 = vmatpush2.msra.mxu1 %v3980_v62  ;;  %1595 = vmatpush2.msra.mxu0 %v3981_v63 }
 0x228   :  { %1647 = vmatprep.subr.mxu1 %v3982_v1  ;;  %1596 = vmatprep.subr.mxu0 %v3983_v3 }
 0x229   :  { %1648 = vmatpush2.msra.mxu1 %v3984_v4  ;;  %1597 = vmatpush2.msra.mxu0 %v3985_v5 }
 0x22a   :  { %1649 = vmatprep.subr.mxu1 %v3986_v6  ;;  %1598 = vmatprep.subr.mxu0 %v3987_v7 }
 0x22b   :  { %1650 = vmatpush2.msra.mxu1 %v3988_v8  ;;  %1599 = vmatpush2.msra.mxu0 %v3989_v9 }
 0x22c   :  { %1651 = vmatprep.subr.mxu1 %v3990_v42  ;;  %1690 = vmatprep.subr.mxu0 %v3991_v46 }
 0x22d   :  { %1652 = vmatpush2.msra.mxu1 %v3992_v10 }
 0x22e   :  { %1653 = vmatprep.subr.mxu1 %v3993_v11 }
 0x22f   :  { %1654 = vmatpush2.msra.mxu1 %v3994_v12 }
 0x230   :  { %1655 = vmatprep.subr.mxu1 %v3995_v14 }
 0x231   :  { %1656 = vmatpush2.msra.mxu1 %v3996_v15 }
 0x232   :  { %1657 = vmatprep.subr.mxu1 %v3997_v16 }
 0x233   :  { %1658 = vmatpush2.msra.mxu1 %v3998_v17 }
 0x234   :  { %v889_v19 = vpop.f32.mrf.mxu1  ;;  %1659 = vmatprep.subr.mxu1 %v3999_v38 }
 0x235   :  { %v967_v48 = vadd.f32 %v966_v13, %v889_v19  ;;  %1660 = vmatpush2.msra.mxu1 %v4000_v21 }
 0x236   :  { %v891_v53 = vpop.f32.mrf.mxu1  ;;  %1661 = vmatprep.subr.mxu1 %v4001_v22 }
 0x237   :  { %v969_v24 = vadd.f32 %v968_v20, %v891_v53  ;;  %1662 = vmatpush2.msra.mxu1 %v4002_v35 }
 0x238   :  { %1663 = vmatprep.subr.mxu1 %v4003_v39 }
 0x239   :  { %1664 = vmatpush2.msra.mxu1 %v4004_v40 }
 0x23a   :  { %1665 = vmatprep.subr.mxu1 %v4005_v44 }
 0x23b   :  { %1666 = vmatpush2.msra.mxu1 %v4006_v60 }
 0x23c   :  { %1667 = vmatprep.subr.mxu1 %v4007_v45 }
 0x23d   :  { %v1037_v50 = vpop.f32.mrf.mxu1  ;;  %1668 = vmatpush2.msra.mxu1 %v4008_v51 }
 0x23e   :  { %v4650_v37 = vadd.f32 %v1037_v50, %v4645_v36  ;;  %1669 = vmatprep.subr.mxu1 %v4009_v43  ;;  %v4018_v43 = vld [vmem:[#allocation7 + $0x9e0] sm:$0xff] }
 0x23f   :  { %v1039_v52 = vpop.f32.mrf.mxu1  ;;  %1670 = vmatpush2.msra.mxu1 %v4010_v58  ;;  %v4021_v58 = vld [vmem:[#allocation7 + $0x1d8] sm:$0xff] }
 0x240   :  { %v4653_v28 = vadd.f32 %v1039_v52, %v4647_v41  ;;  %1671 = vmatprep.subr.mxu1 %v4011_v18  ;;  %v4017_v41 = vld [vmem:[#allocation7 + $0x1f8] sm:$0xff]  ;;  %v4019_v52 = vld [vmem:[#allocation7 + $0x1f0] sm:$0xff]  ;;  %v4022_v18 = vld [vmem:[#allocation7 + $0x9c0] sm:$0xff] }
 0x241   :  { %1672 = vmatpush2.msra.mxu1 %v4012_v54  ;;  %v4023_v54 = vld [vmem:[#allocation7 + $0x1d0] sm:$0xff] }
 0x242   :  { %v1043_v55 = vpop.f32.mrf.mxu1  ;;  %1673 = vmatprep.subr.mxu1 %v4013_v56  ;;  %v4025_v56 = vld [vmem:[#allocation7 + $0x1b8] sm:$0xff] }
 0x243   :  { %v4655_v59 = vadd.f32 %v1043_v55, %v967_v48  ;;  %1674 = vmatpush2.msra.mxu1 %v4014_v47  ;;  %v4024_v55 = vld [vmem:[#allocation7 + $0x9a8] sm:$0xff]  ;;  %v4026_v47 = vld [vmem:[#allocation7 + $0x9a0] sm:$0xff] }
 0x244   :  { %v1045_v36 = vpop.f32.mrf.mxu1  ;;  %1675 = vmatprep.subr.mxu1 %v4015_v57  ;;  %v4028_v57 = vld [vmem:[#allocation7 + $0x988] sm:$0xff] }
 0x245   :  { %v4657_v23 = vadd.f32 %v1045_v36, %v969_v24  ;;  %1676 = vmatpush2.msra.mxu1 %v4016_v49  ;;  %v4027_v36 = vld [vmem:[#allocation7 + $0x1b0] sm:$0xff]  ;;  %v4029_v49 = vld [vmem:[#allocation7 + $0x198] sm:$0xff] }
 0x246   :  { %1767 = vmatprep.subr.mxu1 %v4017_v41  ;;  %v4030_v41 = vld [vmem:[#allocation7 + $0x980] sm:$0xff] }
 0x25f   :  { %v1114_v61 = vpop.f32.mrf.mxu0 }
 0x261   :  { %v1116_v62 = vpop.f32.mrf.mxu0 }
 0x264   :  { %v1120_v63 = vpop.f32.mrf.mxu0 }
 0x266   :  { %v1122_v1 = vpop.f32.mrf.mxu0 }
 0x281   :  { %v1191_v3 = vpop.f32.mrf.mxu1  ;;  %v1268_v4 = vpop.f32.mrf.mxu0 }
 0x282   :  { %v1192_v5 = vadd.f32 %v1191_v3, %v1114_v61  ;;  %v4031_v61 = vld [vmem:[#allocation7 + $0x190] sm:$0xff]  ;;  %v4034_v3 = vld [vmem:[#allocation7 + $0x960] sm:$0xff] }
 0x283   :  { %v1193_v6 = vpop.f32.mrf.mxu1  ;;  %v1270_v7 = vpop.f32.mrf.mxu0 }
 0x284   :  { %v4659_v8 = vadd.f32 %v1268_v4, %v1192_v5  ;;  %v1194_v9 = vadd.f32 %v1193_v6, %v1116_v62  ;;  %v4032_v62 = vld [vmem:[#allocation7 + $0x968] sm:$0xff]  ;;  %v4035_v4 = vld [vmem:[#allocation7 + $0x170] sm:$0xff]  ;;  %v4037_v6 = vld [vmem:[#allocation7 + $0x158] sm:$0xff] }
 0x285   :  { %v4036_v5 = vld [vmem:[#allocation7 + $0x948] sm:$0xff] }
 0x286   :  { %v4661_v42 = vadd.f32 %v1270_v7, %v1194_v9  ;;  %v4038_v7 = vld [vmem:[#allocation7 + $0x940] sm:$0xff]  ;;  %v4039_v9 = vld [vmem:[#allocation7 + $0x150] sm:$0xff] }
 0x287   :  { %v1197_v46 = vpop.f32.mrf.mxu1  ;;  %v1274_v10 = vpop.f32.mrf.mxu0 }
 0x288   :  { %v1198_v11 = vadd.f32 %v1197_v46, %v1120_v63  ;;  %v4040_v46 = vld [vmem:[#allocation7 + $0x928] sm:$0xff] }
 0x289   :  { %v1199_v12 = vpop.f32.mrf.mxu1  ;;  %v1276_v15 = vpop.f32.mrf.mxu0 }
 0x28a   :  { %v4663_v13 = vadd.f32 %v1274_v10, %v1198_v11  ;;  %v1200_v14 = vadd.f32 %v1199_v12, %v1122_v1  ;;  %v4033_v1 = vld [vmem:[#allocation7 + $0x178] sm:$0xff]  ;;  %v4042_v12 = vld [vmem:[#allocation7 + $0x920] sm:$0xff] }
 0x28b   :  { %v4041_v11 = vld [vmem:[#allocation7 + $0x138] sm:$0xff] }
 0x28c   :  { %v4665_v16 = vadd.f32 %v1276_v15, %v1200_v14  ;;  %v4043_v14 = vld [vmem:[#allocation7 + $0x130] sm:$0xff]  ;;  %v4044_v15 = vld [vmem:[#allocation7 + $0x908] sm:$0xff] }
 0x2a5   :  { %v1363_v17 = vpop.f32.mrf.mxu1  ;;  %v1440_v19 = vpop.f32.mrf.mxu0 }
 0x2a6   :  { %v4668_v20 = vadd.f32 %v1440_v19, %v4534_v31  ;;  %v4671_v38 = vadd.f32 %v1363_v17, %v4538_v32  ;;  %v4045_v17 = vld [vmem:[#allocation7 + $0x118] sm:$0xff]  ;;  %v4046_v19 = vld [vmem:[#allocation7 + $0x900] sm:$0xff] }
 0x2a7   :  { %v1365_v48 = vpop.f32.mrf.mxu1  ;;  %v1442_v21 = vpop.f32.mrf.mxu0 }
 0x2a8   :  { %v1366_v53 = vadd.f32 %v1365_v48, %v4542_v33  ;;  %v4675_v22 = vadd.f32 %v1442_v21, %v4547_v34  ;;  %v1528_v24 = vmax.f32 %v4668_v20, 0.0  ;;  %v1526_v60 = vmax.f32 %v4671_v38, 0.0  ;;  %v4047_v21 = vld [vmem:[#allocation7 + $0x110] sm:$0xff]  ;;  %v4152_v38 = vld [vmem:[#allocation7 + $0x7b8] sm:$0xff]  ;;  %v2083_v20 = vld [vmem:[#allocation8 + $0x1a8] sm:$0xff] }
 0x2a9   :  { %v1446_v35 = vpop.f32.mrf.mxu0 }
 0x2aa   :  { %v1527_v39 = vmax.f32 %v1366_v53, 0.0  ;;  %v1529_v40 = vmax.f32 %v4675_v22, 0.0  ;;  %v4680_v44 = vadd.f32 %v1446_v35, %v4534_v31  ;;  %v1369_v63 = vpop.f32.mrf.mxu1  ;;  %v4048_v53 = vld [vmem:[#allocation7 + $0x8e8] sm:$0xff]  ;;  %v4101_v22 = vld [vmem:[#allocation7 + $0x558] sm:$0xff] }
 0x2ab   :  { %v1448_v45 = vpop.f32.mrf.mxu0  ;;  %v4702_v35 = vadd.f32 %v1369_v63, %v4538_v32  ;;  %v4065_v63 = vld [vmem:[#allocation7 + $0x78] sm:$0xff] }
 0x2ac   :  { %v4684_v50 = vadd.f32 %v1448_v45, %v4547_v34  ;;  %1600 = vmatprep.mubr.f32.mxu0 %v1527_v39  ;;  %1677 = vmatprep.mubr.f32.mxu1 %v1529_v40  ;;  %v1533_v51 = vmax.f32 %v4680_v44, 0.0  ;;  %v4020_v34 = vld [vmem:[#allocation7 + $0x9c8] sm:$0xff]  ;;  %v1371_v10 = vpop.f32.mrf.mxu1  ;;  %v4050_v45 = vld [vmem:[#allocation7 + $0x8e0] sm:$0xff] }
 0x2ad   :  { %1601 = vmatmul.mubr.f32.vlgmr.msra.gmra.mxu0 %v1526_v60  ;;  %1678 = vmatmul.mubr.f32.vlgmr.msra.gmra.mxu1 %v1528_v24  ;;  %v4699_v48 = vadd.f32 %v1371_v10, %v4542_v33  ;;  %v4054_v33 = vld [vmem:[#allocation7 + $0x8c0] sm:$0xff]  ;;  %v1531_v32 = vmax.f32 %v4702_v35, 0.0  ;;  %v4072_v10 = vld [vmem:[#allocation7 + $0x828] sm:$0xff]  ;;  %v4161_v35 = vld [vmem:[#allocation7 + $0x978] sm:$0xff] }
 0x2ae   :  { %v1534_v31 = vmax.f32 %v4684_v50, 0.0  ;;  %1691 = vmatpush1.msra.mxu0 %v4018_v43  ;;  %1768 = vmatpush1.msra.mxu1 %v4019_v52  ;;  %v4051_v43 = vld [vmem:[#allocation7 + $0xf0] sm:$0xff]  ;;  %v4052_v52 = vld [vmem:[#allocation7 + $0x8c8] sm:$0xff]  ;;  %v2210_v50 = vld [vmem:[#allocation8 + $0x5a0] sm:$0xff] }
 0x2af   :  { %1692 = vmatprep.subr.mxu0 %v4020_v34  ;;  %1769 = vmatprep.subr.mxu1 %v4021_v58  ;;  %v1532_v34 = vmax.f32 %v4699_v48, 0.0  ;;  %v4053_v58 = vld [vmem:[#allocation7 + $0xd8] sm:$0xff]  ;;  %v4154_v48 = vld [vmem:[#allocation7 + $0x7b0] sm:$0xff]  ;;  %v2075_v44 = vld [vmem:[#allocation8 + $0x168] sm:$0xff] }
 0x2b0   :  { %1693 = vmatpush1.msra.mxu0 %v4022_v18  ;;  %1770 = vmatpush1.msra.mxu1 %v4023_v54  ;;  %v4055_v18 = vld [vmem:[#allocation7 + $0xd0] sm:$0xff]  ;;  %v4056_v54 = vld [vmem:[#allocation7 + $0x8a8] sm:$0xff] }
 0x2b1   :  { %1683 = vmatprep.mubr.f32.mxu1 %v1534_v31  ;;  %1694 = vmatprep.subr.mxu0 %v4024_v55  ;;  %v4057_v55 = vld [vmem:[#allocation7 + $0xb8] sm:$0xff] }
 0x2b2   :  { %1771 = vmatprep.subr.mxu1 %v4025_v56  ;;  %1684 = vmatmul.mubr.f32.gmra.mxu1 %v1533_v51  ;;  %v4058_v56 = vld [vmem:[#allocation7 + $0x8a0] sm:$0xff] }
 0x2b3   :  { %1695 = vmatpush1.msra.mxu0 %v4026_v47  ;;  %1772 = vmatpush1.msra.mxu1 %v4027_v36  ;;  %v4059_v47 = vld [vmem:[#allocation7 + $0xb0] sm:$0xff]  ;;  %v4060_v36 = vld [vmem:[#allocation7 + $0x888] sm:$0xff] }
 0x2b4   :  { %1696 = vmatprep.subr.mxu0 %v4028_v57  ;;  %1773 = vmatprep.subr.mxu1 %v4029_v49  ;;  %v4061_v57 = vld [vmem:[#allocation7 + $0x98] sm:$0xff]  ;;  %v4062_v49 = vld [vmem:[#allocation7 + $0x880] sm:$0xff] }
 0x2b5   :  { %1831 = vmatprep.mubr.f32.mxu1 %v1527_v39  ;;  %1697 = vmatpush1.msra.mxu0 %v4030_v41  ;;  %v4049_v39 = vld [vmem:[#allocation7 + $0xf8] sm:$0xff]  ;;  %v4063_v41 = vld [vmem:[#allocation7 + $0x90] sm:$0xff] }
 0x2b6   :  { %1774 = vmatpush1.msra.mxu1 %v4031_v61  ;;  %1698 = vmatprep.subr.mxu0 %v4032_v62  ;;  %v4064_v62 = vld [vmem:[#allocation7 + $0x868] sm:$0xff] }
 0x2b7   :  { %1775 = vmatprep.subr.mxu1 %v4033_v1  ;;  %1699 = vmatpush1.msra.mxu0 %v4034_v3  ;;  %v4066_v1 = vld [vmem:[#allocation7 + $0x860] sm:$0xff] }
 0x2b8   :  { %1776 = vmatpush1.msra.mxu1 %v4035_v4  ;;  %1700 = vmatprep.subr.mxu0 %v4036_v5  ;;  %v4067_v4 = vld [vmem:[#allocation7 + $0x70] sm:$0xff]  ;;  %v4068_v5 = vld [vmem:[#allocation7 + $0x848] sm:$0xff] }
 0x2b9   :  { %1777 = vmatprep.subr.mxu1 %v4037_v6  ;;  %1701 = vmatpush1.msra.mxu0 %v4038_v7  ;;  %v4069_v7 = vld [vmem:[#allocation7 + $0x58] sm:$0xff] }
 0x2ba   :  { %1778 = vmatpush1.msra.mxu1 %v4039_v9  ;;  %1702 = vmatprep.subr.mxu0 %v4040_v46  ;;  %v4070_v9 = vld [vmem:[#allocation7 + $0x840] sm:$0xff]  ;;  %v4071_v46 = vld [vmem:[#allocation7 + $0x50] sm:$0xff] }
 0x2bb   :  { %1779 = vmatprep.subr.mxu1 %v4041_v11  ;;  %1703 = vmatpush1.msra.mxu0 %v4042_v12  ;;  %v4073_v12 = vld [vmem:[#allocation7 + $0x38] sm:$0xff] }
 0x2bc   :  { %1780 = vmatpush1.msra.mxu1 %v4043_v14  ;;  %1704 = vmatprep.subr.mxu0 %v4044_v15  ;;  %v4074_v14 = vld [vmem:[#allocation7 + $0x820] sm:$0xff]  ;;  %v4075_v15 = vld [vmem:[#allocation7 + $0x30] sm:$0xff] }
 0x2bd   :  { %1781 = vmatprep.subr.mxu1 %v4045_v17  ;;  %1705 = vmatpush1.msra.mxu0 %v4046_v19  ;;  %v4076_v17 = vld [vmem:[#allocation7 + $0x808] sm:$0xff]  ;;  %v4077_v19 = vld [vmem:[#allocation7 + $0x18] sm:$0xff] }
 0x2be   :  { %1782 = vmatpush1.msra.mxu1 %v4047_v21  ;;  %1706 = vmatprep.subr.mxu0 %v4048_v53  ;;  %v4078_v21 = vld [vmem:[#allocation7 + $0x800] sm:$0xff] }
 0x2bf   :  { %1783 = vmatprep.subr.mxu1 %v4049_v39  ;;  %1707 = vmatpush1.msra.mxu0 %v4050_v45  ;;  %v4079_v39 = vld [vmem:[#allocation7 + $0x10] sm:$0xff]  ;;  %v4080_v45 = vld [vmem:[#allocation7 + $0x3f8] sm:$0xff] }
 0x2c0   :  { %1784 = vmatpush1.msra.mxu1 %v4051_v43  ;;  %1708 = vmatprep.subr.mxu0 %v4052_v52  ;;  %v4081_v43 = vld [vmem:[#allocation7 + $0x5f8] sm:$0xff]  ;;  %v4082_v52 = vld [vmem:[#allocation7 + $0x3f0] sm:$0xff] }
 0x2c1   :  { %1785 = vmatprep.subr.mxu1 %v4053_v58  ;;  %1709 = vmatpush1.msra.mxu0 %v4054_v33  ;;  %v4083_v58 = vld [vmem:[#allocation7 + $0x5f0] sm:$0xff]  ;;  %v4084_v33 = vld [vmem:[#allocation7 + $0x3d8] sm:$0xff] }
 0x2c2   :  { %1786 = vmatpush1.msra.mxu1 %v4055_v18  ;;  %1710 = vmatprep.subr.mxu0 %v4056_v54  ;;  %v4085_v18 = vld [vmem:[#allocation7 + $0x5d8] sm:$0xff]  ;;  %v4086_v54 = vld [vmem:[#allocation7 + $0x3d0] sm:$0xff] }
 0x2c3   :  { %1787 = vmatprep.subr.mxu1 %v4057_v55  ;;  %1711 = vmatpush1.msra.mxu0 %v4058_v56  ;;  %v4087_v55 = vld [vmem:[#allocation7 + $0x5d0] sm:$0xff]  ;;  %v4088_v56 = vld [vmem:[#allocation7 + $0x3b8] sm:$0xff] }
 0x2c4   :  { %1788 = vmatpush1.msra.mxu1 %v4059_v47  ;;  %1712 = vmatprep.subr.mxu0 %v4060_v36  ;;  %v4089_v47 = vld [vmem:[#allocation7 + $0x5b8] sm:$0xff]  ;;  %v4090_v36 = vld [vmem:[#allocation7 + $0x3b0] sm:$0xff] }
 0x2c5   :  { %1789 = vmatprep.subr.mxu1 %v4061_v57  ;;  %1606 = vmatprep.mubr.f32.mxu0 %v1532_v34  ;;  %v4091_v57 = vld [vmem:[#allocation7 + $0x5b0] sm:$0xff] }
 0x2c6   :  { %1713 = vmatpush1.msra.mxu0 %v4062_v49  ;;  %1790 = vmatpush1.msra.mxu1 %v4063_v41  ;;  %v3757_v61 = vpop.f32.mrf.mxu1  ;;  %v4092_v49 = vld [vmem:[#allocation7 + $0x398] sm:$0xff] }
 0x2c7   :  { %1607 = vmatmul.mubr.f32.gmra.mxu0 %v1531_v32  ;;  %1714 = vmatprep.subr.mxu0 %v4064_v62  ;;  %v4715_v53 = vadd.f32 %v3757_v61, %v4592_v2  ;;  %v4093_v41 = vld [vmem:[#allocation7 + $0x598] sm:$0xff]  ;;  %v4094_v61 = vld [vmem:[#allocation7 + $0x390] sm:$0xff] }
 0x2c8   :  { %1791 = vmatprep.subr.mxu1 %v4065_v63  ;;  %1715 = vmatpush1.msra.mxu0 %v4066_v1  ;;  %v1517_v3 = vpop.f32.mrf.mxu1  ;;  %v4095_v62 = vld [vmem:[#allocation7 + $0x590] sm:$0xff]  ;;  %v4096_v63 = vld [vmem:[#allocation7 + $0x378] sm:$0xff] }
 0x2c9   :  { %1792 = vmatpush1.msra.mxu1 %v4067_v4  ;;  %1716 = vmatprep.subr.mxu0 %v4068_v5  ;;  %v4711_v6 = vadd.f32 %v1517_v3, %v4592_v2  ;;  %v1535_v2 = vmax.f32 %v4715_v53, 0.0  ;;  %v4097_v1 = vld [vmem:[#allocation7 + $0x578] sm:$0xff]  ;;  %v4098_v3 = vld [vmem:[#allocation7 + $0x370] sm:$0xff]  ;;  %v2074_v53 = vld [vmem:[#allocation8 + $0x160] sm:$0xff] }
 0x2ca   :  { %1793 = vmatprep.subr.mxu1 %v4069_v7  ;;  %1717 = vmatpush1.msra.mxu0 %v4070_v9  ;;  %v4099_v4 = vld [vmem:[#allocation7 + $0x570] sm:$0xff]  ;;  %v4100_v5 = vld [vmem:[#allocation7 + $0x358] sm:$0xff] }
 0x2cb   :  { %1794 = vmatpush1.msra.mxu1 %v4071_v46  ;;  %1718 = vmatprep.subr.mxu0 %v4072_v10  ;;  %v1530_v11 = vmax.f32 %v4711_v6, 0.0  ;;  %v4103_v7 = vld [vmem:[#allocation7 + $0x550] sm:$0xff]  ;;  %v4104_v9 = vld [vmem:[#allocation7 + $0x338] sm:$0xff]  ;;  %v2082_v6 = vld [vmem:[#allocation8 + $0x1a0] sm:$0xff] }
 0x2cc   :  { %1795 = vmatprep.subr.mxu1 %v4073_v12  ;;  %1719 = vmatpush1.msra.mxu0 %v4074_v14  ;;  %v4105_v46 = vld [vmem:[#allocation7 + $0x538] sm:$0xff]  ;;  %v4106_v10 = vld [vmem:[#allocation7 + $0x330] sm:$0xff] }
 0x2cd   :  { %1796 = vmatpush1.msra.mxu1 %v4075_v15  ;;  %1720 = vmatprep.subr.mxu0 %v4076_v17  ;;  %v4107_v12 = vld [vmem:[#allocation7 + $0x530] sm:$0xff]  ;;  %v4108_v14 = vld [vmem:[#allocation7 + $0x318] sm:$0xff] }
 0x2ce   :  { %1797 = vmatprep.subr.mxu1 %v4077_v19  ;;  %1721 = vmatpush1.msra.mxu0 %v4078_v21  ;;  %v4109_v15 = vld [vmem:[#allocation7 + $0x518] sm:$0xff]  ;;  %v4110_v17 = vld [vmem:[#allocation7 + $0x310] sm:$0xff] }
 0x2cf   :  { %1754 = vmatprep.mubr.f32.mxu0 %v4415_v0  ;;  %1798 = vmatpush1.msra.mxu1 %v4079_v39  ;;  %v4111_v19 = vld [vmem:[#allocation7 + $0x510] sm:$0xff]  ;;  %v4112_v21 = vld [vmem:[#allocation7 + $0x2f8] sm:$0xff] }
 0x2d0   :  { %1755 = vmatmul.mubr.f32.vlgmr.msra.gmra.mxu0 %v1530_v11  ;;  %1799 = vmatprep.subr.mxu1 %v4080_v45  ;;  %v4113_v39 = vld [vmem:[#allocation7 + $0x4f8] sm:$0xff]  ;;  %v4114_v45 = vld [vmem:[#allocation7 + $0x2f0] sm:$0xff] }
 0x2d1   :  { %1844 = vmatprep.subr.mxu0 %v4081_v43  ;;  %1800 = vmatpush2.msra.mxu1 %v4082_v52  ;;  %v4115_v43 = vld [vmem:[#allocation7 + $0x4f0] sm:$0xff]  ;;  %v4116_v52 = vld [vmem:[#allocation7 + $0x2d8] sm:$0xff] }
 0x2d2   :  { %1845 = vmatpush1.msra.mxu0 %v4083_v58  ;;  %1801 = vmatprep.subr.mxu1 %v4084_v33  ;;  %v4117_v58 = vld [vmem:[#allocation7 + $0x4d8] sm:$0xff]  ;;  %v4118_v33 = vld [vmem:[#allocation7 + $0x2d0] sm:$0xff] }
 0x2d3   :  { %1846 = vmatprep.subr.mxu0 %v4085_v18  ;;  %1760 = vmatprep.mubr.f32.mxu0 %v4415_v0  ;;  %v4119_v18 = vld [vmem:[#allocation7 + $0x4d0] sm:$0xff] }
 0x2d4   :  { %1802 = vmatpush2.msra.mxu1 %v4086_v54  ;;  %1847 = vmatpush1.msra.mxu0 %v4087_v55  ;;  %v4120_v54 = vld [vmem:[#allocation7 + $0x2b8] sm:$0xff] }
 0x2d5   :  { %1761 = vmatmul.mubr.f32.gmra.mxu0 %v1535_v2  ;;  %1803 = vmatprep.subr.mxu1 %v4088_v56  ;;  %v4121_v55 = vld [vmem:[#allocation7 + $0x4b8] sm:$0xff]  ;;  %v4122_v56 = vld [vmem:[#allocation7 + $0x2b0] sm:$0xff] }
 0x2d6   :  { %1848 = vmatprep.subr.mxu0 %v4089_v47  ;;  %1804 = vmatpush2.msra.mxu1 %v4090_v36  ;;  %v4123_v47 = vld [vmem:[#allocation7 + $0x4b0] sm:$0xff]  ;;  %v4124_v36 = vld [vmem:[#allocation7 + $0x298] sm:$0xff] }
 0x2d7   :  { %1849 = vmatpush1.msra.mxu0 %v4091_v57  ;;  %1908 = vmatprep.mubr.f32.mxu0 %v1529_v40  ;;  %v4102_v40 = vld [vmem:[#allocation7 + $0x350] sm:$0xff]  ;;  %v4125_v57 = vld [vmem:[#allocation7 + $0x498] sm:$0xff] }
 0x2d8   :  { %1805 = vmatprep.subr.mxu1 %v4092_v49  ;;  %1850 = vmatprep.subr.mxu0 %v4093_v41  ;;  %v4126_v49 = vld [vmem:[#allocation7 + $0x290] sm:$0xff] }
 0x2d9   :  { %1806 = vmatpush2.msra.mxu1 %v4094_v61  ;;  %1851 = vmatpush1.msra.mxu0 %v4095_v62  ;;  %v4127_v41 = vld [vmem:[#allocation7 + $0x490] sm:$0xff]  ;;  %v4128_v61 = vld [vmem:[#allocation7 + $0x278] sm:$0xff] }
 0x2da   :  { %1807 = vmatprep.subr.mxu1 %v4096_v63  ;;  %1852 = vmatprep.subr.mxu0 %v4097_v1  ;;  %v4129_v62 = vld [vmem:[#allocation7 + $0x478] sm:$0xff]  ;;  %v4130_v63 = vld [vmem:[#allocation7 + $0x270] sm:$0xff] }
 0x2db   :  { %1808 = vmatpush2.msra.mxu1 %v4098_v3  ;;  %1853 = vmatpush1.msra.mxu0 %v4099_v4  ;;  %v4131_v1 = vld [vmem:[#allocation7 + $0x470] sm:$0xff]  ;;  %v4132_v3 = vld [vmem:[#allocation7 + $0x258] sm:$0xff] }
 0x2dc   :  { %1809 = vmatprep.subr.mxu1 %v4100_v5  ;;  %1854 = vmatprep.subr.mxu0 %v4101_v22  ;;  %v4133_v4 = vld [vmem:[#allocation7 + $0x458] sm:$0xff]  ;;  %v4134_v5 = vld [vmem:[#allocation7 + $0x250] sm:$0xff] }
 0x2dd   :  { %1810 = vmatpush2.msra.mxu1 %v4102_v40  ;;  %1855 = vmatpush1.msra.mxu0 %v4103_v7  ;;  %v4135_v22 = vld [vmem:[#allocation7 + $0x450] sm:$0xff]  ;;  %v4136_v40 = vld [vmem:[#allocation7 + $0x238] sm:$0xff] }
 0x2de   :  { %1811 = vmatprep.subr.mxu1 %v4104_v9  ;;  %1856 = vmatprep.subr.mxu0 %v4105_v46  ;;  %v4137_v7 = vld [vmem:[#allocation7 + $0x438] sm:$0xff]  ;;  %v4138_v9 = vld [vmem:[#allocation7 + $0x230] sm:$0xff] }
 0x2df   :  { %1812 = vmatpush2.msra.mxu1 %v4106_v10  ;;  %1857 = vmatpush1.msra.mxu0 %v4107_v12  ;;  %v4139_v46 = vld [vmem:[#allocation7 + $0x430] sm:$0xff]  ;;  %v4140_v10 = vld [vmem:[#allocation7 + $0x218] sm:$0xff] }
 0x2e0   :  { %1813 = vmatprep.subr.mxu1 %v4108_v14  ;;  %1858 = vmatprep.subr.mxu0 %v4109_v15  ;;  %v4141_v12 = vld [vmem:[#allocation7 + $0x418] sm:$0xff]  ;;  %v4142_v14 = vld [vmem:[#allocation7 + $0x210] sm:$0xff] }
 0x2e1   :  { %1814 = vmatpush2.msra.mxu1 %v4110_v17  ;;  %1859 = vmatpush1.msra.mxu0 %v4111_v19  ;;  %v4143_v15 = vld [vmem:[#allocation7 + $0x410] sm:$0xff]  ;;  %v4144_v17 = vld [vmem:[#allocation7 + $0x7f8] sm:$0xff] }
 0x2e2   :  { %1815 = vmatprep.subr.mxu1 %v4112_v21  ;;  %1860 = vmatprep.subr.mxu0 %v4113_v39  ;;  %v4145_v19 = vld [vmem:[#allocation7 + $0x9f8] sm:$0xff]  ;;  %v4146_v21 = vld [vmem:[#allocation7 + $0x7f0] sm:$0xff] }
 0x2e3   :  { %1816 = vmatpush2.msra.mxu1 %v4114_v45  ;;  %1861 = vmatpush1.msra.mxu0 %v4115_v43  ;;  %v4147_v39 = vld [vmem:[#allocation7 + $0x9f0] sm:$0xff]  ;;  %v4148_v45 = vld [vmem:[#allocation7 + $0x7d8] sm:$0xff] }
 0x2e4   :  { %1817 = vmatprep.subr.mxu1 %v4116_v52  ;;  %1862 = vmatprep.subr.mxu0 %v4117_v58  ;;  %v4149_v43 = vld [vmem:[#allocation7 + $0x9d8] sm:$0xff]  ;;  %v4150_v52 = vld [vmem:[#allocation7 + $0x7d0] sm:$0xff] }
 0x2e5   :  { %1818 = vmatpush2.msra.mxu1 %v4118_v33  ;;  %1863 = vmatpush1.msra.mxu0 %v4119_v18  ;;  %v4151_v58 = vld [vmem:[#allocation7 + $0x9d0] sm:$0xff]  ;;  %v4156_v33 = vld [vmem:[#allocation7 + $0x798] sm:$0xff] }
 0x2e6   :  { %1819 = vmatprep.subr.mxu1 %v4120_v54  ;;  %1864 = vmatprep.subr.mxu0 %v4121_v55  ;;  %v4157_v18 = vld [vmem:[#allocation7 + $0x998] sm:$0xff]  ;;  %v4158_v54 = vld [vmem:[#allocation7 + $0x790] sm:$0xff] }
 0x2e7   :  { %1820 = vmatpush2.msra.mxu1 %v4122_v56  ;;  %1865 = vmatpush1.msra.mxu0 %v4123_v47  ;;  %v4159_v55 = vld [vmem:[#allocation7 + $0x990] sm:$0xff]  ;;  %v4160_v56 = vld [vmem:[#allocation7 + $0x778] sm:$0xff] }
 0x2e8   :  { %1821 = vmatprep.subr.mxu1 %v4124_v36  ;;  %1866 = vmatprep.subr.mxu0 %v4125_v57  ;;  %v4163_v47 = vld [vmem:[#allocation7 + $0x970] sm:$0xff]  ;;  %v4164_v36 = vld [vmem:[#allocation7 + $0x758] sm:$0xff] }
 0x2e9   :  { %1822 = vmatpush2.msra.mxu1 %v4126_v49  ;;  %1867 = vmatpush1.msra.mxu0 %v4127_v41  ;;  %v4165_v57 = vld [vmem:[#allocation7 + $0x958] sm:$0xff]  ;;  %v4166_v49 = vld [vmem:[#allocation7 + $0x750] sm:$0xff] }
 0x2ea   :  { %1823 = vmatprep.subr.mxu1 %v4128_v61  ;;  %1868 = vmatprep.subr.mxu0 %v4129_v62  ;;  %v4167_v41 = vld [vmem:[#allocation7 + $0x950] sm:$0xff]  ;;  %v4168_v61 = vld [vmem:[#allocation7 + $0x738] sm:$0xff] }
 0x2eb   :  { %1824 = vmatpush2.msra.mxu1 %v4130_v63  ;;  %1869 = vmatpush1.msra.mxu0 %v4131_v1  ;;  %v4169_v62 = vld [vmem:[#allocation7 + $0x938] sm:$0xff]  ;;  %v4170_v63 = vld [vmem:[#allocation7 + $0x730] sm:$0xff] }
 0x2ec   :  { %1825 = vmatprep.subr.mxu1 %v4132_v3  ;;  %1870 = vmatprep.subr.mxu0 %v4133_v4  ;;  %v4171_v1 = vld [vmem:[#allocation7 + $0x930] sm:$0xff]  ;;  %v4172_v3 = vld [vmem:[#allocation7 + $0x718] sm:$0xff] }
 0x2ed   :  { %1826 = vmatpush2.msra.mxu1 %v4134_v5  ;;  %1871 = vmatpush1.msra.mxu0 %v4135_v22  ;;  %v4173_v4 = vld [vmem:[#allocation7 + $0x918] sm:$0xff]  ;;  %v4174_v5 = vld [vmem:[#allocation7 + $0x710] sm:$0xff] }
 0x2ee   :  { %1827 = vmatprep.subr.mxu1 %v4136_v40  ;;  %1872 = vmatprep.subr.mxu0 %v4137_v7  ;;  %v4175_v22 = vld [vmem:[#allocation7 + $0x910] sm:$0xff]  ;;  %v4176_v40 = vld [vmem:[#allocation7 + $0x6f8] sm:$0xff] }
 0x2ef   :  { %1828 = vmatpush2.msra.mxu1 %v4138_v9  ;;  %1873 = vmatpush1.msra.mxu0 %v4139_v46  ;;  %v4177_v7 = vld [vmem:[#allocation7 + $0x8f8] sm:$0xff]  ;;  %v4178_v9 = vld [vmem:[#allocation7 + $0x6f0] sm:$0xff] }
 0x2f0   :  { %1829 = vmatprep.subr.mxu1 %v4140_v10  ;;  %1874 = vmatprep.subr.mxu0 %v4141_v12  ;;  %v4179_v46 = vld [vmem:[#allocation7 + $0x8f0] sm:$0xff]  ;;  %v4180_v10 = vld [vmem:[#allocation7 + $0x6d8] sm:$0xff] }
 0x2f1   :  { %1830 = vmatpush2.msra.mxu1 %v4142_v14  ;;  %1875 = vmatpush1.msra.mxu0 %v4143_v15  ;;  %v4181_v12 = vld [vmem:[#allocation7 + $0x8d8] sm:$0xff]  ;;  %v4182_v14 = vld [vmem:[#allocation7 + $0x6d0] sm:$0xff] }
 0x2f2   :  { %1832 = vmatmul.mubr.f32.vlgmr.msra.gmra.mxu1 %v1526_v60  ;;  %1876 = vmatprep.subr.mxu0 %v4144_v17  ;;  %v4153_v60 = vld [vmem:[#allocation7 + $0x9b8] sm:$0xff]  ;;  %v4183_v15 = vld [vmem:[#allocation7 + $0x8d0] sm:$0xff] }
 0x2f3   :  { %1921 = vmatprep.subr.mxu1 %v4145_v19  ;;  %1837 = vmatprep.mubr.f32.mxu1 %v1532_v34  ;;  %v4155_v34 = vld [vmem:[#allocation7 + $0x9b0] sm:$0xff]  ;;  %v4184_v17 = vld [vmem:[#allocation7 + $0x6b8] sm:$0xff] }
 0x2f4   :  { %1877 = vmatpush2.msra.mxu0 %v4146_v21  ;;  %1922 = vmatpush1.msra.mxu1 %v4147_v39  ;;  %v4185_v19 = vld [vmem:[#allocation7 + $0x8b8] sm:$0xff]  ;;  %v4186_v21 = vld [vmem:[#allocation7 + $0x6b0] sm:$0xff] }
 0x2f5   :  { %1878 = vmatprep.subr.mxu0 %v4148_v45  ;;  %1923 = vmatprep.subr.mxu1 %v4149_v43  ;;  %v4187_v39 = vld [vmem:[#allocation7 + $0x8b0] sm:$0xff]  ;;  %v4188_v45 = vld [vmem:[#allocation7 + $0x698] sm:$0xff] }
 0x2f6   :  { %1879 = vmatpush2.msra.mxu0 %v4150_v52  ;;  %1924 = vmatpush1.msra.mxu1 %v4151_v58  ;;  %v4189_v43 = vld [vmem:[#allocation7 + $0x898] sm:$0xff]  ;;  %v4190_v52 = vld [vmem:[#allocation7 + $0x690] sm:$0xff] }
 0x2f7   :  { %1838 = vmatmul.mubr.f32.gmra.mxu1 %v1531_v32  ;;  %1880 = vmatprep.subr.mxu0 %v4152_v38  ;;  %v4162_v32 = vld [vmem:[#allocation7 + $0x770] sm:$0xff]  ;;  %v4192_v38 = vld [vmem:[#allocation7 + $0x678] sm:$0xff] }
 0x2f8   :  { %1925 = vmatprep.subr.mxu1 %v4153_v60  ;;  %1881 = vmatpush2.msra.mxu0 %v4154_v48  ;;  %v4191_v58 = vld [vmem:[#allocation7 + $0x890] sm:$0xff]  ;;  %v4193_v60 = vld [vmem:[#allocation7 + $0x878] sm:$0xff] }
 0x2f9   :  { %1926 = vmatpush1.msra.mxu1 %v4155_v34  ;;  %1882 = vmatprep.subr.mxu0 %v4156_v33  ;;  %v4194_v48 = vld [vmem:[#allocation7 + $0x670] sm:$0xff]  ;;  %v4196_v33 = vld [vmem:[#allocation7 + $0x658] sm:$0xff] }
 0x2fa   :  { %1927 = vmatprep.subr.mxu1 %v4157_v18  ;;  %1883 = vmatpush2.msra.mxu0 %v4158_v54  ;;  %v4195_v34 = vld [vmem:[#allocation7 + $0x870] sm:$0xff]  ;;  %v4197_v18 = vld [vmem:[#allocation7 + $0x858] sm:$0xff] }
 0x2fb   :  { %1928 = vmatpush1.msra.mxu1 %v4159_v55  ;;  %1884 = vmatprep.subr.mxu0 %v4160_v56  ;;  %v4198_v54 = vld [vmem:[#allocation7 + $0x650] sm:$0xff]  ;;  %v4200_v56 = vld [vmem:[#allocation7 + $0x638] sm:$0xff] }
 0x2fc   :  { %1929 = vmatprep.subr.mxu1 %v4161_v35  ;;  %1885 = vmatpush2.msra.mxu0 %v4162_v32  ;;  %v4199_v55 = vld [vmem:[#allocation7 + $0x850] sm:$0xff]  ;;  %v4201_v35 = vld [vmem:[#allocation7 + $0x838] sm:$0xff] }
 0x2fd   :  { %1930 = vmatpush1.msra.mxu1 %v4163_v47  ;;  %1886 = vmatprep.subr.mxu0 %v4164_v36  ;;  %v4202_v32 = vld [vmem:[#allocation7 + $0x630] sm:$0xff]  ;;  %v4204_v36 = vld [vmem:[#allocation7 + $0x618] sm:$0xff] }
 0x2fe   :  { %1931 = vmatprep.subr.mxu1 %v4165_v57  ;;  %1887 = vmatpush2.msra.mxu0 %v4166_v49  ;;  %v4203_v47 = vld [vmem:[#allocation7 + $0x830] sm:$0xff]  ;;  %v4205_v57 = vld [vmem:[#allocation7 + $0x818] sm:$0xff] }
 0x2ff   :  { %1932 = vmatpush1.msra.mxu1 %v4167_v41  ;;  %1888 = vmatprep.subr.mxu0 %v4168_v61  ;;  %v4206_v49 = vld [vmem:[#allocation7 + $0x610] sm:$0xff]  ;;  %v2091_v41 = vld [vmem:[#allocation8 + $0x1e8] sm:$0xff] }
 0x300   :  { %1933 = vmatprep.subr.mxu1 %v4169_v62  ;;  %1889 = vmatpush2.msra.mxu0 %v4170_v63  ;;  %v2219_v61 = vld [vmem:[#allocation8 + $0x5e8] sm:$0xff]  ;;  %v4207_v62 = vld [vmem:[#allocation7 + $0x810] sm:$0xff]  ;;  %v2090_v63 = vld [vmem:[#allocation8 + $0x1e0] sm:$0xff] }
 0x301   :  { %1934 = vmatpush1.msra.mxu1 %v4171_v1  ;;  %1890 = vmatprep.subr.mxu0 %v4172_v3  ;;  %v2218_v1 = vld [vmem:[#allocation8 + $0x5e0] sm:$0xff]  ;;  %v2087_v3 = vld [vmem:[#allocation8 + $0x1c8] sm:$0xff] }
 0x302   :  { %1935 = vmatprep.subr.mxu1 %v4173_v4  ;;  %1891 = vmatpush2.msra.mxu0 %v4174_v5  ;;  %v2215_v4 = vld [vmem:[#allocation8 + $0x5c8] sm:$0xff]  ;;  %v2086_v5 = vld [vmem:[#allocation8 + $0x1c0] sm:$0xff] }
 0x303   :  { %1936 = vmatpush1.msra.mxu1 %v4175_v22  ;;  %1892 = vmatprep.subr.mxu0 %v4176_v40  ;;  %v2214_v22 = vld [vmem:[#allocation8 + $0x5c0] sm:$0xff]  ;;  %v2079_v40 = vld [vmem:[#allocation8 + $0x188] sm:$0xff] }
 0x304   :  { %1937 = vmatprep.subr.mxu1 %v4177_v7  ;;  %1893 = vmatpush2.msra.mxu0 %v4178_v9  ;;  %v2078_v7 = vld [vmem:[#allocation8 + $0x180] sm:$0xff] }
 0x305   :  { %1938 = vmatpush1.msra.mxu1 %v4179_v46  ;;  %1894 = vmatprep.subr.mxu0 %v4180_v10  ;;  %v2206_v9 = vld [vmem:[#allocation8 + $0x580] sm:$0xff]  ;;  %v2071_v46 = vld [vmem:[#allocation8 + $0x148] sm:$0xff] }
 0x306   :  { %1939 = vmatprep.subr.mxu1 %v4181_v12  ;;  %1895 = vmatpush2.msra.mxu0 %v4182_v14  ;;  %v2199_v10 = vld [vmem:[#allocation8 + $0x548] sm:$0xff]  ;;  %v2070_v12 = vld [vmem:[#allocation8 + $0x140] sm:$0xff] }
 0x307   :  { %1940 = vmatpush1.msra.mxu1 %v4183_v15  ;;  %1896 = vmatprep.subr.mxu0 %v4184_v17  ;;  %v2198_v14 = vld [vmem:[#allocation8 + $0x540] sm:$0xff]  ;;  %v2067_v15 = vld [vmem:[#allocation8 + $0x128] sm:$0xff] }
 0x308   :  { %1941 = vmatprep.subr.mxu1 %v4185_v19  ;;  %1897 = vmatpush2.msra.mxu0 %v4186_v21  ;;  %v2195_v17 = vld [vmem:[#allocation8 + $0x528] sm:$0xff]  ;;  %v2066_v19 = vld [vmem:[#allocation8 + $0x120] sm:$0xff] }
 0x309   :  { %1942 = vmatpush1.msra.mxu1 %v4187_v39  ;;  %1898 = vmatprep.subr.mxu0 %v4188_v45  ;;  %v2194_v21 = vld [vmem:[#allocation8 + $0x520] sm:$0xff]  ;;  %v2063_v39 = vld [vmem:[#allocation8 + $0x108] sm:$0xff] }
 0x30a   :  { %1943 = vmatprep.subr.mxu1 %v4189_v43  ;;  %1899 = vmatpush2.msra.mxu0 %v4190_v52  ;;  %v2191_v45 = vld [vmem:[#allocation8 + $0x508] sm:$0xff]  ;;  %v2062_v43 = vld [vmem:[#allocation8 + $0x100] sm:$0xff] }
 0x30b   :  { %1944 = vmatpush1.msra.mxu1 %v4191_v58  ;;  %1900 = vmatprep.subr.mxu0 %v4192_v38  ;;  %v2190_v52 = vld [vmem:[#allocation8 + $0x500] sm:$0xff]  ;;  %v2059_v58 = vld [vmem:[#allocation8 + $0xe8] sm:$0xff] }
 0x30c   :  { %1945 = vmatprep.subr.mxu1 %v4193_v60  ;;  %1901 = vmatpush2.msra.mxu0 %v4194_v48  ;;  %v2187_v38 = vld [vmem:[#allocation8 + $0x4e8] sm:$0xff]  ;;  %v2058_v60 = vld [vmem:[#allocation8 + $0xe0] sm:$0xff] }
 0x30d   :  { %1946 = vmatpush1.msra.mxu1 %v4195_v34  ;;  %1902 = vmatprep.subr.mxu0 %v4196_v33  ;;  %v2186_v48 = vld [vmem:[#allocation8 + $0x4e0] sm:$0xff]  ;;  %v2055_v34 = vld [vmem:[#allocation8 + $0xc8] sm:$0xff] }
 0x30e   :  { %1947 = vmatprep.subr.mxu1 %v4197_v18  ;;  %1903 = vmatpush2.msra.mxu0 %v4198_v54  ;;  %v2183_v33 = vld [vmem:[#allocation8 + $0x4c8] sm:$0xff]  ;;  %v2054_v18 = vld [vmem:[#allocation8 + $0xc0] sm:$0xff] }
 0x30f   :  { %1948 = vmatpush1.msra.mxu1 %v4199_v55  ;;  %1904 = vmatprep.subr.mxu0 %v4200_v56  ;;  %v2182_v54 = vld [vmem:[#allocation8 + $0x4c0] sm:$0xff]  ;;  %v2051_v55 = vld [vmem:[#allocation8 + $0xa8] sm:$0xff] }
 0x310   :  { %1949 = vmatprep.subr.mxu1 %v4201_v35  ;;  %1905 = vmatpush2.msra.mxu0 %v4202_v32  ;;  %v2179_v56 = vld [vmem:[#allocation8 + $0x4a8] sm:$0xff]  ;;  %v2050_v35 = vld [vmem:[#allocation8 + $0xa0] sm:$0xff] }
 0x311   :  { %1950 = vmatpush1.msra.mxu1 %v4203_v47  ;;  %1906 = vmatprep.subr.mxu0 %v4204_v36  ;;  %v2178_v32 = vld [vmem:[#allocation8 + $0x4a0] sm:$0xff]  ;;  %v2047_v47 = vld [vmem:[#allocation8 + $0x88] sm:$0xff] }
 0x312   :  { %1951 = vmatprep.subr.mxu1 %v4205_v57  ;;  %1907 = vmatpush2.msra.mxu0 %v4206_v49  ;;  %v2175_v36 = vld [vmem:[#allocation8 + $0x488] sm:$0xff]  ;;  %v2046_v57 = vld [vmem:[#allocation8 + $0x80] sm:$0xff] }
 0x313   :  { %1952 = vmatpush1.msra.mxu1 %v4207_v62  ;;  %1985 = vmatprep.mubr.f32.mxu1 %v4415_v0  ;;  %v2174_v49 = vld [vmem:[#allocation8 + $0x480] sm:$0xff] }
 0x314   :  { %1909 = vmatmul.mubr.f32.vlgmr.msra.gmra.mxu0 %v1528_v24  ;;  %1986 = vmatmul.mubr.f32.vlgmr.msra.gmra.mxu1 %v1530_v11  ;;  %v2211_v24 = vld [vmem:[#allocation8 + $0x5a8] sm:$0xff]  ;;  %v1280_v11 = vmax.f32 %v4653_v28, 0.0  ;;  %v2042_v62 = vld [vmem:[#allocation8 + $0x60] sm:$0xff]  ;;  %v2060_v28 = vld [vmem:[#allocation8 + $0xf0] sm:$0xff] }
 0x315   :  { %2564 = vmatprep.subr.mxu0 %v2091_v41  ;;  %2641 = vmatprep.subr.mxu1 %v2219_v61  ;;  %v2043_v41 = vld [vmem:[#allocation8 + $0x68] sm:$0xff] }
 0x316   :  { %1914 = vmatprep.mubr.f32.mxu0 %v1534_v31  ;;  %2565 = vmatpush1.msra.mxu0 %v2090_v63  ;;  %v1282_v31 = vmax.f32 %v4661_v42, 0.0  ;;  %v2171_v61 = vld [vmem:[#allocation8 + $0x468] sm:$0xff]  ;;  %v2170_v63 = vld [vmem:[#allocation8 + $0x460] sm:$0xff]  ;;  %v2196_v42 = vld [vmem:[#allocation8 + $0x530] sm:$0xff] }
 0x317   :  { %2642 = vmatpush1.msra.mxu1 %v2218_v1  ;;  %2566 = vmatprep.subr.mxu0 %v2087_v3  ;;  %v2039_v1 = vld [vmem:[#allocation8 + $0x48] sm:$0xff] }
 0x318   :  { %2643 = vmatprep.subr.mxu1 %v2215_v4  ;;  %1991 = vmatprep.mubr.f32.mxu1 %v4415_v0  ;;  %v2207_v0 = vld [vmem:[#allocation8 + $0x588] sm:$0xff]  ;;  %v2038_v4 = vld [vmem:[#allocation8 + $0x40] sm:$0xff] }
 0x319   :  { %2567 = vmatpush1.msra.mxu0 %v2086_v5  ;;  %2644 = vmatpush1.msra.mxu1 %v2214_v22  ;;  %v2167_v3 = vld [vmem:[#allocation8 + $0x448] sm:$0xff]  ;;  %v2166_v5 = vld [vmem:[#allocation8 + $0x440] sm:$0xff] }
 0x31a   :  { %1915 = vmatmul.mubr.f32.gmra.mxu0 %v1533_v51  ;;  %1992 = vmatmul.mubr.f32.gmra.mxu1 %v1535_v2  ;;  %v2203_v51 = vld [vmem:[#allocation8 + $0x568] sm:$0xff]  ;;  %v2202_v2 = vld [vmem:[#allocation8 + $0x560] sm:$0xff] }
 0x31b   :  { %2568 = vmatprep.subr.mxu0 %v2083_v20  ;;  %2645 = vmatprep.subr.mxu1 %v2211_v24  ;;  %v2035_v22 = vld [vmem:[#allocation8 + $0x28] sm:$0xff]  ;;  %v2034_v24 = vld [vmem:[#allocation8 + $0x20] sm:$0xff] }
 0x31c   :  { %2569 = vmatpush1.msra.mxu0 %v2082_v6  ;;  %2628 = vmatprep.mubr.f32.mxu0 %v1280_v11  ;;  %v2163_v20 = vld [vmem:[#allocation8 + $0x428] sm:$0xff]  ;;  %v2162_v6 = vld [vmem:[#allocation8 + $0x420] sm:$0xff] }
 0x31d   :  { %2646 = vmatpush1.msra.mxu1 %v2210_v50  ;;  %2705 = vmatprep.mubr.f32.mxu1 %v1282_v31  ;;  %v2031_v50 = vld [vmem:[#allocation8 + $0x8] sm:$0xff] }
 0x31e   :  { %2570 = vmatprep.subr.mxu0 %v2079_v40  ;;  %2647 = vmatprep.subr.mxu1 %v2207_v0  ;;  %v2159_v40 = vld [vmem:[#allocation8 + $0x408] sm:$0xff]  ;;  %v2030_v0 = vld [vmem:[#allocation8] sm:$0xff] }
 0x31f   :  { %2571 = vmatpush1.msra.mxu0 %v2078_v7  ;;  %2648 = vmatpush1.msra.mxu1 %v2206_v9  ;;  %v2158_v7 = vld [vmem:[#allocation8 + $0x400] sm:$0xff]  ;;  %v2155_v9 = vld [vmem:[#allocation8 + $0x3e8] sm:$0xff] }
 0x320   :  { %2572 = vmatprep.subr.mxu0 %v2075_v44  ;;  %2649 = vmatprep.subr.mxu1 %v2203_v51  ;;  %v2283_v44 = vld [vmem:[#allocation8 + $0x7e8] sm:$0xff]  ;;  %v2154_v51 = vld [vmem:[#allocation8 + $0x3e0] sm:$0xff] }
 0x321   :  { %2573 = vmatpush1.msra.mxu0 %v2074_v53  ;;  %2650 = vmatpush1.msra.mxu1 %v2202_v2  ;;  %v2282_v53 = vld [vmem:[#allocation8 + $0x7e0] sm:$0xff]  ;;  %v2151_v2 = vld [vmem:[#allocation8 + $0x3c8] sm:$0xff] }
 0x322   :  { %2574 = vmatprep.subr.mxu0 %v2071_v46  ;;  %2651 = vmatprep.subr.mxu1 %v2199_v10  ;;  %v2279_v46 = vld [vmem:[#allocation8 + $0x7c8] sm:$0xff]  ;;  %v2150_v10 = vld [vmem:[#allocation8 + $0x3c0] sm:$0xff] }
 0x323   :  { %2575 = vmatpush1.msra.mxu0 %v2070_v12  ;;  %2652 = vmatpush1.msra.mxu1 %v2198_v14  ;;  %v2278_v12 = vld [vmem:[#allocation8 + $0x7c0] sm:$0xff]  ;;  %v2147_v14 = vld [vmem:[#allocation8 + $0x3a8] sm:$0xff] }
 0x324   :  { %2576 = vmatprep.subr.mxu0 %v2067_v15  ;;  %2653 = vmatprep.subr.mxu1 %v2195_v17  ;;  %v2275_v15 = vld [vmem:[#allocation8 + $0x7a8] sm:$0xff]  ;;  %v2146_v17 = vld [vmem:[#allocation8 + $0x3a0] sm:$0xff] }
 0x325   :  { %2577 = vmatpush1.msra.mxu0 %v2066_v19  ;;  %2654 = vmatpush1.msra.mxu1 %v2194_v21  ;;  %v2274_v19 = vld [vmem:[#allocation8 + $0x7a0] sm:$0xff]  ;;  %v2143_v21 = vld [vmem:[#allocation8 + $0x388] sm:$0xff] }
 0x326   :  { %2578 = vmatprep.subr.mxu0 %v2063_v39  ;;  %2655 = vmatprep.subr.mxu1 %v2191_v45  ;;  %v2271_v39 = vld [vmem:[#allocation8 + $0x788] sm:$0xff]  ;;  %v2142_v45 = vld [vmem:[#allocation8 + $0x380] sm:$0xff] }
 0x327   :  { %2579 = vmatpush1.msra.mxu0 %v2062_v43  ;;  %2656 = vmatpush1.msra.mxu1 %v2190_v52  ;;  %v2270_v43 = vld [vmem:[#allocation8 + $0x780] sm:$0xff]  ;;  %v2139_v52 = vld [vmem:[#allocation8 + $0x368] sm:$0xff] }
 0x328   :  { %2580 = vmatprep.subr.mxu0 %v2059_v58  ;;  %2657 = vmatprep.subr.mxu1 %v2187_v38  ;;  %v2267_v58 = vld [vmem:[#allocation8 + $0x768] sm:$0xff]  ;;  %v2138_v38 = vld [vmem:[#allocation8 + $0x360] sm:$0xff] }
 0x329   :  { %2581 = vmatpush1.msra.mxu0 %v2058_v60  ;;  %2658 = vmatpush1.msra.mxu1 %v2186_v48  ;;  %v2266_v60 = vld [vmem:[#allocation8 + $0x760] sm:$0xff]  ;;  %v2135_v48 = vld [vmem:[#allocation8 + $0x348] sm:$0xff] }
 0x32a   :  { %2582 = vmatprep.subr.mxu0 %v2055_v34  ;;  %2659 = vmatprep.subr.mxu1 %v2183_v33  ;;  %v2263_v34 = vld [vmem:[#allocation8 + $0x748] sm:$0xff]  ;;  %v2134_v33 = vld [vmem:[#allocation8 + $0x340] sm:$0xff] }
 0x32b   :  { %2583 = vmatpush1.msra.mxu0 %v2054_v18  ;;  %2660 = vmatpush1.msra.mxu1 %v2182_v54  ;;  %v2262_v18 = vld [vmem:[#allocation8 + $0x740] sm:$0xff]  ;;  %v2131_v54 = vld [vmem:[#allocation8 + $0x328] sm:$0xff] }
 0x32c   :  { %2584 = vmatprep.subr.mxu0 %v2051_v55  ;;  %2661 = vmatprep.subr.mxu1 %v2179_v56  ;;  %v2259_v55 = vld [vmem:[#allocation8 + $0x728] sm:$0xff]  ;;  %v2130_v56 = vld [vmem:[#allocation8 + $0x320] sm:$0xff] }
 0x32d   :  { %2585 = vmatpush1.msra.mxu0 %v2050_v35  ;;  %2662 = vmatpush1.msra.mxu1 %v2178_v32  ;;  %v2258_v35 = vld [vmem:[#allocation8 + $0x720] sm:$0xff]  ;;  %v2127_v32 = vld [vmem:[#allocation8 + $0x308] sm:$0xff] }
 0x32e   :  { %2586 = vmatprep.subr.mxu0 %v2047_v47  ;;  %2663 = vmatprep.subr.mxu1 %v2175_v36  ;;  %v2255_v47 = vld [vmem:[#allocation8 + $0x708] sm:$0xff]  ;;  %v2126_v36 = vld [vmem:[#allocation8 + $0x300] sm:$0xff] }
 0x32f   :  { %2587 = vmatpush1.msra.mxu0 %v2046_v57  ;;  %2664 = vmatpush1.msra.mxu1 %v2174_v49  ;;  %v2254_v57 = vld [vmem:[#allocation8 + $0x700] sm:$0xff]  ;;  %v2123_v49 = vld [vmem:[#allocation8 + $0x2e8] sm:$0xff] }
 0x330   :  { %2588 = vmatprep.subr.mxu0 %v2043_v41  ;;  %2665 = vmatprep.subr.mxu1 %v2171_v61  ;;  %v2251_v41 = vld [vmem:[#allocation8 + $0x6e8] sm:$0xff]  ;;  %v2122_v61 = vld [vmem:[#allocation8 + $0x2e0] sm:$0xff] }
 0x331   :  { %2589 = vmatpush1.msra.mxu0 %v2042_v62  ;;  %2666 = vmatpush1.msra.mxu1 %v2170_v63  ;;  %v2250_v62 = vld [vmem:[#allocation8 + $0x6e0] sm:$0xff]  ;;  %v2119_v63 = vld [vmem:[#allocation8 + $0x2c8] sm:$0xff] }
 0x332   :  { %2590 = vmatprep.subr.mxu0 %v2039_v1  ;;  %2667 = vmatprep.subr.mxu1 %v2167_v3  ;;  %v2247_v1 = vld [vmem:[#allocation8 + $0x6c8] sm:$0xff]  ;;  %v2118_v3 = vld [vmem:[#allocation8 + $0x2c0] sm:$0xff] }
 0x333   :  { %2591 = vmatpush1.msra.mxu0 %v2038_v4  ;;  %2668 = vmatpush1.msra.mxu1 %v2166_v5  ;;  %v2246_v4 = vld [vmem:[#allocation8 + $0x6c0] sm:$0xff]  ;;  %v2115_v5 = vld [vmem:[#allocation8 + $0x2a8] sm:$0xff] }
 0x334   :  { %2592 = vmatprep.subr.mxu0 %v2035_v22  ;;  %2669 = vmatprep.subr.mxu1 %v2163_v20  ;;  %v2243_v22 = vld [vmem:[#allocation8 + $0x6a8] sm:$0xff]  ;;  %v2114_v20 = vld [vmem:[#allocation8 + $0x2a0] sm:$0xff] }
 0x335   :  { %2593 = vmatpush1.msra.mxu0 %v2034_v24  ;;  %2670 = vmatpush1.msra.mxu1 %v2162_v6  ;;  %v2242_v24 = vld [vmem:[#allocation8 + $0x6a0] sm:$0xff]  ;;  %v2111_v6 = vld [vmem:[#allocation8 + $0x288] sm:$0xff] }
 0x336   :  { %2594 = vmatprep.subr.mxu0 %v2031_v50  ;;  %2671 = vmatprep.subr.mxu1 %v2159_v40  ;;  %v2239_v50 = vld [vmem:[#allocation8 + $0x688] sm:$0xff]  ;;  %v2110_v40 = vld [vmem:[#allocation8 + $0x280] sm:$0xff] }
 0x337   :  { %2595 = vmatpush1.msra.mxu0 %v2030_v0  ;;  %2672 = vmatpush1.msra.mxu1 %v2158_v7  ;;  %v2238_v0 = vld [vmem:[#allocation8 + $0x680] sm:$0xff]  ;;  %v2107_v7 = vld [vmem:[#allocation8 + $0x268] sm:$0xff] }
 0x338   :  { %2596 = vmatprep.subr.mxu0 %v2155_v9  ;;  %2673 = vmatprep.subr.mxu1 %v2283_v44  ;;  %v2235_v9 = vld [vmem:[#allocation8 + $0x668] sm:$0xff]  ;;  %v2106_v44 = vld [vmem:[#allocation8 + $0x260] sm:$0xff] }
 0x339   :  { %2597 = vmatpush2.msra.mxu0 %v2154_v51  ;;  %2674 = vmatpush2.msra.mxu1 %v2282_v53  ;;  %v2234_v51 = vld [vmem:[#allocation8 + $0x660] sm:$0xff]  ;;  %v2103_v53 = vld [vmem:[#allocation8 + $0x248] sm:$0xff] }
 0x33a   :  { %2598 = vmatprep.subr.mxu0 %v2151_v2  ;;  %2675 = vmatprep.subr.mxu1 %v2279_v46  ;;  %v2231_v2 = vld [vmem:[#allocation8 + $0x648] sm:$0xff]  ;;  %v2102_v46 = vld [vmem:[#allocation8 + $0x240] sm:$0xff] }
 0x33b   :  { %2599 = vmatpush2.msra.mxu0 %v2150_v10  ;;  %2676 = vmatpush2.msra.mxu1 %v2278_v12  ;;  %v2230_v10 = vld [vmem:[#allocation8 + $0x640] sm:$0xff]  ;;  %v2099_v12 = vld [vmem:[#allocation8 + $0x228] sm:$0xff] }
 0x33c   :  { %2600 = vmatprep.subr.mxu0 %v2147_v14  ;;  %2677 = vmatprep.subr.mxu1 %v2275_v15  ;;  %v2227_v14 = vld [vmem:[#allocation8 + $0x628] sm:$0xff]  ;;  %v2098_v15 = vld [vmem:[#allocation8 + $0x220] sm:$0xff] }
 0x33d   :  { %2601 = vmatpush2.msra.mxu0 %v2146_v17  ;;  %2678 = vmatpush2.msra.mxu1 %v2274_v19  ;;  %v2226_v17 = vld [vmem:[#allocation8 + $0x620] sm:$0xff]  ;;  %v2095_v19 = vld [vmem:[#allocation8 + $0x208] sm:$0xff] }
 0x33e   :  { %2602 = vmatprep.subr.mxu0 %v2143_v21  ;;  %2679 = vmatprep.subr.mxu1 %v2271_v39  ;;  %v2223_v21 = vld [vmem:[#allocation8 + $0x608] sm:$0xff]  ;;  %v2094_v39 = vld [vmem:[#allocation8 + $0x200] sm:$0xff] }
 0x33f   :  { %2603 = vmatpush2.msra.mxu0 %v2142_v45  ;;  %2680 = vmatpush2.msra.mxu1 %v2270_v43  ;;  %v2222_v45 = vld [vmem:[#allocation8 + $0x600] sm:$0xff]  ;;  %v1279_v43 = vmax.f32 %v4650_v37, 0.0 }
 0x340   :  { %2604 = vmatprep.subr.mxu0 %v2139_v52  ;;  %2681 = vmatprep.subr.mxu1 %v2267_v58  ;;  %v1281_v52 = vmax.f32 %v4659_v8, 0.0  ;;  %v1284_v58 = vmax.f32 %v4657_v23, 0.0  ;;  %v2464_v8 = vld [vmem:[#allocation8 + $0xd90] sm:$0xff] }
 0x341   :  { %2605 = vmatpush2.msra.mxu0 %v2138_v38  ;;  %2682 = vmatpush2.msra.mxu1 %v2266_v60  ;;  %v1286_v38 = vmax.f32 %v4665_v16, 0.0  ;;  %v2347_v60 = vld [vmem:[#allocation8 + $0x9e8] sm:$0xff]  ;;  %v2461_v16 = vld [vmem:[#allocation8 + $0xd78] sm:$0xff] }
 0x342   :  { %2606 = vmatprep.subr.mxu0 %v2135_v48  ;;  %2683 = vmatprep.subr.mxu1 %v2263_v34  ;;  %v2475_v48 = vld [vmem:[#allocation8 + $0xde8] sm:$0xff]  ;;  %v2346_v34 = vld [vmem:[#allocation8 + $0x9e0] sm:$0xff] }
 0x343   :  { %2607 = vmatpush2.msra.mxu0 %v2134_v33  ;;  %2684 = vmatpush2.msra.mxu1 %v2262_v18  ;;  %v2474_v33 = vld [vmem:[#allocation8 + $0xde0] sm:$0xff]  ;;  %v1283_v18 = vmax.f32 %v4655_v59, 0.0  ;;  %v2209_v59 = vld [vmem:[#allocation8 + $0x598] sm:$0xff] }
 0x344   :  { %2608 = vmatprep.subr.mxu0 %v2131_v54  ;;  %2685 = vmatprep.subr.mxu1 %v2259_v55  ;;  %v1285_v54 = vmax.f32 %v4663_v13, 0.0  ;;  %v2343_v55 = vld [vmem:[#allocation8 + $0x9c8] sm:$0xff]  ;;  %v2456_v13 = vld [vmem:[#allocation8 + $0xd50] sm:$0xff] }
 0x345   :  { %2609 = vmatpush2.msra.mxu0 %v2130_v56  ;;  %2686 = vmatpush2.msra.mxu1 %v2258_v35  ;;  %v2471_v56 = vld [vmem:[#allocation8 + $0xdc8] sm:$0xff]  ;;  %v2342_v35 = vld [vmem:[#allocation8 + $0x9c0] sm:$0xff] }
 0x346   :  { %2610 = vmatprep.subr.mxu0 %v2127_v32  ;;  %2687 = vmatprep.subr.mxu1 %v2255_v47  ;;  %v2470_v32 = vld [vmem:[#allocation8 + $0xdc0] sm:$0xff]  ;;  %v2339_v47 = vld [vmem:[#allocation8 + $0x9a8] sm:$0xff] }
 0x347   :  { %2611 = vmatpush2.msra.mxu0 %v2126_v36  ;;  %2688 = vmatpush2.msra.mxu1 %v2254_v57  ;;  %v2467_v36 = vld [vmem:[#allocation8 + $0xda8] sm:$0xff]  ;;  %v2338_v57 = vld [vmem:[#allocation8 + $0x9a0] sm:$0xff] }
 0x348   :  { %2612 = vmatprep.subr.mxu0 %v2123_v49  ;;  %2689 = vmatprep.subr.mxu1 %v2251_v41  ;;  %v2466_v49 = vld [vmem:[#allocation8 + $0xda0] sm:$0xff]  ;;  %v2335_v41 = vld [vmem:[#allocation8 + $0x988] sm:$0xff] }
 0x349   :  { %2613 = vmatpush2.msra.mxu0 %v2122_v61  ;;  %2690 = vmatpush2.msra.mxu1 %v2250_v62  ;;  %v2463_v61 = vld [vmem:[#allocation8 + $0xd88] sm:$0xff]  ;;  %v2334_v62 = vld [vmem:[#allocation8 + $0x980] sm:$0xff] }
 0x34a   :  { %2614 = vmatprep.subr.mxu0 %v2119_v63  ;;  %2691 = vmatprep.subr.mxu1 %v2247_v1  ;;  %v2462_v63 = vld [vmem:[#allocation8 + $0xd80] sm:$0xff]  ;;  %v2331_v1 = vld [vmem:[#allocation8 + $0x968] sm:$0xff] }
 0x34b   :  { %2615 = vmatpush2.msra.mxu0 %v2118_v3  ;;  %2692 = vmatpush2.msra.mxu1 %v2246_v4  ;;  %v2459_v3 = vld [vmem:[#allocation8 + $0xd68] sm:$0xff]  ;;  %v2330_v4 = vld [vmem:[#allocation8 + $0x960] sm:$0xff] }
 0x34c   :  { %2616 = vmatprep.subr.mxu0 %v2115_v5  ;;  %2693 = vmatprep.subr.mxu1 %v2243_v22  ;;  %v2458_v5 = vld [vmem:[#allocation8 + $0xd60] sm:$0xff]  ;;  %v2327_v22 = vld [vmem:[#allocation8 + $0x948] sm:$0xff] }
 0x34d   :  { %2617 = vmatpush2.msra.mxu0 %v2114_v20  ;;  %2694 = vmatpush2.msra.mxu1 %v2242_v24  ;;  %v2455_v20 = vld [vmem:[#allocation8 + $0xd48] sm:$0xff]  ;;  %v2326_v24 = vld [vmem:[#allocation8 + $0x940] sm:$0xff] }
 0x34e   :  { %2618 = vmatprep.subr.mxu0 %v2111_v6  ;;  %2695 = vmatprep.subr.mxu1 %v2239_v50  ;;  %v2454_v6 = vld [vmem:[#allocation8 + $0xd40] sm:$0xff]  ;;  %v2323_v50 = vld [vmem:[#allocation8 + $0x928] sm:$0xff] }
 0x34f   :  { %2619 = vmatpush2.msra.mxu0 %v2110_v40  ;;  %2696 = vmatpush2.msra.mxu1 %v2238_v0  ;;  %v2451_v40 = vld [vmem:[#allocation8 + $0xd28] sm:$0xff]  ;;  %v2322_v0 = vld [vmem:[#allocation8 + $0x920] sm:$0xff] }
 0x350   :  { %2620 = vmatprep.subr.mxu0 %v2107_v7  ;;  %2697 = vmatprep.subr.mxu1 %v2235_v9  ;;  %v2450_v7 = vld [vmem:[#allocation8 + $0xd20] sm:$0xff]  ;;  %v2319_v9 = vld [vmem:[#allocation8 + $0x908] sm:$0xff] }
 0x351   :  { %2621 = vmatpush2.msra.mxu0 %v2106_v44  ;;  %2698 = vmatpush2.msra.mxu1 %v2234_v51  ;;  %v2447_v44 = vld [vmem:[#allocation8 + $0xd08] sm:$0xff]  ;;  %v2318_v51 = vld [vmem:[#allocation8 + $0x900] sm:$0xff] }
 0x352   :  { %2622 = vmatprep.subr.mxu0 %v2103_v53  ;;  %2699 = vmatprep.subr.mxu1 %v2231_v2  ;;  %v2446_v53 = vld [vmem:[#allocation8 + $0xd00] sm:$0xff]  ;;  %v2315_v2 = vld [vmem:[#allocation8 + $0x8e8] sm:$0xff] }
 0x353   :  { %2623 = vmatpush2.msra.mxu0 %v2102_v46  ;;  %2700 = vmatpush2.msra.mxu1 %v2230_v10  ;;  %v2443_v46 = vld [vmem:[#allocation8 + $0xce8] sm:$0xff]  ;;  %v2314_v10 = vld [vmem:[#allocation8 + $0x8e0] sm:$0xff] }
 0x354   :  { %2624 = vmatprep.subr.mxu0 %v2099_v12  ;;  %2701 = vmatprep.subr.mxu1 %v2227_v14  ;;  %v2442_v12 = vld [vmem:[#allocation8 + $0xce0] sm:$0xff]  ;;  %v2311_v14 = vld [vmem:[#allocation8 + $0x8c8] sm:$0xff] }
 0x355   :  { %2625 = vmatpush2.msra.mxu0 %v2098_v15  ;;  %2702 = vmatpush2.msra.mxu1 %v2226_v17  ;;  %v2439_v15 = vld [vmem:[#allocation8 + $0xcc8] sm:$0xff]  ;;  %v2310_v17 = vld [vmem:[#allocation8 + $0x8c0] sm:$0xff] }
 0x356   :  { %2626 = vmatprep.subr.mxu0 %v2095_v19  ;;  %2703 = vmatprep.subr.mxu1 %v2223_v21  ;;  %v2438_v19 = vld [vmem:[#allocation8 + $0xcc0] sm:$0xff]  ;;  %v2307_v21 = vld [vmem:[#allocation8 + $0x8a8] sm:$0xff] }
 0x357   :  { %2627 = vmatpush2.msra.mxu0 %v2094_v39  ;;  %2704 = vmatpush2.msra.mxu1 %v2222_v45  ;;  %v2435_v39 = vld [vmem:[#allocation8 + $0xca8] sm:$0xff]  ;;  %v2306_v45 = vld [vmem:[#allocation8 + $0x8a0] sm:$0xff] }
 0x358   :  { %2629 = vmatmul.mubr.f32.vlgmr.msra.gmra.mxu0 %v1279_v43  ;;  %2706 = vmatmul.mubr.f32.vlgmr.msra.gmra.mxu1 %v1281_v52 }
 0x359   :  { %2634 = vmatprep.mubr.f32.mxu0 %v1284_v58  ;;  %2711 = vmatprep.mubr.f32.mxu1 %v1286_v38 }
 0x35a   :  { %2718 = vmatprep.subr.mxu0 %v2347_v60  ;;  %2795 = vmatprep.subr.mxu1 %v2475_v48  ;;  %v2434_v60 = vld [vmem:[#allocation8 + $0xca0] sm:$0xff]  ;;  %v2303_v48 = vld [vmem:[#allocation8 + $0x888] sm:$0xff] }
 0x35b   :  { %2719 = vmatpush1.msra.mxu0 %v2346_v34  ;;  %2796 = vmatpush1.msra.mxu1 %v2474_v33  ;;  %v2431_v34 = vld [vmem:[#allocation8 + $0xc88] sm:$0xff]  ;;  %v2302_v33 = vld [vmem:[#allocation8 + $0x880] sm:$0xff] }
 0x35c   :  { %2635 = vmatmul.mubr.f32.gmra.mxu0 %v1283_v18  ;;  %2712 = vmatmul.mubr.f32.gmra.mxu1 %v1285_v54 }
 0x35d   :  { %2720 = vmatprep.subr.mxu0 %v2343_v55  ;;  %2797 = vmatprep.subr.mxu1 %v2471_v56  ;;  %v2430_v55 = vld [vmem:[#allocation8 + $0xc80] sm:$0xff]  ;;  %v2299_v56 = vld [vmem:[#allocation8 + $0x868] sm:$0xff] }
 0x35e   :  { %2721 = vmatpush1.msra.mxu0 %v2342_v35  ;;  %2798 = vmatpush1.msra.mxu1 %v2470_v32  ;;  %v2427_v35 = vld [vmem:[#allocation8 + $0xc68] sm:$0xff]  ;;  %v2298_v32 = vld [vmem:[#allocation8 + $0x860] sm:$0xff] }
 0x35f   :  { %2722 = vmatprep.subr.mxu0 %v2339_v47  ;;  %2799 = vmatprep.subr.mxu1 %v2467_v36  ;;  %v2426_v47 = vld [vmem:[#allocation8 + $0xc60] sm:$0xff]  ;;  %v2295_v36 = vld [vmem:[#allocation8 + $0x848] sm:$0xff] }
 0x360   :  { %2723 = vmatpush1.msra.mxu0 %v2338_v57  ;;  %2800 = vmatpush1.msra.mxu1 %v2466_v49  ;;  %v2423_v57 = vld [vmem:[#allocation8 + $0xc48] sm:$0xff]  ;;  %v2294_v49 = vld [vmem:[#allocation8 + $0x840] sm:$0xff] }
 0x361   :  { %2724 = vmatprep.subr.mxu0 %v2335_v41  ;;  %2801 = vmatprep.subr.mxu1 %v2463_v61  ;;  %v2422_v41 = vld [vmem:[#allocation8 + $0xc40] sm:$0xff]  ;;  %v2291_v61 = vld [vmem:[#allocation8 + $0x828] sm:$0xff] }
 0x362   :  { %2725 = vmatpush1.msra.mxu0 %v2334_v62  ;;  %2802 = vmatpush1.msra.mxu1 %v2462_v63  ;;  %v2419_v62 = vld [vmem:[#allocation8 + $0xc28] sm:$0xff]  ;;  %v2290_v63 = vld [vmem:[#allocation8 + $0x820] sm:$0xff] }
 0x363   :  { %2726 = vmatprep.subr.mxu0 %v2331_v1  ;;  %2803 = vmatprep.subr.mxu1 %v2459_v3  ;;  %v2418_v1 = vld [vmem:[#allocation8 + $0xc20] sm:$0xff]  ;;  %v2287_v3 = vld [vmem:[#allocation8 + $0x808] sm:$0xff] }
 0x364   :  { %2727 = vmatpush1.msra.mxu0 %v2330_v4  ;;  %2804 = vmatpush1.msra.mxu1 %v2458_v5  ;;  %v2415_v4 = vld [vmem:[#allocation8 + $0xc08] sm:$0xff]  ;;  %v2286_v5 = vld [vmem:[#allocation8 + $0x800] sm:$0xff] }
 0x365   :  { %2728 = vmatprep.subr.mxu0 %v2327_v22  ;;  %2805 = vmatprep.subr.mxu1 %v2455_v20  ;;  %v2414_v22 = vld [vmem:[#allocation8 + $0xc00] sm:$0xff]  ;;  %v2411_v20 = vld [vmem:[#allocation8 + $0xbe8] sm:$0xff] }
 0x366   :  { %2729 = vmatpush1.msra.mxu0 %v2326_v24  ;;  %2806 = vmatpush1.msra.mxu1 %v2454_v6  ;;  %v2539_v24 = vld [vmem:[#allocation8 + $0xfe8] sm:$0xff]  ;;  %v2410_v6 = vld [vmem:[#allocation8 + $0xbe0] sm:$0xff] }
 0x367   :  { %2730 = vmatprep.subr.mxu0 %v2323_v50  ;;  %2807 = vmatprep.subr.mxu1 %v2451_v40  ;;  %v2538_v50 = vld [vmem:[#allocation8 + $0xfe0] sm:$0xff]  ;;  %v2407_v40 = vld [vmem:[#allocation8 + $0xbc8] sm:$0xff] }
 0x368   :  { %2731 = vmatpush1.msra.mxu0 %v2322_v0  ;;  %2808 = vmatpush1.msra.mxu1 %v2450_v7  ;;  %v2535_v0 = vld [vmem:[#allocation8 + $0xfc8] sm:$0xff]  ;;  %v2406_v7 = vld [vmem:[#allocation8 + $0xbc0] sm:$0xff] }
 0x369   :  { %2732 = vmatprep.subr.mxu0 %v2319_v9  ;;  %2809 = vmatprep.subr.mxu1 %v2447_v44  ;;  %v2534_v9 = vld [vmem:[#allocation8 + $0xfc0] sm:$0xff]  ;;  %v2403_v44 = vld [vmem:[#allocation8 + $0xba8] sm:$0xff] }
 0x36a   :  { %2733 = vmatpush1.msra.mxu0 %v2318_v51  ;;  %2810 = vmatpush1.msra.mxu1 %v2446_v53  ;;  %v2531_v51 = vld [vmem:[#allocation8 + $0xfa8] sm:$0xff]  ;;  %v2402_v53 = vld [vmem:[#allocation8 + $0xba0] sm:$0xff] }
 0x36b   :  { %2734 = vmatprep.subr.mxu0 %v2315_v2  ;;  %2811 = vmatprep.subr.mxu1 %v2443_v46  ;;  %v2530_v2 = vld [vmem:[#allocation8 + $0xfa0] sm:$0xff]  ;;  %v2399_v46 = vld [vmem:[#allocation8 + $0xb88] sm:$0xff] }
 0x36c   :  { %2735 = vmatpush1.msra.mxu0 %v2314_v10  ;;  %2812 = vmatpush1.msra.mxu1 %v2442_v12  ;;  %v2527_v10 = vld [vmem:[#allocation8 + $0xf88] sm:$0xff]  ;;  %v2398_v12 = vld [vmem:[#allocation8 + $0xb80] sm:$0xff] }
 0x36d   :  { %2736 = vmatprep.subr.mxu0 %v2311_v14  ;;  %2813 = vmatprep.subr.mxu1 %v2439_v15  ;;  %v2526_v14 = vld [vmem:[#allocation8 + $0xf80] sm:$0xff]  ;;  %v2395_v15 = vld [vmem:[#allocation8 + $0xb68] sm:$0xff] }
 0x36e   :  { %2737 = vmatpush1.msra.mxu0 %v2310_v17  ;;  %2814 = vmatpush1.msra.mxu1 %v2438_v19  ;;  %v2523_v17 = vld [vmem:[#allocation8 + $0xf68] sm:$0xff]  ;;  %v2394_v19 = vld [vmem:[#allocation8 + $0xb60] sm:$0xff] }
 0x36f   :  { %2738 = vmatprep.subr.mxu0 %v2307_v21  ;;  %2815 = vmatprep.subr.mxu1 %v2435_v39  ;;  %v2522_v21 = vld [vmem:[#allocation8 + $0xf60] sm:$0xff]  ;;  %v2391_v39 = vld [vmem:[#allocation8 + $0xb48] sm:$0xff] }
 0x370   :  { %2739 = vmatpush1.msra.mxu0 %v2306_v45  ;;  %2816 = vmatpush1.msra.mxu1 %v2434_v60  ;;  %v2519_v45 = vld [vmem:[#allocation8 + $0xf48] sm:$0xff]  ;;  %v2390_v60 = vld [vmem:[#allocation8 + $0xb40] sm:$0xff] }
 0x371   :  { %2740 = vmatprep.subr.mxu0 %v2303_v48  ;;  %2817 = vmatprep.subr.mxu1 %v2431_v34  ;;  %v2518_v48 = vld [vmem:[#allocation8 + $0xf40] sm:$0xff]  ;;  %v4768_v34 = vpop.f32.mrf.mxu0 }
 0x372   :  { %2741 = vmatpush1.msra.mxu0 %v2302_v33  ;;  %2818 = vmatpush1.msra.mxu1 %v2430_v55  ;;  %v2387_v33 = vld [vmem:[#allocation8 + $0xb28] sm:$0xff] }
 0x373   :  { %2742 = vmatprep.subr.mxu0 %v2299_v56  ;;  %2819 = vmatprep.subr.mxu1 %v2427_v35  ;;  %v2515_v55 = vld [vmem:[#allocation8 + $0xf28] sm:$0xff]  ;;  %v2386_v56 = vld [vmem:[#allocation8 + $0xb20] sm:$0xff] }
 0x374   :  { %2743 = vmatpush1.msra.mxu0 %v2298_v32  ;;  %2820 = vmatpush1.msra.mxu1 %v2426_v47  ;;  %v2514_v35 = vld [vmem:[#allocation8 + $0xf20] sm:$0xff]  ;;  %v2383_v32 = vld [vmem:[#allocation8 + $0xb08] sm:$0xff] }
 0x375   :  { %2744 = vmatprep.subr.mxu0 %v2295_v36  ;;  %2821 = vmatprep.subr.mxu1 %v2423_v57  ;;  %v2511_v47 = vld [vmem:[#allocation8 + $0xf08] sm:$0xff]  ;;  %v2382_v36 = vld [vmem:[#allocation8 + $0xb00] sm:$0xff] }
 0x376   :  { %2745 = vmatpush1.msra.mxu0 %v2294_v49  ;;  %2822 = vmatpush1.msra.mxu1 %v2422_v41  ;;  %v2510_v57 = vld [vmem:[#allocation8 + $0xf00] sm:$0xff]  ;;  %v1604_v49 = vpop.f32.mrf.mxu0  ;;  %v2379_v41 = vld [vmem:[#allocation8 + $0xae8] sm:$0xff] }
 0x377   :  { %2746 = vmatprep.subr.mxu0 %v2291_v61  ;;  %2823 = vmatprep.subr.mxu1 %v2419_v62  ;;  %v2507_v61 = vld [vmem:[#allocation8 + $0xee8] sm:$0xff]  ;;  %v1679_v62 = vpop.f32.mrf.mxu1 }
 0x378   :  { %2747 = vmatpush1.msra.mxu0 %v2290_v63  ;;  %2824 = vmatpush1.msra.mxu1 %v2418_v1  ;;  %v2378_v63 = vld [vmem:[#allocation8 + $0xae0] sm:$0xff] }
 0x379   :  { %2748 = vmatprep.subr.mxu0 %v2287_v3  ;;  %2825 = vmatprep.subr.mxu1 %v2415_v4  ;;  %v2506_v1 = vld [vmem:[#allocation8 + $0xee0] sm:$0xff]  ;;  %v2375_v4 = vld [vmem:[#allocation8 + $0xac8] sm:$0xff] }
 0x37a   :  { %2749 = vmatpush1.msra.mxu0 %v2286_v5  ;;  %2826 = vmatpush1.msra.mxu1 %v2414_v22  ;;  %v2503_v5 = vld [vmem:[#allocation8 + $0xec8] sm:$0xff]  ;;  %v2374_v22 = vld [vmem:[#allocation8 + $0xac0] sm:$0xff] }
 0x37b   :  { %2750 = vmatprep.subr.mxu0 %v2411_v20  ;;  %2827 = vmatprep.subr.mxu1 %v2539_v24  ;;  %v2502_v20 = vld [vmem:[#allocation8 + $0xec0] sm:$0xff]  ;;  %v2371_v24 = vld [vmem:[#allocation8 + $0xaa8] sm:$0xff] }
 0x37c   :  { %2751 = vmatpush2.msra.mxu0 %v2410_v6  ;;  %2828 = vmatpush2.msra.mxu1 %v2538_v50  ;;  %v2499_v6 = vld [vmem:[#allocation8 + $0xea8] sm:$0xff]  ;;  %v1681_v50 = vpop.f32.mrf.mxu1 }
 0x37d   :  { %2752 = vmatprep.subr.mxu0 %v2407_v40  ;;  %2829 = vmatprep.subr.mxu1 %v2535_v0  ;;  %v2370_v40 = vld [vmem:[#allocation8 + $0xaa0] sm:$0xff] }
 0x37e   :  { %2753 = vmatpush2.msra.mxu0 %v2406_v7  ;;  %2830 = vmatpush2.msra.mxu1 %v2534_v9  ;;  %v2498_v0 = vld [vmem:[#allocation8 + $0xea0] sm:$0xff]  ;;  %v2367_v9 = vld [vmem:[#allocation8 + $0xa88] sm:$0xff] }
 0x37f   :  { %2754 = vmatprep.subr.mxu0 %v2403_v44  ;;  %2831 = vmatprep.subr.mxu1 %v2531_v51  ;;  %v2495_v44 = vld [vmem:[#allocation8 + $0xe88] sm:$0xff]  ;;  %v1685_v51 = vpop.f32.mrf.mxu1 }
 0x380   :  { %2755 = vmatpush2.msra.mxu0 %v2402_v53  ;;  %2832 = vmatpush2.msra.mxu1 %v2530_v2  ;;  %v2366_v53 = vld [vmem:[#allocation8 + $0xa80] sm:$0xff] }
 0x381   :  { %2756 = vmatprep.subr.mxu0 %v2399_v46  ;;  %2833 = vmatprep.subr.mxu1 %v2527_v10  ;;  %v2494_v2 = vld [vmem:[#allocation8 + $0xe80] sm:$0xff]  ;;  %v2363_v46 = vld [vmem:[#allocation8 + $0xa68] sm:$0xff] }
 0x382   :  { %2757 = vmatpush2.msra.mxu0 %v2398_v12  ;;  %2834 = vmatpush2.msra.mxu1 %v2526_v14  ;;  %v2491_v12 = vld [vmem:[#allocation8 + $0xe68] sm:$0xff]  ;;  %v1682_v14 = vadd.f32 %v1681_v50, %v1604_v49  ;;  %v2478_v50 = vld [vmem:[#allocation8 + $0xe00] sm:$0xff] }
 0x383   :  { %2758 = vmatprep.subr.mxu0 %v2395_v15  ;;  %2835 = vmatprep.subr.mxu1 %v2523_v17  ;;  %v2362_v15 = vld [vmem:[#allocation8 + $0xa60] sm:$0xff]  ;;  %v2351_v49 = vld [vmem:[#allocation8 + $0xa08] sm:$0xff] }
 0x384   :  { %2759 = vmatpush2.msra.mxu0 %v2394_v19  ;;  %2836 = vmatpush2.msra.mxu1 %v2522_v21  ;;  %v2490_v17 = vld [vmem:[#allocation8 + $0xe60] sm:$0xff]  ;;  %v2359_v19 = vld [vmem:[#allocation8 + $0xa48] sm:$0xff] }
 0x385   :  { %2760 = vmatprep.subr.mxu0 %v2391_v39  ;;  %2837 = vmatprep.subr.mxu1 %v2519_v45  ;;  %v2487_v39 = vld [vmem:[#allocation8 + $0xe48] sm:$0xff]  ;;  %v1680_v45 = vadd.f32 %v1679_v62, %v4768_v34 }
 0x386   :  { %2761 = vmatpush2.msra.mxu0 %v2390_v60  ;;  %2838 = vmatpush2.msra.mxu1 %v2518_v48  ;;  %v1687_v60 = vpop.f32.mrf.mxu1 }
 0x387   :  { %2762 = vmatprep.subr.mxu0 %v2387_v33  ;;  %2839 = vmatprep.subr.mxu1 %v2515_v55  ;;  %v4770_v3 = vpop.f32.mrf.mxu0  ;;  %v2358_v33 = vld [vmem:[#allocation8 + $0xa40] sm:$0xff] }
 0x388   :  { %2763 = vmatpush2.msra.mxu0 %v2386_v56  ;;  %2840 = vmatpush2.msra.mxu1 %v2514_v35  ;;  %v2486_v55 = vld [vmem:[#allocation8 + $0xe40] sm:$0xff]  ;;  %v2355_v56 = vld [vmem:[#allocation8 + $0xa28] sm:$0xff] }
 0x389   :  { %2764 = vmatprep.subr.mxu0 %v2383_v32  ;;  %2841 = vmatprep.subr.mxu1 %v2511_v47  ;;  %v1610_v7 = vpop.f32.mrf.mxu0 }
 0x38a   :  { %2765 = vmatpush2.msra.mxu0 %v2382_v36  ;;  %2842 = vmatpush2.msra.mxu1 %v2510_v57  ;;  %v2354_v36 = vld [vmem:[#allocation8 + $0xa20] sm:$0xff]  ;;  %v2483_v57 = vld [vmem:[#allocation8 + $0xe28] sm:$0xff]  ;;  %v1688_v34 = vadd.f32 %v1687_v60, %v1610_v7  ;;  %v2085_v7 = vld [vmem:[#allocation8 + $0x1b8] sm:$0xff] }
 0x38b   :  { %2766 = vmatprep.subr.mxu0 %v2379_v41  ;;  %2843 = vmatprep.subr.mxu1 %v2507_v61  ;;  %v2482_v41 = vld [vmem:[#allocation8 + $0xe20] sm:$0xff]  ;;  %v1686_v61 = vadd.f32 %v1685_v51, %v4770_v3  ;;  %v2081_v51 = vld [vmem:[#allocation8 + $0x198] sm:$0xff]  ;;  %v2052_v60 = vld [vmem:[#allocation8 + $0xb0] sm:$0xff] }
 0x38c   :  { %2767 = vmatpush2.msra.mxu0 %v2378_v63  ;;  %2844 = vmatpush2.msra.mxu1 %v2506_v1  ;;  %v2350_v63 = vld [vmem:[#allocation8 + $0xa00] sm:$0xff]  ;;  %v2479_v1 = vld [vmem:[#allocation8 + $0xe08] sm:$0xff] }
 0x38d   :  { %2768 = vmatprep.subr.mxu0 %v2375_v4  ;;  %2845 = vmatprep.subr.mxu1 %v2503_v5  ;;  %v2093_v5 = vld [vmem:[#allocation8 + $0x1f8] sm:$0xff] }
 0x38e   :  { %2769 = vmatpush2.msra.mxu0 %v2374_v22  ;;  %2846 = vmatpush2.msra.mxu1 %v2502_v20 }
 0x38f   :  { %2770 = vmatprep.subr.mxu0 %v2371_v24  ;;  %2847 = vmatprep.subr.mxu1 %v2499_v6  ;;  %v2092_v24 = vld [vmem:[#allocation8 + $0x1f0] sm:$0xff]  ;;  %v2089_v6 = vld [vmem:[#allocation8 + $0x1d8] sm:$0xff] }
 0x390   :  { %2771 = vmatpush2.msra.mxu0 %v2370_v40  ;;  %v1756_v10 = vpop.f32.mrf.mxu0  ;;  %2848 = vmatpush2.msra.mxu1 %v2498_v0  ;;  %v2088_v40 = vld [vmem:[#allocation8 + $0x1d0] sm:$0xff]  ;;  %v2221_v0 = vld [vmem:[#allocation8 + $0x5f8] sm:$0xff] }
 0x391   :  { %2772 = vmatprep.subr.mxu0 %v2367_v9  ;;  %2849 = vmatprep.subr.mxu1 %v2495_v44  ;;  %v4775_v35 = vadd.f32 %v1756_v10, %v1680_v45  ;;  %v2084_v44 = vld [vmem:[#allocation8 + $0x1b0] sm:$0xff]  ;;  %v2073_v10 = vld [vmem:[#allocation8 + $0x158] sm:$0xff] }
 0x392   :  { %2773 = vmatpush2.msra.mxu0 %v2366_v53  ;;  %v1758_v21 = vpop.f32.mrf.mxu0  ;;  %2850 = vmatpush2.msra.mxu1 %v2494_v2  ;;  %v2080_v53 = vld [vmem:[#allocation8 + $0x190] sm:$0xff]  ;;  %v2077_v2 = vld [vmem:[#allocation8 + $0x178] sm:$0xff] }
 0x393   :  { %2774 = vmatprep.subr.mxu0 %v2363_v46  ;;  %v4773_v48 = vadd.f32 %v1758_v21, %v1682_v14  ;;  %2851 = vmatprep.subr.mxu1 %v2491_v12  ;;  %v1998_v22 = vmax.f32 %v4775_v35, 0.0  ;;  %v2076_v46 = vld [vmem:[#allocation8 + $0x170] sm:$0xff]  ;;  %v2069_v14 = vld [vmem:[#allocation8 + $0x138] sm:$0xff] }
 0x394   :  { %2775 = vmatpush2.msra.mxu0 %v2362_v15  ;;  %2852 = vmatpush2.msra.mxu1 %v2490_v17  ;;  %v2072_v12 = vld [vmem:[#allocation8 + $0x150] sm:$0xff]  ;;  %v2065_v17 = vld [vmem:[#allocation8 + $0x118] sm:$0xff] }
 0x395   :  { %2776 = vmatprep.subr.mxu0 %v2359_v19  ;;  %v1999_v32 = vmax.f32 %v4773_v48, 0.0  ;;  %v1762_v47 = vpop.f32.mrf.mxu0  ;;  %2853 = vmatprep.subr.mxu1 %v2487_v39  ;;  %v2068_v15 = vld [vmem:[#allocation8 + $0x130] sm:$0xff]  ;;  %v2061_v21 = vld [vmem:[#allocation8 + $0xf8] sm:$0xff] }
 0x396   :  { %2777 = vmatpush2.msra.mxu0 %v2358_v33  ;;  %2854 = vmatpush2.msra.mxu1 %v2486_v55  ;;  %v4784_v20 = vadd.f32 %v1762_v47, %v1686_v61  ;;  %v2064_v19 = vld [vmem:[#allocation8 + $0x110] sm:$0xff]  ;;  %v2053_v45 = vld [vmem:[#allocation8 + $0xb8] sm:$0xff] }
 0x397   :  { %2778 = vmatprep.subr.mxu0 %v2355_v56  ;;  %v1764_v62 = vpop.f32.mrf.mxu0  ;;  %2782 = vmatprep.mubr.f32.mxu0 %v1999_v32  ;;  %v2056_v39 = vld [vmem:[#allocation8 + $0xd0] sm:$0xff]  ;;  %v2049_v33 = vld [vmem:[#allocation8 + $0x98] sm:$0xff] }
 0x398   :  { %2779 = vmatpush2.msra.mxu0 %v2354_v36  ;;  %v4781_v4 = vadd.f32 %v1764_v62, %v1688_v34  ;;  %2855 = vmatprep.subr.mxu1 %v2483_v57  ;;  %v2002_v9 = vmax.f32 %v4784_v20, 0.0  ;;  %v2048_v55 = vld [vmem:[#allocation8 + $0x90] sm:$0xff]  ;;  %v2045_v56 = vld [vmem:[#allocation8 + $0x78] sm:$0xff] }
 0x399   :  { %2780 = vmatprep.subr.mxu0 %v2351_v49  ;;  %2856 = vmatpush2.msra.mxu1 %v2482_v41  ;;  %v2044_v47 = vld [vmem:[#allocation8 + $0x70] sm:$0xff]  ;;  %v2041_v36 = vld [vmem:[#allocation8 + $0x58] sm:$0xff] }
 0x39a   :  { %v2003_v3 = vmax.f32 %v4781_v4, 0.0  ;;  %2781 = vmatpush2.msra.mxu0 %v2350_v63  ;;  %2857 = vmatprep.subr.mxu1 %v2479_v1  ;;  %v2040_v57 = vld [vmem:[#allocation8 + $0x50] sm:$0xff]  ;;  %v2037_v34 = vld [vmem:[#allocation8 + $0x38] sm:$0xff] }
 0x39b   :  { %2872 = vmatprep.subr.mxu0 %v2093_v5  ;;  %2783 = vmatmul.mubr.f32.vlgmr.msra.gmra.mxu0 %v1998_v22  ;;  %v2036_v49 = vld [vmem:[#allocation8 + $0x30] sm:$0xff]  ;;  %v2033_v41 = vld [vmem:[#allocation8 + $0x18] sm:$0xff] }
 0x39c   :  { %2873 = vmatpush1.msra.mxu0 %v2092_v24  ;;  %2788 = vmatprep.mubr.f32.mxu0 %v2003_v3  ;;  %v2032_v61 = vld [vmem:[#allocation8 + $0x10] sm:$0xff]  ;;  %v2157_v62 = vld [vmem:[#allocation8 + $0x3f8] sm:$0xff] }
 0x39d   :  { %2874 = vmatprep.subr.mxu0 %v2089_v6  ;;  %2858 = vmatpush2.msra.mxu1 %v2478_v50  ;;  %v2156_v63 = vld [vmem:[#allocation8 + $0x3f0] sm:$0xff]  ;;  %v2153_v1 = vld [vmem:[#allocation8 + $0x3d8] sm:$0xff] }
 0x39e   :  { %2875 = vmatpush1.msra.mxu0 %v2088_v40  ;;  %2949 = vmatprep.subr.mxu1 %v2221_v0  ;;  %v2152_v5 = vld [vmem:[#allocation8 + $0x3d0] sm:$0xff]  ;;  %v2149_v24 = vld [vmem:[#allocation8 + $0x3b8] sm:$0xff] }
 0x39f   :  { %2876 = vmatprep.subr.mxu0 %v2085_v7  ;;  %2789 = vmatmul.mubr.f32.gmra.mxu0 %v2002_v9  ;;  %v2148_v6 = vld [vmem:[#allocation8 + $0x3b0] sm:$0xff]  ;;  %v2145_v50 = vld [vmem:[#allocation8 + $0x398] sm:$0xff] }
 0x3a0   :  { %2877 = vmatpush1.msra.mxu0 %v2084_v44  ;;  %2936 = vmatprep.mubr.f32.mxu0 %v1280_v11  ;;  %v2057_v11 = vld [vmem:[#allocation8 + $0xd8] sm:$0xff]  ;;  %v2144_v40 = vld [vmem:[#allocation8 + $0x390] sm:$0xff] }
 0x3a1   :  { %2878 = vmatprep.subr.mxu0 %v2081_v51  ;;  %v2141_v0 = vld [vmem:[#allocation8 + $0x378] sm:$0xff]  ;;  %v2140_v7 = vld [vmem:[#allocation8 + $0x370] sm:$0xff] }
 0x3a2   :  { %2879 = vmatpush1.msra.mxu0 %v2080_v53  ;;  %v2137_v44 = vld [vmem:[#allocation8 + $0x358] sm:$0xff]  ;;  %v2136_v51 = vld [vmem:[#allocation8 + $0x350] sm:$0xff] }
 0x3a3   :  { %2880 = vmatprep.subr.mxu0 %v2077_v2  ;;  %v2133_v53 = vld [vmem:[#allocation8 + $0x338] sm:$0xff]  ;;  %v2132_v2 = vld [vmem:[#allocation8 + $0x330] sm:$0xff] }
 0x3a4   :  { %2881 = vmatpush1.msra.mxu0 %v2076_v46  ;;  %v2205_v48 = vld [vmem:[#allocation8 + $0x578] sm:$0xff]  ;;  %v2468_v35 = vld [vmem:[#allocation8 + $0xdb0] sm:$0xff] }
 0x3a5   :  { %2882 = vmatprep.subr.mxu0 %v2073_v10  ;;  %v2129_v10 = vld [vmem:[#allocation8 + $0x318] sm:$0xff]  ;;  %v2460_v20 = vld [vmem:[#allocation8 + $0xd70] sm:$0xff] }
 0x3a6   :  { %2883 = vmatpush1.msra.mxu0 %v2072_v12  ;;  %v2128_v12 = vld [vmem:[#allocation8 + $0x310] sm:$0xff]  ;;  %v2465_v4 = vld [vmem:[#allocation8 + $0xd98] sm:$0xff] }
 0x3a7   :  { %2884 = vmatprep.subr.mxu0 %v2069_v14  ;;  %v2125_v14 = vld [vmem:[#allocation8 + $0x2f8] sm:$0xff] }
 0x3a8   :  { %2885 = vmatpush1.msra.mxu0 %v2068_v15  ;;  %v2124_v15 = vld [vmem:[#allocation8 + $0x2f0] sm:$0xff] }
 0x3a9   :  { %2886 = vmatprep.subr.mxu0 %v2065_v17 }
 0x3aa   :  { %2887 = vmatpush1.msra.mxu0 %v2064_v19  ;;  %v2121_v19 = vld [vmem:[#allocation8 + $0x2d8] sm:$0xff] }
 0x3ab   :  { %2888 = vmatprep.subr.mxu0 %v2061_v21  ;;  %v2120_v21 = vld [vmem:[#allocation8 + $0x2d0] sm:$0xff] }
 0x3ac   :  { %2889 = vmatpush1.msra.mxu0 %v2060_v28  ;;  %v2117_v28 = vld [vmem:[#allocation8 + $0x2b8] sm:$0xff] }
 0x3ad   :  { %2890 = vmatprep.subr.mxu0 %v2057_v11  ;;  %v2116_v11 = vld [vmem:[#allocation8 + $0x2b0] sm:$0xff] }
 0x3ae   :  { %2891 = vmatpush1.msra.mxu0 %v2056_v39 }
 0x3af   :  { %2892 = vmatprep.subr.mxu0 %v2053_v45  ;;  %v2113_v45 = vld [vmem:[#allocation8 + $0x298] sm:$0xff] }
 0x3b0   :  { %2893 = vmatpush1.msra.mxu0 %v2052_v60  ;;  %v2112_v60 = vld [vmem:[#allocation8 + $0x290] sm:$0xff] }
 0x3b1   :  { %2894 = vmatprep.subr.mxu0 %v2049_v33  ;;  %v2109_v33 = vld [vmem:[#allocation8 + $0x278] sm:$0xff] }
 0x3b2   :  { %2895 = vmatpush1.msra.mxu0 %v2048_v55  ;;  %v1833_v46 = vpop.f32.mrf.mxu1  ;;  %v2108_v55 = vld [vmem:[#allocation8 + $0x270] sm:$0xff] }
 0x3b3   :  { %2896 = vmatprep.subr.mxu0 %v2045_v56 }
 0x3b4   :  { %2897 = vmatpush1.msra.mxu0 %v2044_v47  ;;  %v1835_v17 = vpop.f32.mrf.mxu1  ;;  %v2105_v47 = vld [vmem:[#allocation8 + $0x258] sm:$0xff] }
 0x3b5   :  { %2898 = vmatprep.subr.mxu0 %v2041_v36  ;;  %v2104_v36 = vld [vmem:[#allocation8 + $0x250] sm:$0xff] }
 0x3b6   :  { %2899 = vmatpush1.msra.mxu0 %v2040_v57 }
 0x3b7   :  { %2900 = vmatprep.subr.mxu0 %v2037_v34  ;;  %v1839_v39 = vpop.f32.mrf.mxu1 }
 0x3b8   :  { %2901 = vmatpush1.msra.mxu0 %v2036_v49  ;;  %v2101_v49 = vld [vmem:[#allocation8 + $0x238] sm:$0xff] }
 0x3b9   :  { %2902 = vmatprep.subr.mxu0 %v2033_v41  ;;  %v1841_v56 = vpop.f32.mrf.mxu1 }
 0x3ba   :  { %2903 = vmatpush1.msra.mxu0 %v2032_v61  ;;  %v2100_v61 = vld [vmem:[#allocation8 + $0x230] sm:$0xff] }
 0x3bb   :  { %2904 = vmatprep.subr.mxu0 %v2157_v62 }
 0x3bc   :  { %2905 = vmatpush2.msra.mxu0 %v2156_v63 }
 0x3bd   :  { %2906 = vmatprep.subr.mxu0 %v2153_v1  ;;  %v2097_v1 = vld [vmem:[#allocation8 + $0x218] sm:$0xff] }
 0x3be   :  { %2907 = vmatpush2.msra.mxu0 %v2152_v5 }
 0x3bf   :  { %2908 = vmatprep.subr.mxu0 %v2149_v24  ;;  %v2096_v24 = vld [vmem:[#allocation8 + $0x210] sm:$0xff] }
 0x3c0   :  { %2909 = vmatpush2.msra.mxu0 %v2148_v6 }
 0x3c1   :  { %2910 = vmatprep.subr.mxu0 %v2145_v50  ;;  %v2349_v50 = vld [vmem:[#allocation8 + $0x9f8] sm:$0xff] }
 0x3c2   :  { %2911 = vmatpush2.msra.mxu0 %v2144_v40 }
 0x3c3   :  { %2912 = vmatprep.subr.mxu0 %v2141_v0  ;;  %v2348_v0 = vld [vmem:[#allocation8 + $0x9f0] sm:$0xff] }
 0x3c4   :  { %2913 = vmatpush2.msra.mxu0 %v2140_v7 }
 0x3c5   :  { %2914 = vmatprep.subr.mxu0 %v2137_v44 }
 0x3c6   :  { %2915 = vmatpush2.msra.mxu0 %v2136_v51  ;;  %v2345_v51 = vld [vmem:[#allocation8 + $0x9d8] sm:$0xff] }
 0x3c7   :  { %2916 = vmatprep.subr.mxu0 %v2133_v53 }
 0x3c8   :  { %2917 = vmatpush2.msra.mxu0 %v2132_v2 }
 0x3c9   :  { %2918 = vmatprep.subr.mxu0 %v2129_v10 }
 0x3ca   :  { %2919 = vmatpush2.msra.mxu0 %v2128_v12 }
 0x3cb   :  { %2920 = vmatprep.subr.mxu0 %v2125_v14  ;;  %v2220_v14 = vld [vmem:[#allocation8 + $0x5f0] sm:$0xff] }
 0x3cc   :  { %2921 = vmatpush2.msra.mxu0 %v2124_v15 }
 0x3cd   :  { %2922 = vmatprep.subr.mxu0 %v2121_v19  ;;  %v2341_v19 = vld [vmem:[#allocation8 + $0x9b8] sm:$0xff] }
 0x3ce   :  { %2923 = vmatpush2.msra.mxu0 %v2120_v21 }
 0x3cf   :  { %2924 = vmatprep.subr.mxu0 %v2117_v28  ;;  %v2340_v28 = vld [vmem:[#allocation8 + $0x9b0] sm:$0xff] }
 0x3d0   :  { %2925 = vmatpush2.msra.mxu0 %v2116_v11  ;;  %v2337_v11 = vld [vmem:[#allocation8 + $0x998] sm:$0xff] }
 0x3d1   :  { %2926 = vmatprep.subr.mxu0 %v2113_v45  ;;  %v2336_v45 = vld [vmem:[#allocation8 + $0x990] sm:$0xff] }
 0x3d2   :  { %2927 = vmatpush2.msra.mxu0 %v2112_v60 }
 0x3d3   :  { %2928 = vmatprep.subr.mxu0 %v2109_v33  ;;  %v2212_v33 = vld [vmem:[#allocation8 + $0x5b0] sm:$0xff] }
 0x3d4   :  { %v1910_v57 = vpop.f32.mrf.mxu0  ;;  %v1987_v34 = vpop.f32.mrf.mxu1  ;;  %2929 = vmatpush2.msra.mxu0 %v2108_v55  ;;  %v2208_v55 = vld [vmem:[#allocation8 + $0x590] sm:$0xff] }
 0x3d5   :  { %v1911_v41 = vadd.f32 %v1910_v57, %v1833_v46  ;;  %2930 = vmatprep.subr.mxu0 %v2105_v47  ;;  %v2344_v46 = vld [vmem:[#allocation8 + $0x9d0] sm:$0xff]  ;;  %v2201_v57 = vld [vmem:[#allocation8 + $0x558] sm:$0xff] }
 0x3d6   :  { %v1912_v62 = vpop.f32.mrf.mxu0  ;;  %v1989_v63 = vpop.f32.mrf.mxu1  ;;  %2931 = vmatpush2.msra.mxu0 %v2104_v36  ;;  %v2204_v47 = vld [vmem:[#allocation8 + $0x570] sm:$0xff] }
 0x3d7   :  { %v1913_v5 = vadd.f32 %v1912_v62, %v1835_v17  ;;  %2932 = vmatprep.subr.mxu0 %v2101_v49  ;;  %v4796_v6 = vadd.f32 %v1987_v34, %v1911_v41  ;;  %v2217_v17 = vld [vmem:[#allocation8 + $0x5d8] sm:$0xff]  ;;  %v2328_v36 = vld [vmem:[#allocation8 + $0x950] sm:$0xff] }
 0x3d8   :  { %2933 = vmatpush2.msra.mxu0 %v2100_v61  ;;  %v2325_v34 = vld [vmem:[#allocation8 + $0x938] sm:$0xff]  ;;  %v2200_v49 = vld [vmem:[#allocation8 + $0x550] sm:$0xff] }
 0x3d9   :  { %v4798_v40 = vadd.f32 %v1989_v63, %v1913_v5  ;;  %2934 = vmatprep.subr.mxu0 %v2097_v1  ;;  %v2000_v10 = vmax.f32 %v4796_v6, 0.0  ;;  %v2324_v41 = vld [vmem:[#allocation8 + $0x930] sm:$0xff]  ;;  %v2197_v61 = vld [vmem:[#allocation8 + $0x538] sm:$0xff] }
 0x3da   :  { %v1916_v7 = vpop.f32.mrf.mxu0  ;;  %v1993_v44 = vpop.f32.mrf.mxu1  ;;  %2935 = vmatpush2.msra.mxu0 %v2096_v24  ;;  %v2321_v62 = vld [vmem:[#allocation8 + $0x918] sm:$0xff]  ;;  %v2192_v5 = vld [vmem:[#allocation8 + $0x510] sm:$0xff] }
 0x3db   :  { %v2001_v53 = vmax.f32 %v4798_v40, 0.0  ;;  %v1917_v2 = vadd.f32 %v1916_v7, %v1839_v39  ;;  %2937 = vmatmul.mubr.f32.vlgmr.msra.gmra.mxu0 %v1279_v43  ;;  %3026 = vmatprep.subr.mxu0 %v2349_v50  ;;  %v2216_v43 = vld [vmem:[#allocation8 + $0x5d0] sm:$0xff]  ;;  %v2193_v63 = vld [vmem:[#allocation8 + $0x518] sm:$0xff] }
 0x3dc   :  { %v1918_v12 = vpop.f32.mrf.mxu0  ;;  %2942 = vmatprep.mubr.f32.mxu0 %v1284_v58  ;;  %3027 = vmatpush1.msra.mxu0 %v2348_v0  ;;  %v1995_v37 = vpop.f32.mrf.mxu1  ;;  %v2213_v58 = vld [vmem:[#allocation8 + $0x5b8] sm:$0xff]  ;;  %v2316_v24 = vld [vmem:[#allocation8 + $0x8f0] sm:$0xff] }
 0x3dd   :  { %v1919_v15 = vadd.f32 %v1918_v12, %v1841_v56  ;;  %2859 = vmatprep.mubr.f32.mxu1 %v2001_v53  ;;  %3028 = vmatprep.subr.mxu0 %v2345_v51  ;;  %v4808_v21 = vadd.f32 %v1993_v44, %v1917_v2  ;;  %v2332_v56 = vld [vmem:[#allocation8 + $0x970] sm:$0xff]  ;;  %v2317_v1 = vld [vmem:[#allocation8 + $0x8f8] sm:$0xff] }
 0x3de   :  { %2860 = vmatmul.mubr.f32.vlgmr.msra.gmra.mxu1 %v2000_v10  ;;  %3029 = vmatpush1.msra.mxu0 %v2344_v46  ;;  %v2189_v50 = vld [vmem:[#allocation8 + $0x4f8] sm:$0xff]  ;;  %v2188_v7 = vld [vmem:[#allocation8 + $0x4f0] sm:$0xff] }
 0x3df   :  { %v4812_v23 = vadd.f32 %v1995_v37, %v1919_v15  ;;  %2950 = vmatpush1.msra.mxu1 %v2220_v14  ;;  %2943 = vmatmul.mubr.f32.gmra.mxu0 %v1283_v18  ;;  %v2004_v60 = vmax.f32 %v4808_v21, 0.0  ;;  %v2333_v18 = vld [vmem:[#allocation8 + $0x978] sm:$0xff]  ;;  %v2312_v44 = vld [vmem:[#allocation8 + $0x8d0] sm:$0xff] }
 0x3e0   :  { %2951 = vmatprep.subr.mxu1 %v2217_v17  ;;  %3030 = vmatprep.subr.mxu0 %v2341_v19  ;;  %v2313_v0 = vld [vmem:[#allocation8 + $0x8d8] sm:$0xff]  ;;  %v2184_v46 = vld [vmem:[#allocation8 + $0x4d0] sm:$0xff] }
 0x3e1   :  { %v2005_v39 = vmax.f32 %v4812_v23, 0.0  ;;  %2952 = vmatpush1.msra.mxu1 %v2216_v43  ;;  %3031 = vmatpush1.msra.mxu0 %v2340_v28  ;;  %v2185_v51 = vld [vmem:[#allocation8 + $0x4d8] sm:$0xff]  ;;  %v2308_v12 = vld [vmem:[#allocation8 + $0x8b0] sm:$0xff] }
 0x3e2   :  { %3090 = vmatprep.mubr.f32.mxu0 %v1999_v32  ;;  %2953 = vmatprep.subr.mxu1 %v2213_v58  ;;  %v2329_v32 = vld [vmem:[#allocation8 + $0x958] sm:$0xff]  ;;  %v2180_v17 = vld [vmem:[#allocation8 + $0x4b0] sm:$0xff] }
 0x3e3   :  { %2865 = vmatprep.mubr.f32.mxu1 %v2005_v39  ;;  %3032 = vmatprep.subr.mxu0 %v2337_v11  ;;  %v2309_v2 = vld [vmem:[#allocation8 + $0x8b8] sm:$0xff]  ;;  %v2304_v19 = vld [vmem:[#allocation8 + $0x890] sm:$0xff] }
 0x3e4   :  { %2866 = vmatmul.mubr.f32.gmra.mxu1 %v2004_v60  ;;  %3033 = vmatpush1.msra.mxu0 %v2336_v45  ;;  %v2181_v14 = vld [vmem:[#allocation8 + $0x4b8] sm:$0xff]  ;;  %v2176_v28 = vld [vmem:[#allocation8 + $0x490] sm:$0xff] }
 0x3e5   :  { %2954 = vmatpush1.msra.mxu1 %v2212_v33  ;;  %3013 = vmatprep.mubr.f32.mxu1 %v1282_v31  ;;  %v2320_v31 = vld [vmem:[#allocation8 + $0x910] sm:$0xff]  ;;  %v2305_v15 = vld [vmem:[#allocation8 + $0x898] sm:$0xff] }
 0x3e6   :  { %2955 = vmatprep.subr.mxu1 %v2209_v59  ;;  %3034 = vmatprep.subr.mxu0 %v2333_v18  ;;  %v2177_v37 = vld [vmem:[#allocation8 + $0x498] sm:$0xff]  ;;  %v2300_v58 = vld [vmem:[#allocation8 + $0x870] sm:$0xff] }
 0x3e7   :  { %2956 = vmatpush1.msra.mxu1 %v2208_v55  ;;  %3035 = vmatpush1.msra.mxu0 %v2332_v56  ;;  %v2301_v43 = vld [vmem:[#allocation8 + $0x878] sm:$0xff]  ;;  %v2172_v33 = vld [vmem:[#allocation8 + $0x470] sm:$0xff] }
 0x3e8   :  { %2957 = vmatprep.subr.mxu1 %v2205_v48  ;;  %3036 = vmatprep.subr.mxu0 %v2329_v32  ;;  %v2173_v11 = vld [vmem:[#allocation8 + $0x478] sm:$0xff]  ;;  %v2296_v59 = vld [vmem:[#allocation8 + $0x850] sm:$0xff] }
 0x3e9   :  { %2958 = vmatpush1.msra.mxu1 %v2204_v47  ;;  %3037 = vmatpush1.msra.mxu0 %v2328_v36  ;;  %v2297_v45 = vld [vmem:[#allocation8 + $0x858] sm:$0xff]  ;;  %v2168_v56 = vld [vmem:[#allocation8 + $0x450] sm:$0xff] }
 0x3ea   :  { %2959 = vmatprep.subr.mxu1 %v2201_v57  ;;  %3038 = vmatprep.subr.mxu0 %v2325_v34  ;;  %v2169_v18 = vld [vmem:[#allocation8 + $0x458] sm:$0xff]  ;;  %v2292_v48 = vld [vmem:[#allocation8 + $0x830] sm:$0xff] }
 0x3eb   :  { %2960 = vmatpush1.msra.mxu1 %v2200_v49  ;;  %3039 = vmatpush1.msra.mxu0 %v2324_v41  ;;  %v2293_v55 = vld [vmem:[#allocation8 + $0x838] sm:$0xff]  ;;  %v2164_v36 = vld [vmem:[#allocation8 + $0x430] sm:$0xff] }
 0x3ec   :  { %2961 = vmatprep.subr.mxu1 %v2197_v61  ;;  %3040 = vmatprep.subr.mxu0 %v2321_v62  ;;  %v2165_v32 = vld [vmem:[#allocation8 + $0x438] sm:$0xff]  ;;  %v2288_v57 = vld [vmem:[#allocation8 + $0x810] sm:$0xff] }
 0x3ed   :  { %2962 = vmatpush1.msra.mxu1 %v2196_v42  ;;  %3041 = vmatpush1.msra.mxu0 %v2320_v31  ;;  %v2289_v47 = vld [vmem:[#allocation8 + $0x818] sm:$0xff]  ;;  %v2160_v41 = vld [vmem:[#allocation8 + $0x410] sm:$0xff] }
 0x3ee   :  { %2963 = vmatprep.subr.mxu1 %v2193_v63  ;;  %3042 = vmatprep.subr.mxu0 %v2317_v1  ;;  %v2161_v34 = vld [vmem:[#allocation8 + $0x418] sm:$0xff]  ;;  %v2412_v61 = vld [vmem:[#allocation8 + $0xbf0] sm:$0xff] }
 0x3ef   :  { %2964 = vmatpush1.msra.mxu1 %v2192_v5  ;;  %3043 = vmatpush1.msra.mxu0 %v2316_v24  ;;  %v2413_v49 = vld [vmem:[#allocation8 + $0xbf8] sm:$0xff]  ;;  %v2284_v31 = vld [vmem:[#allocation8 + $0x7f0] sm:$0xff] }
 0x3f0   :  { %2965 = vmatprep.subr.mxu1 %v2189_v50  ;;  %3044 = vmatprep.subr.mxu0 %v2313_v0  ;;  %v2285_v62 = vld [vmem:[#allocation8 + $0x7f8] sm:$0xff]  ;;  %v2408_v63 = vld [vmem:[#allocation8 + $0xbd0] sm:$0xff] }
 0x3f1   :  { %2966 = vmatpush1.msra.mxu1 %v2188_v7  ;;  %3045 = vmatpush1.msra.mxu0 %v2312_v44  ;;  %v2409_v42 = vld [vmem:[#allocation8 + $0xbd8] sm:$0xff]  ;;  %v2280_v24 = vld [vmem:[#allocation8 + $0x7d0] sm:$0xff] }
 0x3f2   :  { %2967 = vmatprep.subr.mxu1 %v2185_v51  ;;  %3046 = vmatprep.subr.mxu0 %v2309_v2  ;;  %v2281_v1 = vld [vmem:[#allocation8 + $0x7d8] sm:$0xff]  ;;  %v2404_v50 = vld [vmem:[#allocation8 + $0xbb0] sm:$0xff] }
 0x3f3   :  { %2968 = vmatpush1.msra.mxu1 %v2184_v46  ;;  %3047 = vmatpush1.msra.mxu0 %v2308_v12  ;;  %v2405_v5 = vld [vmem:[#allocation8 + $0xbb8] sm:$0xff]  ;;  %v2276_v44 = vld [vmem:[#allocation8 + $0x7b0] sm:$0xff] }
 0x3f4   :  { %2969 = vmatprep.subr.mxu1 %v2181_v14  ;;  %3048 = vmatprep.subr.mxu0 %v2305_v15  ;;  %v2277_v0 = vld [vmem:[#allocation8 + $0x7b8] sm:$0xff]  ;;  %v2400_v51 = vld [vmem:[#allocation8 + $0xb90] sm:$0xff] }
 0x3f5   :  { %2970 = vmatpush1.msra.mxu1 %v2180_v17  ;;  %3049 = vmatpush1.msra.mxu0 %v2304_v19  ;;  %v2401_v7 = vld [vmem:[#allocation8 + $0xb98] sm:$0xff]  ;;  %v2272_v12 = vld [vmem:[#allocation8 + $0x790] sm:$0xff] }
 0x3f6   :  { %2971 = vmatprep.subr.mxu1 %v2177_v37  ;;  %3050 = vmatprep.subr.mxu0 %v2301_v43  ;;  %v2273_v2 = vld [vmem:[#allocation8 + $0x798] sm:$0xff]  ;;  %v2396_v14 = vld [vmem:[#allocation8 + $0xb70] sm:$0xff] }
 0x3f7   :  { %2972 = vmatpush1.msra.mxu1 %v2176_v28  ;;  %3051 = vmatpush1.msra.mxu0 %v2300_v58  ;;  %v2397_v46 = vld [vmem:[#allocation8 + $0xb78] sm:$0xff]  ;;  %v2268_v19 = vld [vmem:[#allocation8 + $0x770] sm:$0xff] }
 0x3f8   :  { %2973 = vmatprep.subr.mxu1 %v2173_v11  ;;  %3052 = vmatprep.subr.mxu0 %v2297_v45  ;;  %v2269_v15 = vld [vmem:[#allocation8 + $0x778] sm:$0xff]  ;;  %v2392_v37 = vld [vmem:[#allocation8 + $0xb50] sm:$0xff] }
 0x3f9   :  { %2974 = vmatpush1.msra.mxu1 %v2172_v33  ;;  %3053 = vmatpush1.msra.mxu0 %v2296_v59  ;;  %v2393_v17 = vld [vmem:[#allocation8 + $0xb58] sm:$0xff]  ;;  %v2264_v58 = vld [vmem:[#allocation8 + $0x750] sm:$0xff] }
 0x3fa   :  { %2975 = vmatprep.subr.mxu1 %v2169_v18  ;;  %3054 = vmatprep.subr.mxu0 %v2293_v55  ;;  %v2265_v43 = vld [vmem:[#allocation8 + $0x758] sm:$0xff]  ;;  %v2388_v11 = vld [vmem:[#allocation8 + $0xb30] sm:$0xff] }
 0x3fb   :  { %2976 = vmatpush1.msra.mxu1 %v2168_v56  ;;  %3055 = vmatpush1.msra.mxu0 %v2292_v48  ;;  %v2389_v28 = vld [vmem:[#allocation8 + $0xb38] sm:$0xff]  ;;  %v2260_v59 = vld [vmem:[#allocation8 + $0x730] sm:$0xff] }
 0x3fc   :  { %2977 = vmatprep.subr.mxu1 %v2165_v32  ;;  %3056 = vmatprep.subr.mxu0 %v2289_v47  ;;  %v2261_v45 = vld [vmem:[#allocation8 + $0x738] sm:$0xff]  ;;  %v2384_v18 = vld [vmem:[#allocation8 + $0xb10] sm:$0xff] }
 0x3fd   :  { %2978 = vmatpush1.msra.mxu1 %v2164_v36  ;;  %3057 = vmatpush1.msra.mxu0 %v2288_v57  ;;  %v2385_v33 = vld [vmem:[#allocation8 + $0xb18] sm:$0xff]  ;;  %v2256_v48 = vld [vmem:[#allocation8 + $0x710] sm:$0xff] }
 0x3fe   :  { %2979 = vmatprep.subr.mxu1 %v2161_v34  ;;  %3058 = vmatprep.subr.mxu0 %v2413_v49  ;;  %v2257_v55 = vld [vmem:[#allocation8 + $0x718] sm:$0xff]  ;;  %v2380_v32 = vld [vmem:[#allocation8 + $0xaf0] sm:$0xff] }
 0x3ff   :  { %2980 = vmatpush1.msra.mxu1 %v2160_v41  ;;  %3059 = vmatpush2.msra.mxu0 %v2412_v61  ;;  %v2381_v56 = vld [vmem:[#allocation8 + $0xaf8] sm:$0xff]  ;;  %v2252_v57 = vld [vmem:[#allocation8 + $0x6f0] sm:$0xff] }
 0x400   :  { %2981 = vmatprep.subr.mxu1 %v2285_v62  ;;  %3060 = vmatprep.subr.mxu0 %v2409_v42  ;;  %v2253_v47 = vld [vmem:[#allocation8 + $0x6f8] sm:$0xff]  ;;  %v2376_v34 = vld [vmem:[#allocation8 + $0xad0] sm:$0xff] }
 0x401   :  { %2982 = vmatpush2.msra.mxu1 %v2284_v31  ;;  %3061 = vmatpush2.msra.mxu0 %v2408_v63  ;;  %v2377_v36 = vld [vmem:[#allocation8 + $0xad8] sm:$0xff]  ;;  %v2248_v61 = vld [vmem:[#allocation8 + $0x6d0] sm:$0xff] }
 0x402   :  { %2983 = vmatprep.subr.mxu1 %v2281_v1  ;;  %3062 = vmatprep.subr.mxu0 %v2405_v5  ;;  %v2249_v49 = vld [vmem:[#allocation8 + $0x6d8] sm:$0xff]  ;;  %v2372_v62 = vld [vmem:[#allocation8 + $0xab0] sm:$0xff] }
 0x403   :  { %2984 = vmatpush2.msra.mxu1 %v2280_v24  ;;  %3063 = vmatpush2.msra.mxu0 %v2404_v50  ;;  %v2373_v41 = vld [vmem:[#allocation8 + $0xab8] sm:$0xff]  ;;  %v2244_v63 = vld [vmem:[#allocation8 + $0x6b0] sm:$0xff] }
 0x404   :  { %2985 = vmatprep.subr.mxu1 %v2277_v0  ;;  %3064 = vmatprep.subr.mxu0 %v2401_v7  ;;  %v2245_v42 = vld [vmem:[#allocation8 + $0x6b8] sm:$0xff]  ;;  %v2368_v1 = vld [vmem:[#allocation8 + $0xa90] sm:$0xff] }
 0x405   :  { %2986 = vmatpush2.msra.mxu1 %v2276_v44  ;;  %3065 = vmatpush2.msra.mxu0 %v2400_v51  ;;  %v2369_v31 = vld [vmem:[#allocation8 + $0xa98] sm:$0xff]  ;;  %v2240_v50 = vld [vmem:[#allocation8 + $0x690] sm:$0xff] }
 0x406   :  { %2987 = vmatprep.subr.mxu1 %v2273_v2  ;;  %3066 = vmatprep.subr.mxu0 %v2397_v46  ;;  %v2241_v5 = vld [vmem:[#allocation8 + $0x698] sm:$0xff]  ;;  %v2364_v0 = vld [vmem:[#allocation8 + $0xa70] sm:$0xff] }
 0x407   :  { %2988 = vmatpush2.msra.mxu1 %v2272_v12  ;;  %3067 = vmatpush2.msra.mxu0 %v2396_v14  ;;  %v2365_v24 = vld [vmem:[#allocation8 + $0xa78] sm:$0xff]  ;;  %v2236_v51 = vld [vmem:[#allocation8 + $0x670] sm:$0xff] }
 0x408   :  { %2989 = vmatprep.subr.mxu1 %v2269_v15  ;;  %3068 = vmatprep.subr.mxu0 %v2393_v17  ;;  %v2237_v7 = vld [vmem:[#allocation8 + $0x678] sm:$0xff]  ;;  %v2360_v2 = vld [vmem:[#allocation8 + $0xa50] sm:$0xff] }
 0x409   :  { %2990 = vmatpush2.msra.mxu1 %v2268_v19  ;;  %3069 = vmatpush2.msra.mxu0 %v2392_v37  ;;  %v2361_v44 = vld [vmem:[#allocation8 + $0xa58] sm:$0xff]  ;;  %v2232_v14 = vld [vmem:[#allocation8 + $0x650] sm:$0xff] }
 0x40a   :  { %2991 = vmatprep.subr.mxu1 %v2265_v43  ;;  %3070 = vmatprep.subr.mxu0 %v2389_v28  ;;  %v2233_v46 = vld [vmem:[#allocation8 + $0x658] sm:$0xff]  ;;  %v2356_v15 = vld [vmem:[#allocation8 + $0xa30] sm:$0xff] }
 0x40b   :  { %2992 = vmatpush2.msra.mxu1 %v2264_v58  ;;  %3071 = vmatpush2.msra.mxu0 %v2388_v11  ;;  %v2357_v12 = vld [vmem:[#allocation8 + $0xa38] sm:$0xff]  ;;  %v2228_v37 = vld [vmem:[#allocation8 + $0x630] sm:$0xff] }
 0x40c   :  { %2993 = vmatprep.subr.mxu1 %v2261_v45  ;;  %3072 = vmatprep.subr.mxu0 %v2385_v33  ;;  %v2229_v17 = vld [vmem:[#allocation8 + $0x638] sm:$0xff]  ;;  %v2352_v43 = vld [vmem:[#allocation8 + $0xa10] sm:$0xff] }
 0x40d   :  { %2994 = vmatpush2.msra.mxu1 %v2260_v59  ;;  %3073 = vmatpush2.msra.mxu0 %v2384_v18  ;;  %v2353_v19 = vld [vmem:[#allocation8 + $0xa18] sm:$0xff]  ;;  %v2224_v58 = vld [vmem:[#allocation8 + $0x610] sm:$0xff] }
 0x40e   :  { %2995 = vmatprep.subr.mxu1 %v2257_v55  ;;  %3074 = vmatprep.subr.mxu0 %v2381_v56  ;;  %v2225_v28 = vld [vmem:[#allocation8 + $0x618] sm:$0xff]  ;;  %v2476_v45 = vld [vmem:[#allocation8 + $0xdf0] sm:$0xff] }
 0x40f   :  { %2996 = vmatpush2.msra.mxu1 %v2256_v48  ;;  %3075 = vmatpush2.msra.mxu0 %v2380_v32  ;;  %v2477_v11 = vld [vmem:[#allocation8 + $0xdf8] sm:$0xff]  ;;  %v2472_v59 = vld [vmem:[#allocation8 + $0xdd0] sm:$0xff]  ;;  %v3212_v32 = vld [vmem:[#allocation11 + $0xc0] sm:$0xff] }
 0x410   :  { %2997 = vmatprep.subr.mxu1 %v2253_v47  ;;  %3076 = vmatprep.subr.mxu0 %v2377_v36  ;;  %v2473_v33 = vld [vmem:[#allocation8 + $0xdd8] sm:$0xff]  ;;  %v2452_v40 = vld [vmem:[#allocation8 + $0xd30] sm:$0xff] }
 0x411   :  { %2998 = vmatpush2.msra.mxu1 %v2252_v57  ;;  %3077 = vmatpush2.msra.mxu0 %v2376_v34  ;;  %v3219_v18 = vld [vmem:[#allocation11 + $0xf8] sm:$0xff]  ;;  %v3214_v56 = vld [vmem:[#allocation11 + $0xd0] sm:$0xff]  ;;  %v3209_v34 = vld [vmem:[#allocation11 + $0xa8] sm:$0xff] }
 0x412   :  { %2999 = vmatprep.subr.mxu1 %v2249_v49  ;;  %3078 = vmatprep.subr.mxu0 %v2373_v41  ;;  %v2469_v55 = vld [vmem:[#allocation8 + $0xdb8] sm:$0xff]  ;;  %v2448_v57 = vld [vmem:[#allocation8 + $0xd10] sm:$0xff]  ;;  %v3208_v41 = vld [vmem:[#allocation11 + $0xa0] sm:$0xff] }
 0x413   :  { %3000 = vmatpush2.msra.mxu1 %v2248_v61  ;;  %3079 = vmatpush2.msra.mxu0 %v2372_v62  ;;  %v2453_v48 = vld [vmem:[#allocation8 + $0xd38] sm:$0xff]  ;;  %v2444_v61 = vld [vmem:[#allocation8 + $0xcf0] sm:$0xff] }
 0x414   :  { %3001 = vmatprep.subr.mxu1 %v2245_v42  ;;  %3080 = vmatprep.subr.mxu0 %v2369_v31  ;;  %v2449_v47 = vld [vmem:[#allocation8 + $0xd18] sm:$0xff]  ;;  %v3277_v23 = vld [vmem:[#allocation11 + $0x2c8] sm:$0xff] }
 0x415   :  { %3002 = vmatpush2.msra.mxu1 %v2244_v63  ;;  %3081 = vmatpush2.msra.mxu0 %v2368_v1  ;;  %v3210_v36 = vld [vmem:[#allocation11 + $0xb0] sm:$0xff]  ;;  %v3207_v62 = vld [vmem:[#allocation11 + $0x98] sm:$0xff]  ;;  %v3205_v1 = vld [vmem:[#allocation11 + $0x88] sm:$0xff] }
 0x416   :  { %3003 = vmatprep.subr.mxu1 %v2241_v5  ;;  %3082 = vmatprep.subr.mxu0 %v2365_v24  ;;  %v2445_v49 = vld [vmem:[#allocation8 + $0xcf8] sm:$0xff]  ;;  %v2440_v63 = vld [vmem:[#allocation8 + $0xcd0] sm:$0xff]  ;;  %v3204_v24 = vld [vmem:[#allocation11 + $0x80] sm:$0xff] }
 0x417   :  { %3004 = vmatpush2.msra.mxu1 %v2240_v50  ;;  %3083 = vmatpush2.msra.mxu0 %v2364_v0  ;;  %v2441_v42 = vld [vmem:[#allocation8 + $0xcd8] sm:$0xff]  ;;  %v2436_v50 = vld [vmem:[#allocation8 + $0xcb0] sm:$0xff] }
 0x418   :  { %3005 = vmatprep.subr.mxu1 %v2237_v7  ;;  %3084 = vmatprep.subr.mxu0 %v2361_v44  ;;  %v3206_v31 = vld [vmem:[#allocation11 + $0x90] sm:$0xff]  ;;  %v3203_v0 = vld [vmem:[#allocation11 + $0x78] sm:$0xff]  ;;  %v3273_v21 = vld [vmem:[#allocation11 + $0x2a8] sm:$0xff] }
 0x419   :  { %3006 = vmatpush2.msra.mxu1 %v2236_v51  ;;  %3085 = vmatpush2.msra.mxu0 %v2360_v2  ;;  %v2437_v5 = vld [vmem:[#allocation8 + $0xcb8] sm:$0xff]  ;;  %v2432_v51 = vld [vmem:[#allocation8 + $0xc90] sm:$0xff] }
 0x41a   :  { %3007 = vmatprep.subr.mxu1 %v2233_v46  ;;  %3086 = vmatprep.subr.mxu0 %v2357_v12  ;;  %v2433_v7 = vld [vmem:[#allocation8 + $0xc98] sm:$0xff]  ;;  %v3201_v2 = vld [vmem:[#allocation11 + $0x68] sm:$0xff]  ;;  %v3200_v12 = vld [vmem:[#allocation11 + $0x60] sm:$0xff] }
 0x41b   :  { %3008 = vmatpush2.msra.mxu1 %v2232_v14  ;;  %3087 = vmatpush2.msra.mxu0 %v2356_v15  ;;  %v3202_v44 = vld [vmem:[#allocation11 + $0x70] sm:$0xff]  ;;  %v3199_v15 = vld [vmem:[#allocation11 + $0x58] sm:$0xff] }
 0x41c   :  { %3009 = vmatprep.subr.mxu1 %v2229_v17  ;;  %3088 = vmatprep.subr.mxu0 %v2353_v19  ;;  %v2429_v46 = vld [vmem:[#allocation8 + $0xc78] sm:$0xff]  ;;  %v2428_v14 = vld [vmem:[#allocation8 + $0xc70] sm:$0xff] }
 0x41d   :  { %3010 = vmatpush2.msra.mxu1 %v2228_v37  ;;  %3089 = vmatpush2.msra.mxu0 %v2352_v43  ;;  %v2425_v17 = vld [vmem:[#allocation8 + $0xc58] sm:$0xff]  ;;  %v2424_v37 = vld [vmem:[#allocation8 + $0xc50] sm:$0xff] }
 0x41e   :  { %3011 = vmatprep.subr.mxu1 %v2225_v28  ;;  %3091 = vmatmul.mubr.f32.vlgmr.msra.gmra.mxu0 %v1998_v22  ;;  %v3218_v22 = vld [vmem:[#allocation11 + $0xf0] sm:$0xff]  ;;  %v3197_v43 = vld [vmem:[#allocation11 + $0x48] sm:$0xff]  ;;  %v3279_v6 = vld [vmem:[#allocation11 + $0x2d8] sm:$0xff] }
 0x41f   :  { %3012 = vmatpush2.msra.mxu1 %v2224_v58  ;;  %3096 = vmatprep.mubr.f32.mxu0 %v2003_v3  ;;  %v3215_v3 = vld [vmem:[#allocation11 + $0xd8] sm:$0xff]  ;;  %v3198_v19 = vld [vmem:[#allocation11 + $0x50] sm:$0xff]  ;;  %v3196_v58 = vld [vmem:[#allocation11 + $0x40] sm:$0xff] }
 0x420   :  { %3014 = vmatmul.mubr.f32.vlgmr.msra.gmra.mxu1 %v1281_v52  ;;  %3103 = vmatprep.subr.mxu1 %v2477_v11  ;;  %v3217_v52 = vld [vmem:[#allocation11 + $0xe8] sm:$0xff]  ;;  %v2421_v28 = vld [vmem:[#allocation8 + $0xc38] sm:$0xff] }
 0x421   :  { %3019 = vmatprep.mubr.f32.mxu1 %v1286_v38  ;;  %3104 = vmatpush1.msra.mxu1 %v2476_v45  ;;  %v3216_v38 = vld [vmem:[#allocation11 + $0xe0] sm:$0xff]  ;;  %v2420_v11 = vld [vmem:[#allocation8 + $0xc30] sm:$0xff]  ;;  %v3195_v45 = vld [vmem:[#allocation11 + $0x38] sm:$0xff] }
 0x422   :  { %3097 = vmatmul.mubr.f32.gmra.mxu0 %v2002_v9  ;;  %3105 = vmatprep.subr.mxu1 %v2473_v33  ;;  %v2457_v9 = vld [vmem:[#allocation8 + $0xd58] sm:$0xff] }
 0x423   :  { %3106 = vmatpush1.msra.mxu1 %v2472_v59  ;;  %3328 = vmatprep.subr.mxu0 %v3219_v18  ;;  %v2417_v33 = vld [vmem:[#allocation8 + $0xc18] sm:$0xff]  ;;  %v2416_v18 = vld [vmem:[#allocation8 + $0xc10] sm:$0xff] }
 0x424   :  { %3020 = vmatmul.mubr.f32.gmra.mxu1 %v1285_v54  ;;  %3107 = vmatprep.subr.mxu1 %v2469_v55  ;;  %v3213_v54 = vld [vmem:[#allocation11 + $0xc8] sm:$0xff]  ;;  %v3194_v59 = vld [vmem:[#allocation11 + $0x30] sm:$0xff] }
 0x425   :  { %3108 = vmatpush1.msra.mxu1 %v2468_v35  ;;  %3167 = vmatprep.mubr.f32.mxu1 %v2001_v53  ;;  %v3211_v53 = vld [vmem:[#allocation11 + $0xb8] sm:$0xff]  ;;  %v3193_v55 = vld [vmem:[#allocation11 + $0x28] sm:$0xff] }
 0x426   :  { %3109 = vmatprep.subr.mxu1 %v2465_v4  ;;  %3329 = vmatpush1.msra.mxu0 %v3218_v22  ;;  %v2541_v35 = vld [vmem:[#allocation8 + $0xff8] sm:$0xff]  ;;  %v3192_v4 = vld [vmem:[#allocation11 + $0x20] sm:$0xff]  ;;  %v2540_v22 = vld [vmem:[#allocation8 + $0xff0] sm:$0xff] }
 0x427   :  { %3110 = vmatpush1.msra.mxu1 %v2464_v8  ;;  %3330 = vmatprep.subr.mxu0 %v3217_v52  ;;  %v3191_v8 = vld [vmem:[#allocation11 + $0x18] sm:$0xff] }
 0x428   :  { %3111 = vmatprep.subr.mxu1 %v2461_v16  ;;  %3331 = vmatpush1.msra.mxu0 %v3216_v38  ;;  %v2537_v52 = vld [vmem:[#allocation8 + $0xfd8] sm:$0xff]  ;;  %v2536_v38 = vld [vmem:[#allocation8 + $0xfd0] sm:$0xff] }
 0x429   :  { %3112 = vmatpush1.msra.mxu1 %v2460_v20  ;;  %3332 = vmatprep.subr.mxu0 %v3215_v3  ;;  %v3190_v16 = vld [vmem:[#allocation11 + $0x10] sm:$0xff]  ;;  %v3189_v20 = vld [vmem:[#allocation11 + $0x8] sm:$0xff] }
 0x42a   :  { %3113 = vmatprep.subr.mxu1 %v2457_v9  ;;  %3333 = vmatpush1.msra.mxu0 %v3214_v56  ;;  %v2533_v3 = vld [vmem:[#allocation8 + $0xfb8] sm:$0xff]  ;;  %v3188_v9 = vld [vmem:[#allocation11] sm:$0xff]  ;;  %v2532_v56 = vld [vmem:[#allocation8 + $0xfb0] sm:$0xff] }
 0x42b   :  { %3114 = vmatpush1.msra.mxu1 %v2456_v13  ;;  %3334 = vmatprep.subr.mxu0 %v3213_v54  ;;  %v3251_v13 = vld [vmem:[#allocation11 + $0x1f8] sm:$0xff] }
 0x42c   :  { %3115 = vmatprep.subr.mxu1 %v2453_v48  ;;  %3335 = vmatpush1.msra.mxu0 %v3212_v32  ;;  %v2529_v54 = vld [vmem:[#allocation8 + $0xf98] sm:$0xff]  ;;  %v2528_v32 = vld [vmem:[#allocation8 + $0xf90] sm:$0xff] }
 0x42d   :  { %3116 = vmatpush1.msra.mxu1 %v2452_v40  ;;  %3336 = vmatprep.subr.mxu0 %v3211_v53  ;;  %v3250_v48 = vld [vmem:[#allocation11 + $0x1f0] sm:$0xff]  ;;  %v3249_v40 = vld [vmem:[#allocation11 + $0x1e8] sm:$0xff] }
 0x42e   :  { %3117 = vmatprep.subr.mxu1 %v2449_v47  ;;  %3337 = vmatpush1.msra.mxu0 %v3210_v36  ;;  %v2525_v53 = vld [vmem:[#allocation8 + $0xf78] sm:$0xff]  ;;  %v3248_v47 = vld [vmem:[#allocation11 + $0x1e0] sm:$0xff]  ;;  %v2524_v36 = vld [vmem:[#allocation8 + $0xf70] sm:$0xff] }
 0x42f   :  { %3118 = vmatpush1.msra.mxu1 %v2448_v57  ;;  %3338 = vmatprep.subr.mxu0 %v3209_v34  ;;  %v3247_v57 = vld [vmem:[#allocation11 + $0x1d8] sm:$0xff] }
 0x430   :  { %3119 = vmatprep.subr.mxu1 %v2445_v49  ;;  %3339 = vmatpush1.msra.mxu0 %v3208_v41  ;;  %v2521_v34 = vld [vmem:[#allocation8 + $0xf58] sm:$0xff]  ;;  %v2520_v41 = vld [vmem:[#allocation8 + $0xf50] sm:$0xff] }
 0x431   :  { %3120 = vmatpush1.msra.mxu1 %v2444_v61  ;;  %3340 = vmatprep.subr.mxu0 %v3207_v62  ;;  %v3246_v49 = vld [vmem:[#allocation11 + $0x1d0] sm:$0xff]  ;;  %v3245_v61 = vld [vmem:[#allocation11 + $0x1c8] sm:$0xff] }
 0x432   :  { %3121 = vmatprep.subr.mxu1 %v2441_v42  ;;  %3341 = vmatpush1.msra.mxu0 %v3206_v31  ;;  %v2517_v62 = vld [vmem:[#allocation8 + $0xf38] sm:$0xff]  ;;  %v3244_v42 = vld [vmem:[#allocation11 + $0x1c0] sm:$0xff]  ;;  %v2516_v31 = vld [vmem:[#allocation8 + $0xf30] sm:$0xff] }
 0x433   :  { %3122 = vmatpush1.msra.mxu1 %v2440_v63  ;;  %3342 = vmatprep.subr.mxu0 %v3205_v1  ;;  %v3243_v63 = vld [vmem:[#allocation11 + $0x1b8] sm:$0xff] }
 0x434   :  { %3123 = vmatprep.subr.mxu1 %v2437_v5  ;;  %3343 = vmatpush1.msra.mxu0 %v3204_v24  ;;  %v2513_v1 = vld [vmem:[#allocation8 + $0xf18] sm:$0xff]  ;;  %v2512_v24 = vld [vmem:[#allocation8 + $0xf10] sm:$0xff] }
 0x435   :  { %3124 = vmatpush1.msra.mxu1 %v2436_v50  ;;  %3344 = vmatprep.subr.mxu0 %v3203_v0  ;;  %v3242_v5 = vld [vmem:[#allocation11 + $0x1b0] sm:$0xff]  ;;  %v3241_v50 = vld [vmem:[#allocation11 + $0x1a8] sm:$0xff] }
 0x436   :  { %3125 = vmatprep.subr.mxu1 %v2433_v7  ;;  %3345 = vmatpush1.msra.mxu0 %v3202_v44  ;;  %v2509_v0 = vld [vmem:[#allocation8 + $0xef8] sm:$0xff]  ;;  %v3240_v7 = vld [vmem:[#allocation11 + $0x1a0] sm:$0xff]  ;;  %v2508_v44 = vld [vmem:[#allocation8 + $0xef0] sm:$0xff] }
 0x437   :  { %3126 = vmatpush1.msra.mxu1 %v2432_v51  ;;  %3346 = vmatprep.subr.mxu0 %v3201_v2  ;;  %v3239_v51 = vld [vmem:[#allocation11 + $0x198] sm:$0xff] }
 0x438   :  { %3127 = vmatprep.subr.mxu1 %v2429_v46  ;;  %3347 = vmatpush1.msra.mxu0 %v3200_v12  ;;  %v2505_v2 = vld [vmem:[#allocation8 + $0xed8] sm:$0xff]  ;;  %v2504_v12 = vld [vmem:[#allocation8 + $0xed0] sm:$0xff] }
 0x439   :  { %3128 = vmatpush1.msra.mxu1 %v2428_v14  ;;  %3348 = vmatprep.subr.mxu0 %v3199_v15  ;;  %v3238_v46 = vld [vmem:[#allocation11 + $0x190] sm:$0xff]  ;;  %v3237_v14 = vld [vmem:[#allocation11 + $0x188] sm:$0xff] }
 0x43a   :  { %3129 = vmatprep.subr.mxu1 %v2425_v17  ;;  %3349 = vmatpush1.msra.mxu0 %v3198_v19  ;;  %v2501_v15 = vld [vmem:[#allocation8 + $0xeb8] sm:$0xff]  ;;  %v3236_v17 = vld [vmem:[#allocation11 + $0x180] sm:$0xff]  ;;  %v2500_v19 = vld [vmem:[#allocation8 + $0xeb0] sm:$0xff] }
 0x43b   :  { %3130 = vmatpush1.msra.mxu1 %v2424_v37  ;;  %3350 = vmatprep.subr.mxu0 %v3197_v43  ;;  %v3235_v37 = vld [vmem:[#allocation11 + $0x178] sm:$0xff] }
 0x43c   :  { %3131 = vmatprep.subr.mxu1 %v2421_v28  ;;  %3351 = vmatpush1.msra.mxu0 %v3196_v58  ;;  %v2497_v43 = vld [vmem:[#allocation8 + $0xe98] sm:$0xff]  ;;  %v2496_v58 = vld [vmem:[#allocation8 + $0xe90] sm:$0xff] }
 0x43d   :  { %3132 = vmatpush1.msra.mxu1 %v2420_v11  ;;  %3352 = vmatprep.subr.mxu0 %v3195_v45  ;;  %v3234_v28 = vld [vmem:[#allocation11 + $0x170] sm:$0xff]  ;;  %v3233_v11 = vld [vmem:[#allocation11 + $0x168] sm:$0xff] }
 0x43e   :  { %3133 = vmatprep.subr.mxu1 %v2417_v33  ;;  %3353 = vmatpush1.msra.mxu0 %v3194_v59  ;;  %v2493_v45 = vld [vmem:[#allocation8 + $0xe78] sm:$0xff]  ;;  %v3232_v33 = vld [vmem:[#allocation11 + $0x160] sm:$0xff]  ;;  %v2492_v59 = vld [vmem:[#allocation8 + $0xe70] sm:$0xff] }
 0x43f   :  { %3134 = vmatpush1.msra.mxu1 %v2416_v18  ;;  %3354 = vmatprep.subr.mxu0 %v3193_v55  ;;  %v3231_v18 = vld [vmem:[#allocation11 + $0x158] sm:$0xff] }
 0x440   :  { %3135 = vmatprep.subr.mxu1 %v2541_v35  ;;  %3355 = vmatpush1.msra.mxu0 %v3192_v4  ;;  %v2489_v55 = vld [vmem:[#allocation8 + $0xe58] sm:$0xff]  ;;  %v2488_v4 = vld [vmem:[#allocation8 + $0xe50] sm:$0xff] }
 0x441   :  { %3136 = vmatpush2.msra.mxu1 %v2540_v22  ;;  %3356 = vmatprep.subr.mxu0 %v3191_v8  ;;  %v3230_v35 = vld [vmem:[#allocation11 + $0x150] sm:$0xff]  ;;  %v3229_v22 = vld [vmem:[#allocation11 + $0x148] sm:$0xff] }
 0x442   :  { %3137 = vmatprep.subr.mxu1 %v2537_v52  ;;  %3357 = vmatpush1.msra.mxu0 %v3190_v16  ;;  %v2485_v8 = vld [vmem:[#allocation8 + $0xe38] sm:$0xff]  ;;  %v3228_v52 = vld [vmem:[#allocation11 + $0x140] sm:$0xff]  ;;  %v2484_v16 = vld [vmem:[#allocation8 + $0xe30] sm:$0xff] }
 0x443   :  { %3138 = vmatpush2.msra.mxu1 %v2536_v38  ;;  %3358 = vmatprep.subr.mxu0 %v3189_v20  ;;  %v3227_v38 = vld [vmem:[#allocation11 + $0x138] sm:$0xff] }
 0x444   :  { %3139 = vmatprep.subr.mxu1 %v2533_v3  ;;  %3359 = vmatpush1.msra.mxu0 %v3188_v9  ;;  %v2481_v20 = vld [vmem:[#allocation8 + $0xe18] sm:$0xff]  ;;  %v2480_v9 = vld [vmem:[#allocation8 + $0xe10] sm:$0xff] }
 0x445   :  { %3140 = vmatpush2.msra.mxu1 %v2532_v56  ;;  %3360 = vmatprep.subr.mxu0 %v3251_v13  ;;  %v3226_v3 = vld [vmem:[#allocation11 + $0x130] sm:$0xff]  ;;  %v3225_v56 = vld [vmem:[#allocation11 + $0x128] sm:$0xff]  ;;  %v3224_v13 = vld [vmem:[#allocation11 + $0x120] sm:$0xff] }
 0x446   :  { %3141 = vmatprep.subr.mxu1 %v2529_v54  ;;  %3361 = vmatpush2.msra.mxu0 %v3250_v48  ;;  %v3223_v54 = vld [vmem:[#allocation11 + $0x118] sm:$0xff]  ;;  %v3222_v48 = vld [vmem:[#allocation11 + $0x110] sm:$0xff] }
 0x447   :  { %3142 = vmatpush2.msra.mxu1 %v2528_v32  ;;  %3362 = vmatprep.subr.mxu0 %v3249_v40  ;;  %v3221_v32 = vld [vmem:[#allocation11 + $0x108] sm:$0xff]  ;;  %v3220_v40 = vld [vmem:[#allocation11 + $0x100] sm:$0xff] }
 0x448   :  { %3143 = vmatprep.subr.mxu1 %v2525_v53  ;;  %3363 = vmatpush2.msra.mxu0 %v3248_v47  ;;  %v3283_v53 = vld [vmem:[#allocation11 + $0x2f8] sm:$0xff]  ;;  %v3282_v47 = vld [vmem:[#allocation11 + $0x2f0] sm:$0xff] }
 0x449   :  { %3144 = vmatpush2.msra.mxu1 %v2524_v36  ;;  %3364 = vmatprep.subr.mxu0 %v3247_v57  ;;  %v3281_v36 = vld [vmem:[#allocation11 + $0x2e8] sm:$0xff]  ;;  %v3280_v57 = vld [vmem:[#allocation11 + $0x2e0] sm:$0xff] }
 0x44a   :  { %3145 = vmatprep.subr.mxu1 %v2521_v34  ;;  %3365 = vmatpush2.msra.mxu0 %v3246_v49  ;;  %v3275_v34 = vld [vmem:[#allocation11 + $0x2b8] sm:$0xff]  ;;  %v3274_v49 = vld [vmem:[#allocation11 + $0x2b0] sm:$0xff] }
 0x44b   :  { %3146 = vmatpush2.msra.mxu1 %v2520_v41  ;;  %3366 = vmatprep.subr.mxu0 %v3245_v61  ;;  %v3271_v41 = vld [vmem:[#allocation11 + $0x298] sm:$0xff]  ;;  %v3270_v61 = vld [vmem:[#allocation11 + $0x290] sm:$0xff] }
 0x44c   :  { %3147 = vmatprep.subr.mxu1 %v2517_v62  ;;  %3367 = vmatpush2.msra.mxu0 %v3244_v42  ;;  %v3269_v62 = vld [vmem:[#allocation11 + $0x288] sm:$0xff]  ;;  %v3268_v42 = vld [vmem:[#allocation11 + $0x280] sm:$0xff] }
 0x44d   :  { %3148 = vmatpush2.msra.mxu1 %v2516_v31  ;;  %3368 = vmatprep.subr.mxu0 %v3243_v63  ;;  %v3267_v31 = vld [vmem:[#allocation11 + $0x278] sm:$0xff]  ;;  %v3266_v63 = vld [vmem:[#allocation11 + $0x270] sm:$0xff] }
 0x44e   :  { %3149 = vmatprep.subr.mxu1 %v2513_v1  ;;  %3369 = vmatpush2.msra.mxu0 %v3242_v5  ;;  %v3265_v1 = vld [vmem:[#allocation11 + $0x268] sm:$0xff]  ;;  %v3264_v5 = vld [vmem:[#allocation11 + $0x260] sm:$0xff] }
 0x44f   :  { %3150 = vmatpush2.msra.mxu1 %v2512_v24  ;;  %3370 = vmatprep.subr.mxu0 %v3241_v50  ;;  %v3263_v24 = vld [vmem:[#allocation11 + $0x258] sm:$0xff]  ;;  %v3262_v50 = vld [vmem:[#allocation11 + $0x250] sm:$0xff] }
 0x450   :  { %3151 = vmatprep.subr.mxu1 %v2509_v0  ;;  %3371 = vmatpush2.msra.mxu0 %v3240_v7  ;;  %v3261_v0 = vld [vmem:[#allocation11 + $0x248] sm:$0xff]  ;;  %v3260_v7 = vld [vmem:[#allocation11 + $0x240] sm:$0xff] }
 0x451   :  { %3152 = vmatpush2.msra.mxu1 %v2508_v44  ;;  %3372 = vmatprep.subr.mxu0 %v3239_v51  ;;  %v3259_v44 = vld [vmem:[#allocation11 + $0x238] sm:$0xff]  ;;  %v3258_v51 = vld [vmem:[#allocation11 + $0x230] sm:$0xff] }
 0x452   :  { %3153 = vmatprep.subr.mxu1 %v2505_v2  ;;  %3373 = vmatpush2.msra.mxu0 %v3238_v46  ;;  %v3257_v2 = vld [vmem:[#allocation11 + $0x228] sm:$0xff]  ;;  %v3256_v46 = vld [vmem:[#allocation11 + $0x220] sm:$0xff] }
 0x453   :  { %3154 = vmatpush2.msra.mxu1 %v2504_v12  ;;  %3374 = vmatprep.subr.mxu0 %v3237_v14  ;;  %v3255_v12 = vld [vmem:[#allocation11 + $0x218] sm:$0xff]  ;;  %v3254_v14 = vld [vmem:[#allocation11 + $0x210] sm:$0xff] }
 0x454   :  { %3155 = vmatprep.subr.mxu1 %v2501_v15  ;;  %3375 = vmatpush2.msra.mxu0 %v3236_v17  ;;  %v3253_v15 = vld [vmem:[#allocation11 + $0x208] sm:$0xff]  ;;  %v3252_v17 = vld [vmem:[#allocation11 + $0x200] sm:$0xff] }
 0x455   :  { %3156 = vmatpush2.msra.mxu1 %v2500_v19  ;;  %3376 = vmatprep.subr.mxu0 %v3235_v37  ;;  %v3315_v19 = vld [vmem:[#allocation11 + $0x3f8] sm:$0xff]  ;;  %v3314_v37 = vld [vmem:[#allocation11 + $0x3f0] sm:$0xff] }
 0x456   :  { %3157 = vmatprep.subr.mxu1 %v2497_v43  ;;  %3377 = vmatpush2.msra.mxu0 %v3234_v28  ;;  %v3313_v43 = vld [vmem:[#allocation11 + $0x3e8] sm:$0xff]  ;;  %v2630_v28 = vpop.f32.mrf.mxu0 }
 0x457   :  { %3158 = vmatpush2.msra.mxu1 %v2496_v58  ;;  %3378 = vmatprep.subr.mxu0 %v3233_v11  ;;  %v3312_v58 = vld [vmem:[#allocation11 + $0x3e0] sm:$0xff]  ;;  %v3311_v11 = vld [vmem:[#allocation11 + $0x3d8] sm:$0xff] }
 0x458   :  { %3159 = vmatprep.subr.mxu1 %v2493_v45  ;;  %3379 = vmatpush2.msra.mxu0 %v3232_v33  ;;  %v3310_v45 = vld [vmem:[#allocation11 + $0x3d0] sm:$0xff]  ;;  %v3309_v33 = vld [vmem:[#allocation11 + $0x3c8] sm:$0xff] }
 0x459   :  { %3160 = vmatpush2.msra.mxu1 %v2492_v59  ;;  %3380 = vmatprep.subr.mxu0 %v3231_v18  ;;  %v2632_v59 = vpop.f32.mrf.mxu0  ;;  %v3308_v18 = vld [vmem:[#allocation11 + $0x3c0] sm:$0xff] }
 0x45a   :  { %3161 = vmatprep.subr.mxu1 %v2489_v55  ;;  %3381 = vmatpush2.msra.mxu0 %v3230_v35  ;;  %v3307_v55 = vld [vmem:[#allocation11 + $0x3b8] sm:$0xff]  ;;  %v3306_v35 = vld [vmem:[#allocation11 + $0x3b0] sm:$0xff] }
 0x45b   :  { %3162 = vmatpush2.msra.mxu1 %v2488_v4  ;;  %3382 = vmatprep.subr.mxu0 %v3229_v22  ;;  %v3305_v4 = vld [vmem:[#allocation11 + $0x3a8] sm:$0xff]  ;;  %v2707_v22 = vpop.f32.mrf.mxu1 }
 0x45c   :  { %3163 = vmatprep.subr.mxu1 %v2485_v8  ;;  %3383 = vmatpush2.msra.mxu0 %v3228_v52  ;;  %v2636_v8 = vpop.f32.mrf.mxu0  ;;  %v3304_v52 = vld [vmem:[#allocation11 + $0x3a0] sm:$0xff] }
 0x45d   :  { %3164 = vmatpush2.msra.mxu1 %v2484_v16  ;;  %3384 = vmatprep.subr.mxu0 %v3227_v38  ;;  %v4846_v16 = vld [vmem:[#allocation10] sm:$0xf] }
 0x45e   :  { %3165 = vmatprep.subr.mxu1 %v2481_v20  ;;  %3385 = vmatpush2.msra.mxu0 %v3226_v3  ;;  %v3303_v38 = vld [vmem:[#allocation11 + $0x398] sm:$0xff]  ;;  %v3302_v20 = vld [vmem:[#allocation11 + $0x390] sm:$0xff]  ;;  %v3301_v3 = vld [vmem:[#allocation11 + $0x388] sm:$0xff] }
 0x45f   :  { %3166 = vmatpush2.msra.mxu1 %v2480_v9  ;;  %3386 = vmatprep.subr.mxu0 %v3225_v56  ;;  %v2547_v9 = vrot.slane %v4846_v16, %v4523_v27  ;;  %v2709_v56 = vpop.f32.mrf.mxu1 }
 0x460   :  { %3168 = vmatmul.mubr.f32.vlgmr.msra.gmra.mxu1 %v2000_v10  ;;  %3387 = vmatpush2.msra.mxu0 %v3224_v13  ;;  %v3278_v10 = vld [vmem:[#allocation11 + $0x2d0] sm:$0xff]  ;;  %v2638_v13 = vpop.f32.mrf.mxu0 }
 0x461   :  { %3173 = vmatprep.mubr.f32.mxu1 %v2005_v39  ;;  %3388 = vmatprep.subr.mxu0 %v3223_v54  ;;  %v3276_v39 = vld [vmem:[#allocation11 + $0x2c0] sm:$0xff] }
 0x462   :  { %3389 = vmatpush2.msra.mxu0 %v3222_v48  ;;  %3405 = vmatprep.subr.mxu1 %v3283_v53  ;;  %v3300_v54 = vld [vmem:[#allocation11 + $0x380] sm:$0xff]  ;;  %v2551_v48 = vrot.slane %v4846_v16, %v4528_v29  ;;  %v3298_v53 = vld [vmem:[#allocation11 + $0x370] sm:$0xff] }
 0x463   :  { %3390 = vmatprep.subr.mxu0 %v3221_v32  ;;  %3406 = vmatpush1.msra.mxu1 %v3282_v47  ;;  %v3299_v32 = vld [vmem:[#allocation11 + $0x378] sm:$0xff]  ;;  %v3297_v47 = vld [vmem:[#allocation11 + $0x368] sm:$0xff] }
 0x464   :  { %3174 = vmatmul.mubr.f32.gmra.mxu1 %v2004_v60  ;;  %3391 = vmatpush2.msra.mxu0 %v3220_v40  ;;  %v3272_v60 = vld [vmem:[#allocation11 + $0x2a0] sm:$0xff]  ;;  %v2784_v40 = vpop.f32.mrf.mxu0 }
 0x465   :  { %3407 = vmatprep.subr.mxu1 %v3281_v36  ;;  %v2631_v36 = vadd.f32 %v2630_v28, %v2547_v9 }
 0x466   :  { %3408 = vmatpush1.msra.mxu1 %v3280_v57  ;;  %v2713_v57 = vpop.f32.mrf.mxu1 }
 0x467   :  { %3409 = vmatprep.subr.mxu1 %v3279_v6  ;;  %v3296_v6 = vld [vmem:[#allocation11 + $0x360] sm:$0xff] }
 0x468   :  { %3410 = vmatpush1.msra.mxu1 %v3278_v10  ;;  %v2633_v10 = vadd.f32 %v2632_v59, %v2551_v48 }
 0x469   :  { %3411 = vmatprep.subr.mxu1 %v3277_v23  ;;  %v3295_v23 = vld [vmem:[#allocation11 + $0x358] sm:$0xff] }
 0x46a   :  { %3412 = vmatpush1.msra.mxu1 %v3276_v39  ;;  %v2786_v39 = vpop.f32.mrf.mxu0 }
 0x46b   :  { %3413 = vmatprep.subr.mxu1 %v3275_v34  ;;  %v3294_v34 = vld [vmem:[#allocation11 + $0x350] sm:$0xff] }
 0x46c   :  { %3414 = vmatpush1.msra.mxu1 %v3274_v49  ;;  %v3293_v49 = vld [vmem:[#allocation11 + $0x348] sm:$0xff] }
 0x46d   :  { %3415 = vmatprep.subr.mxu1 %v3273_v21  ;;  %v2708_v21 = vadd.f32 %v2707_v22, %v2631_v36  ;;  %v4852_v22 = vld [vmem:[#allocation14 + $0x78] sm:$0xff] }
 0x46e   :  { %3416 = vmatpush1.msra.mxu1 %v3272_v60  ;;  %v2715_v60 = vpop.f32.mrf.mxu1  ;;  %v4895_v36 = vld [vmem:[#allocation14 + $0xb8] sm:$0xff] }
 0x46f   :  { %3417 = vmatprep.subr.mxu1 %v3271_v41  ;;  %v3292_v41 = vld [vmem:[#allocation11 + $0x340] sm:$0xff] }
 0x470   :  { %3418 = vmatpush1.msra.mxu1 %v3270_v61  ;;  %v2710_v61 = vadd.f32 %v2709_v56, %v2633_v10  ;;  %v4871_v56 = vld [vmem:[#allocation14 + $0xd8] sm:$0xff]  ;;  %v4904_v10 = vld [vmem:[#allocation14 + $0x30] sm:$0xff] }
 0x471   :  { %3419 = vmatprep.subr.mxu1 %v3269_v62  ;;  %v2637_v62 = vadd.f32 %v2636_v8, %v2547_v9  ;;  %v4854_v8 = vld [vmem:[#allocation14 + $0xf0] sm:$0xff]  ;;  %v4868_v9 = vld [vmem:[#allocation14 + $0x60] sm:$0xff] }
 0x472   :  { %3420 = vmatpush1.msra.mxu1 %v3268_v42  ;;  %v2785_v42 = vadd.f32 %v2784_v40, %v2708_v21  ;;  %v4886_v40 = vld [vmem:[#allocation14 + $0x48] sm:$0xff] }
 0x473   :  { %3421 = vmatprep.subr.mxu1 %v3267_v31  ;;  %v2790_v31 = vpop.f32.mrf.mxu0 }
 0x474   :  { %3422 = vmatpush1.msra.mxu1 %v3266_v63 }
 0x475   :  { %3423 = vmatprep.subr.mxu1 %v3265_v1  ;;  %v2639_v1 = vadd.f32 %v2638_v13, %v2551_v48  ;;  %v4874_v13 = vld [vmem:[#allocation14 + $0x58] sm:$0xff]  ;;  %v4880_v48 = vld [vmem:[#allocation14 + $0x50] sm:$0xff] }
 0x476   :  { %3424 = vmatpush1.msra.mxu1 %v3264_v5  ;;  %v2787_v5 = vadd.f32 %v2786_v39, %v2710_v61  ;;  %v4910_v39 = vld [vmem:[#allocation14 + $0x28] sm:$0xff] }
 0x477   :  { %3425 = vmatprep.subr.mxu1 %v3263_v24 }
 0x478   :  { %3426 = vmatpush1.msra.mxu1 %v3262_v50 }
 0x479   :  { %3427 = vmatprep.subr.mxu1 %v3261_v0  ;;  %v3291_v0 = vld [vmem:[#allocation11 + $0x338] sm:$0xff] }
 0x47a   :  { %3428 = vmatpush1.msra.mxu1 %v3260_v7 }
 0x47b   :  { %3429 = vmatprep.subr.mxu1 %v3259_v44  ;;  %v3290_v44 = vld [vmem:[#allocation11 + $0x330] sm:$0xff] }
 0x47c   :  { %3430 = vmatpush1.msra.mxu1 %v3258_v51  ;;  %v2714_v51 = vadd.f32 %v2713_v57, %v2637_v62  ;;  %v4898_v57 = vld [vmem:[#allocation14 + $0x38] sm:$0xff]  ;;  %v2555_v62 = vrot.slane %v4846_v16, %v561_v26 }
 0x47d   :  { %3431 = vmatprep.subr.mxu1 %v3257_v2  ;;  %v2792_v2 = vpop.f32.mrf.mxu0 }
 0x47e   :  { %3432 = vmatpush1.msra.mxu1 %v3256_v46  ;;  %v3289_v46 = vld [vmem:[#allocation11 + $0x328] sm:$0xff] }
 0x47f   :  { %3433 = vmatprep.subr.mxu1 %v3255_v12  ;;  %v2716_v12 = vadd.f32 %v2715_v60, %v2639_v1 }
 0x480   :  { %3434 = vmatpush1.msra.mxu1 %v3254_v14 }
 0x481   :  { %3435 = vmatprep.subr.mxu1 %v3253_v15  ;;  %v3288_v15 = vld [vmem:[#allocation11 + $0x320] sm:$0xff]  ;;  %v2793_v28 = vadd.f32 %v2792_v2, %v2716_v12 }
 0x482   :  { %3436 = vmatpush1.msra.mxu1 %v3252_v17  ;;  %v2791_v17 = vadd.f32 %v2790_v31, %v2714_v51 }
 0x483   :  { %3437 = vmatprep.subr.mxu1 %v3315_v19 }
 0x484   :  { %3438 = vmatpush2.msra.mxu1 %v3314_v37 }
 0x485   :  { %3439 = vmatprep.subr.mxu1 %v3313_v43  ;;  %v3287_v43 = vld [vmem:[#allocation11 + $0x318] sm:$0xff] }
 0x486   :  { %3440 = vmatpush2.msra.mxu1 %v3312_v58  ;;  %v3286_v58 = vld [vmem:[#allocation11 + $0x310] sm:$0xff] }
 0x487   :  { %3441 = vmatprep.subr.mxu1 %v3311_v11 }
 0x488   :  { %3442 = vmatpush2.msra.mxu1 %v3310_v45 }
 0x489   :  { %3443 = vmatprep.subr.mxu1 %v3309_v33  ;;  %v3285_v33 = vld [vmem:[#allocation11 + $0x308] sm:$0xff] }
 0x48a   :  { %3444 = vmatpush2.msra.mxu1 %v3308_v18  ;;  %v3284_v18 = vld [vmem:[#allocation11 + $0x300] sm:$0xff] }
 0x48b   :  { %3445 = vmatprep.subr.mxu1 %v3307_v55 }
 0x48c   :  { %3446 = vmatpush2.msra.mxu1 %v3306_v35 }
 0x48d   :  { %3447 = vmatprep.subr.mxu1 %v3305_v4  ;;  %v3517_v4 = vld [vmem:[#allocation14 + $0xf8] sm:$0xff] }
 0x48e   :  { %3448 = vmatpush2.msra.mxu1 %v3304_v52  ;;  %3650 = vmatprep.subr.mxu0 %v3517_v4  ;;  %v4856_v52 = vld [vmem:[#allocation14 + $0x70] sm:$0xff] }
 0x48f   :  { %3449 = vmatprep.subr.mxu1 %v3303_v38  ;;  %v4859_v38 = vld [vmem:[#allocation14 + $0xe8] sm:$0xff] }
 0x490   :  { %3450 = vmatpush2.msra.mxu1 %v3302_v20  ;;  %v4862_v20 = vld [vmem:[#allocation14 + $0x68] sm:$0xff] }
 0x491   :  { %3451 = vmatprep.subr.mxu1 %v3301_v3  ;;  %v4865_v3 = vld [vmem:[#allocation14 + $0xe0] sm:$0xff] }
 0x492   :  { %3452 = vmatpush2.msra.mxu1 %v3300_v54  ;;  %v4877_v54 = vld [vmem:[#allocation14 + $0xd0] sm:$0xff] }
 0x493   :  { %3453 = vmatprep.subr.mxu1 %v3299_v32  ;;  %v4883_v32 = vld [vmem:[#allocation14 + $0xc8] sm:$0xff] }
 0x494   :  { %3454 = vmatpush2.msra.mxu1 %v3298_v53  ;;  %v4889_v53 = vld [vmem:[#allocation14 + $0xc0] sm:$0xff] }
 0x495   :  { %3455 = vmatprep.subr.mxu1 %v3297_v47  ;;  %v4892_v47 = vld [vmem:[#allocation14 + $0x40] sm:$0xff] }
 0x496   :  { %3456 = vmatpush2.msra.mxu1 %v3296_v6  ;;  %v4901_v6 = vld [vmem:[#allocation14 + $0xb0] sm:$0xff] }
 0x497   :  { %3457 = vmatprep.subr.mxu1 %v3295_v23  ;;  %v4907_v23 = vld [vmem:[#allocation14 + $0xa8] sm:$0xff] }
 0x498   :  { %3458 = vmatpush2.msra.mxu1 %v3294_v34  ;;  %v4913_v34 = vld [vmem:[#allocation14 + $0xa0] sm:$0xff] }
 0x499   :  { %3459 = vmatprep.subr.mxu1 %v3293_v49  ;;  %v4916_v49 = vld [vmem:[#allocation14 + $0x20] sm:$0xff] }
 0x49a   :  { %3460 = vmatpush2.msra.mxu1 %v3292_v41 }
 0x49b   :  { %3461 = vmatprep.subr.mxu1 %v3291_v0  ;;  %v2938_v21 = vpop.f32.mrf.mxu0 }
 0x49c   :  { %3462 = vmatpush2.msra.mxu1 %v3290_v44 }
 0x49d   :  { %3463 = vmatprep.subr.mxu1 %v3289_v46  ;;  %v2940_v60 = vpop.f32.mrf.mxu0 }
 0x49e   :  { %v2861_v63 = vpop.f32.mrf.mxu1  ;;  %3464 = vmatpush2.msra.mxu1 %v3288_v15 }
 0x49f   :  { %v2862_v24 = vadd.f32 %v2861_v63, %v2785_v42  ;;  %3465 = vmatprep.subr.mxu1 %v3287_v43  ;;  %v2944_v41 = vpop.f32.mrf.mxu0  ;;  %v2559_v63 = vrot.slane %v4846_v16, %v565_v30 }
 0x4a0   :  { %v2863_v50 = vpop.f32.mrf.mxu1  ;;  %3466 = vmatpush2.msra.mxu1 %v3286_v58  ;;  %v2945_v51 = vadd.f32 %v2944_v41, %v2555_v62 }
 0x4a1   :  { %v2864_v7 = vadd.f32 %v2863_v50, %v2787_v5  ;;  %v3180_v19 = vmax.f32 %v2862_v24, 0.0  ;;  %3467 = vmatprep.subr.mxu1 %v3285_v33  ;;  %v2946_v42 = vpop.f32.mrf.mxu0  ;;  %v2939_v5 = vadd.f32 %v2938_v21, %v2555_v62  ;;  %v2941_v50 = vadd.f32 %v2940_v60, %v2559_v63 }
 0x4a2   :  { %3468 = vmatpush2.msra.mxu1 %v3284_v18  ;;  %v2947_v46 = vadd.f32 %v2946_v42, %v2559_v63 }
 0x4a3   :  { %v3181_v14 = vmax.f32 %v2864_v7, 0.0  ;;  %3758 = vmatprep.subr.mxu1 %v3517_v4  ;;  %v3505_v4 = vld [vmem:[#allocation14 + $0x98] sm:$0xff] }
 0x4a4   :  { %v2867_v37 = vpop.f32.mrf.mxu1 }
 0x4a5   :  { %3392 = vmatprep.mubr.f32.mxu0 %v3181_v14  ;;  %v2868_v11 = vadd.f32 %v2867_v37, %v2791_v17 }
 0x4a6   :  { %v2869_v45 = vpop.f32.mrf.mxu1  ;;  %3393 = vmatmul.mubr.f32.vlgmr.msra.gmra.mxu0 %v3180_v19 }
 0x4a7   :  { %v2870_v59 = vadd.f32 %v2869_v45, %v2793_v28  ;;  %v3184_v35 = vmax.f32 %v2868_v11, 0.0  ;;  %3651 = vmatpush3.msra.mxu0 %v4852_v22 }
 0x4a8   :  { %3652 = vmatprep.subr.mxu0 %v4854_v8 }
 0x4a9   :  { %v3185_v55 = vmax.f32 %v2870_v59, 0.0  ;;  %3653 = vmatpush3.msra.mxu0 %v4856_v52 }
 0x4aa   :  { %3654 = vmatprep.subr.mxu0 %v4859_v38 }
 0x4ab   :  { %3398 = vmatprep.mubr.f32.mxu0 %v3185_v55  ;;  %3655 = vmatpush3.msra.mxu0 %v4862_v20 }
 0x4ac   :  { %3399 = vmatmul.mubr.f32.gmra.mxu0 %v3184_v35  ;;  %3656 = vmatprep.subr.mxu0 %v4865_v3 }
 0x4ad   :  { %3657 = vmatpush3.msra.mxu0 %v4868_v9 }
 0x4ae   :  { %3658 = vmatprep.subr.mxu0 %v4871_v56 }
 0x4af   :  { %3659 = vmatpush3.msra.mxu0 %v4874_v13 }
 0x4b0   :  { %3660 = vmatprep.subr.mxu0 %v4877_v54 }
 0x4b1   :  { %3661 = vmatpush3.msra.mxu0 %v4880_v48 }
 0x4b2   :  { %3662 = vmatprep.subr.mxu0 %v4883_v32 }
 0x4b3   :  { %3663 = vmatpush3.msra.mxu0 %v4886_v40 }
 0x4b4   :  { %3664 = vmatprep.subr.mxu0 %v4889_v53 }
 0x4b5   :  { %3665 = vmatpush3.msra.mxu0 %v4892_v47 }
 0x4b6   :  { %3666 = vmatprep.subr.mxu0 %v4895_v36 }
 0x4b7   :  { %3667 = vmatpush3.msra.mxu0 %v4898_v57 }
 0x4b8   :  { %3668 = vmatprep.subr.mxu0 %v4901_v6 }
 0x4b9   :  { %3669 = vmatpush3.msra.mxu0 %v4904_v10 }
 0x4ba   :  { %3670 = vmatprep.subr.mxu0 %v4907_v23 }
 0x4bb   :  { %3671 = vmatpush3.msra.mxu0 %v4910_v39 }
 0x4bc   :  { %3672 = vmatprep.subr.mxu0 %v4913_v34 }
 0x4bd   :  { %3673 = vmatpush3.msra.mxu0 %v4916_v49 }
 0x4be   :  { %3674 = vmatprep.subr.mxu0 %v3505_v4 }
 0x4de   :  { %v3092_v1 = vpop.f32.mrf.mxu0 }
 0x4e0   :  { %v3015_v61 = vpop.f32.mrf.mxu1  ;;  %v3094_v7 = vpop.f32.mrf.mxu0 }
 0x4e1   :  { %v3016_v0 = vadd.f32 %v3015_v61, %v2939_v5 }
 0x4e2   :  { %v3017_v31 = vpop.f32.mrf.mxu1  ;;  %v3098_v12 = vpop.f32.mrf.mxu0 }
 0x4e3   :  { %v3018_v44 = vadd.f32 %v3017_v31, %v2941_v50  ;;  %v3093_v15 = vadd.f32 %v3092_v1, %v3016_v0  ;;  %v3613_v31 = vld [vmem:[#allocation16] ss:$0 sm:$0xff] }
 0x4e4   :  { %v3021_v24 = vpop.f32.mrf.mxu1  ;;  %v3100_v30 = vpop.f32.mrf.mxu0 }
 0x4e5   :  { %v3022_v14 = vadd.f32 %v3021_v24, %v2945_v51  ;;  %v3095_v19 = vadd.f32 %v3094_v7, %v3018_v44 }
 0x4e6   :  { %v3023_v2 = vpop.f32.mrf.mxu1 }
 0x4e7   :  { %v3024_v17 = vadd.f32 %v3023_v2, %v2947_v46  ;;  %v3099_v16 = vadd.f32 %v3098_v12, %v3022_v14 }
 0x4e9   :  { %v3101_v11 = vadd.f32 %v3100_v30, %v3024_v17 }
 0x520   :  { %v3169_v26 = vpop.f32.mrf.mxu1 }
 0x521   :  { %v3170_v37 = vadd.f32 %v3169_v26, %v3093_v15 }
 0x522   :  { %v3171_v25 = vpop.f32.mrf.mxu1 }
 0x523   :  { %v3172_v43 = vadd.f32 %v3171_v25, %v3095_v19  ;;  %v3182_v45 = vmax.f32 %v3170_v37, 0.0 }
 0x524   :  { %v3175_v28 = vpop.f32.mrf.mxu1 }
 0x525   :  { %v3183_v58 = vmax.f32 %v3172_v43, 0.0  ;;  %v3176_v33 = vadd.f32 %v3175_v28, %v3099_v16 }
 0x526   :  { %v3177_v59 = vpop.f32.mrf.mxu1 }
 0x527   :  { %v3178_v18 = vadd.f32 %v3177_v59, %v3101_v11  ;;  %3469 = vmatprep.mubr.f32.mxu1 %v3183_v58  ;;  %v3186_v35 = vmax.f32 %v3176_v33, 0.0 }
 0x528   :  { %3470 = vmatmul.mubr.f32.vlgmr.msra.gmra.mxu1 %v3182_v45 }
 0x529   :  { %v3187_v55 = vmax.f32 %v3178_v18, 0.0  ;;  %3774 = vmatpush3.msra.mxu1 %v4852_v22  ;;  %v3489_v22 = vld [vmem:[#allocation14 + $0x18] sm:$0xff] }
 0x52a   :  { %3759 = vmatprep.subr.mxu1 %v4854_v8  ;;  %3675 = vmatpush3.msra.mxu0 %v3489_v22  ;;  %v3504_v8 = vld [vmem:[#allocation14 + $0x90] sm:$0xff] }
 0x52b   :  { %3475 = vmatprep.mubr.f32.mxu1 %v3187_v55  ;;  %3775 = vmatpush3.msra.mxu1 %v4856_v52  ;;  %v3488_v52 = vld [vmem:[#allocation14 + $0x10] sm:$0xff] }
 0x52c   :  { %3476 = vmatmul.mubr.f32.gmra.mxu1 %v3186_v35  ;;  %3760 = vmatprep.subr.mxu1 %v4859_v38  ;;  %v3503_v38 = vld [vmem:[#allocation14 + $0x88] sm:$0xff] }
 0x52d   :  { %3776 = vmatpush3.msra.mxu1 %v4862_v20  ;;  %3676 = vmatprep.subr.mxu0 %v3504_v8  ;;  %v3487_v20 = vld [vmem:[#allocation14 + $0x8] sm:$0xff] }
 0x52e   :  { %3761 = vmatprep.subr.mxu1 %v4865_v3  ;;  %3677 = vmatpush3.msra.mxu0 %v3488_v52  ;;  %v3502_v3 = vld [vmem:[#allocation14 + $0x80] sm:$0xff] }
 0x52f   :  { %3777 = vmatpush3.msra.mxu1 %v4868_v9  ;;  %3678 = vmatprep.subr.mxu0 %v3503_v38  ;;  %v3486_v9 = vld [vmem:[#allocation14] sm:$0xff] }
 0x530   :  { %3762 = vmatprep.subr.mxu1 %v4871_v56  ;;  %3679 = vmatpush3.msra.mxu0 %v3487_v20 }
 0x531   :  { %3778 = vmatpush3.msra.mxu1 %v4874_v13  ;;  %3680 = vmatprep.subr.mxu0 %v3502_v3  ;;  %v3316_v13 = vld [vmem:[#allocation13] sm:$0x3] }
 0x532   :  { %3763 = vmatprep.subr.mxu1 %v4877_v54  ;;  %3681 = vmatpush3.msra.mxu0 %v3486_v9 }
 0x533   :  { %3779 = vmatpush3.msra.mxu1 %v4880_v48  ;;  %v3321_v48 = vrot.slane %v3316_v13, %v4523_v27 }
 0x534   :  { %3764 = vmatprep.subr.mxu1 %v4883_v32  ;;  %v3325_v32 = vrot.slane %v3316_v13, %v4528_v29 }
 0x535   :  { %3780 = vmatpush3.msra.mxu1 %v4886_v40 }
 0x536   :  { %3765 = vmatprep.subr.mxu1 %v4889_v53 }
 0x537   :  { %3781 = vmatpush3.msra.mxu1 %v4892_v47 }
 0x538   :  { %3766 = vmatprep.subr.mxu1 %v4895_v36 }
 0x539   :  { %3782 = vmatpush3.msra.mxu1 %v4898_v57 }
 0x53a   :  { %3767 = vmatprep.subr.mxu1 %v4901_v6 }
 0x53b   :  { %3783 = vmatpush3.msra.mxu1 %v4904_v10 }
 0x53c   :  { %3768 = vmatprep.subr.mxu1 %v4907_v23 }
 0x53d   :  { %3784 = vmatpush3.msra.mxu1 %v4910_v39 }
 0x53e   :  { %3769 = vmatprep.subr.mxu1 %v4913_v34 }
 0x53f   :  { %3785 = vmatpush3.msra.mxu1 %v4916_v49 }
 0x540   :  { %3770 = vmatprep.subr.mxu1 %v3505_v4 }
 0x541   :  { %3786 = vmatpush3.msra.mxu1 %v3489_v22 }
 0x542   :  { %3771 = vmatprep.subr.mxu1 %v3504_v8 }
 0x543   :  { %3787 = vmatpush3.msra.mxu1 %v3488_v52 }
 0x544   :  { %3772 = vmatprep.subr.mxu1 %v3503_v38 }
 0x545   :  { %3788 = vmatpush3.msra.mxu1 %v3487_v20 }
 0x546   :  { %3773 = vmatprep.subr.mxu1 %v3502_v3 }
 0x547   :  { %3789 = vmatpush3.msra.mxu1 %v3486_v9 }
 0x566   :  { %v3394_v56 = vpop.f32.mrf.mxu0 }
 0x567   :  { %v3395_v53 = vadd.f32 %v3394_v56, %v3321_v48 }
 0x568   :  { %v3396_v54 = vpop.f32.mrf.mxu0 }
 0x569   :  { %v3397_v36 = vadd.f32 %v3396_v54, %v3325_v32 }
 0x56c   :  { %v3400_v40 = vpop.f32.mrf.mxu0 }
 0x56d   :  { %v3401_v39 = vadd.f32 %v3400_v40, %v3321_v48 }
 0x56e   :  { %v3402_v57 = vpop.f32.mrf.mxu0 }
 0x56f   :  { %v3403_v49 = vadd.f32 %v3402_v57, %v3325_v32 }
 0x5e8   :  { %v3471_v47 = vpop.f32.mrf.mxu1 }
 0x5e9   :  { %v3472_v6 = vadd.f32 %v3471_v47, %v3395_v53 }
 0x5ea   :  { %v3473_v10 = vpop.f32.mrf.mxu1 }
 0x5eb   :  { %v3474_v23 = vadd.f32 %v3473_v10, %v3397_v36  ;;  %v3482_v60 = vmax.f32 %v3472_v6, 0.0 }
 0x5ec   :  { %v3477_v34 = vpop.f32.mrf.mxu1 }
 0x5ed   :  { %v3483_v21 = vmax.f32 %v3474_v23, 0.0  ;;  %v3478_v41 = vadd.f32 %v3477_v34, %v3401_v39 }
 0x5ee   :  { %v3479_v61 = vpop.f32.mrf.mxu1 }
 0x5ef   :  { %v3480_v62 = vadd.f32 %v3479_v61, %v3403_v49  ;;  %3589 = vmatprep.mubr.f32.mxu0 %v3483_v21  ;;  %v3484_v29 = vmax.f32 %v3478_v41, 0.0 }
 0x5f0   :  { %3590 = vmatmul.mubr.f32.vlgmr.msra.gmra.mxu0 %v3482_v60 }
 0x5f1   :  { %v3485_v27 = vmax.f32 %v3480_v62, 0.0 }
 0x5f3   :  { %3594 = vmatprep.mubr.f32.mxu1 %v3485_v27 }
 0x5f4   :  { %3595 = vmatmul.mubr.f32.vlgmr.msra.gmra.mxu1 %v3484_v29 }
 0x6b0   :  { %v3682_v42 = vpop.f32.mrf.mxu0 }
 0x6b2   :  { %v3683_v63 = vpop.f32.mrf.mxu0 }
 0x6b3   :  { %v3684_v1 = vadd.f32 %v3683_v63, %v3682_v42 }
 0x6b4   :  { %v3685_v5 = vpop.f32.mrf.mxu1 }
 0x6b5   :  { %v3592_v24 = vadd.f32 %v3684_v1, %v3613_v31 }
 0x6b6   :  { %v3686_v50 = vpop.f32.mrf.mxu1 }
 0x6b7   :  { %v3600_v0 = vmax.f32 %v3592_v24, 0.0  ;;  %v3687_v7 = vadd.f32 %v3686_v50, %v3685_v5 }
 0x6b9   :  { %3602 = vst [vmem:[%s4968_s10] sm:$0xff] %v3600_v0  ;;  %v3597_v44 = vadd.f32 %v3687_v7, %v3613_v31 }
 0x6bb   :  { %v3601_v51 = vmax.f32 %v3597_v44, 0.0 }
 0x6bd   :  { %3603 = vst [vmem:[%s4968_s10 + $0x8] sm:$0xff] %v3601_v51 }
 0x6be   :  { %3608 = vsyncpa [#allocation4], 1 }
 0x6bf   :  { %3609 = vsyncpa [#allocation6], 1 }
 0x6c0   :  { %3610 = vsyncpa [#allocation9], 1 }
 0x6c1   :  { %3611 = vsyncpa [#allocation12], 1 }
 0x6c2   :  { %3612 = vsyncpa [#allocation15], 1 }

</bundles_post_ra>
